<compile_context>
chip_gen: v7x
topology: tpu7x:2x2x1
jax: 0.10.0
libtpu: 0.0.40
codegen_flags: <defaults>
</compile_context>

<pallas_src>
import functools

import numpy as np
import jax
import jax.numpy as jnp
from jax.experimental import pallas as pl
from jax.experimental.pallas import tpu as pltpu


# ----------------------------------------------------------------------------
# Fixed LeNet geometry / layout constants
# ----------------------------------------------------------------------------
KS = 5                     # conv kernel size
C1, C2 = 6, 16             # conv output channels
P1, P2 = 14, 5             # pooled spatial sizes after pool1 / pool2
N1, N2, N3 = 120, 84, 10   # fc sizes
LANE = 128                 # padded lane width for every activation / weight N
FRAME = 32                 # padded image frame (28 + 2 top + 2 bottom, 28 + 4 right)
ROWS2 = 16                 # per-image row block after pool1 (14 valid + 2 junk)
MAX_TILE = 32              # images per grid step (multiple of 8)


def _round_up(x, m):
    return (x + m - 1) // m * m


# ----------------------------------------------------------------------------
# The fused kernel: one grid step == B_TILE images
# ----------------------------------------------------------------------------
def _lenet_kernel(x_ref, cb1_ref, b1_ref, cb2_ref, b2_ref, f1_ref, fb1_ref,
                  w2t_ref, fb2_ref, w3t_ref, fb3_ref, out_ref,
                  st1_ref, s1_ref, st2_ref, s3_ref):
    f32 = jnp.float32
    bt = out_ref.shape[0]          # images in this tile
    r1 = bt * FRAME                # stacked padded-image rows (== x block rows)
    m1 = r1 - 4                    # conv1 output rows computed (valid: 0..27 / image)
    r2 = bt * ROWS2                # stacked pool1 rows (valid: 0..13 / image)

    # ---- conv1 LHS staging: concatenate the 5 row taps along K (lanes).
    # Image b sits at x rows [b*32+2, b*32+30); rows 0,1,30,31 and cols 28..31
    # of each 32x32 frame are zero (host-side padding), so the "same" padding
    # of conv1 is handled by the data + the band matrix.
    for i in range(KS):
        st1_ref[pl.ds(0, m1), pl.ds(32 * i, 32)] = x_ref[pl.ds(i, m1), :]

    # ---- conv1 as ONE matmul [m1,160]x[160,256]; even output columns land in
    # lanes [0,128), odd in [128,256) so the width half of pool1 is a max. ----
    acc = jnp.dot(st1_ref[pl.ds(0, m1), :], cb1_ref[...],
                  preferred_element_type=f32)
    a1 = jnp.maximum(jnp.maximum(acc[:, :LANE], acc[:, LANE:]) + b1_ref[...],
                     0.0)                                      # [m1, 128]
    s1_ref[pl.ds(0, m1), :] = a1
    # Rows [m1, r1+8) only ever feed discarded rows; zero them for determinism.
    s1_ref[pl.ds(m1, 12), :] = jnp.zeros((12, LANE), f32)

    # ---- pool1 height + conv2 LHS staging fused: lane block i of st2 holds
    # pool1 rows shifted by i (strided sublane loads do the 2x row pairing). ----
    for i in range(KS):
        win = jnp.maximum(s1_ref[pl.ds(2 * i, r2, stride=2), :],
                          s1_ref[pl.ds(2 * i + 1, r2, stride=2), :])
        st2_ref[pl.ds(0, r2), pl.ds(LANE * i, LANE)] = win

    # ---- conv2 as ONE matmul [r2,640]x[640,256] + bias + ReLU + width pool. ----
    acc = jnp.dot(st2_ref[...], cb2_ref[...], preferred_element_type=f32)
    a2 = jnp.maximum(jnp.maximum(acc[:, :LANE], acc[:, LANE:]) + b2_ref[...],
                     0.0)                                      # [r2, 128]
    s3_ref[...] = a2

    # ---- pool2 height fused into fc1: per pooled row h, pick row pair
    # (2h, 2h+1) of every image with stride-16 loads and contract against the
    # per-row fc1 weight slice (torch (c,h,w) flatten order pre-baked). ----
    y = jnp.zeros((bt, LANE), f32)
    for h in range(P2):
        rh = jnp.maximum(s3_ref[pl.ds(2 * h, bt, stride=ROWS2), :],
                         s3_ref[pl.ds(2 * h + 1, bt, stride=ROWS2), :])
        y = y + jnp.dot(rh, f1_ref[h], preferred_element_type=f32)
    y = jnp.maximum(y + fb1_ref[...], 0.0)

    # ---- fc2 + ReLU, fc3 (weights pre-transposed and lane-padded). ----
    y = jnp.maximum(jnp.dot(y, w2t_ref[...], preferred_element_type=f32)
                    + fb2_ref[...], 0.0)
    out_ref[...] = (jnp.dot(y, w3t_ref[...], preferred_element_type=f32)
                    + fb3_ref[...])


# ----------------------------------------------------------------------------
# One-time host-side weight re-layout
# ----------------------------------------------------------------------------
def prepare_lenet_params(params):
    """Re-layout PyTorch-style LeNet params into the K-concatenated band /
    lane-padded matrices consumed by the fused kernel.  Done ONCE at init."""
    f32 = np.float32
    w1 = np.asarray(params["conv1_w"], f32)    # [6, 1, 5, 5]
    b1 = np.asarray(params["conv1_b"], f32)    # [6]
    w2 = np.asarray(params["conv2_w"], f32)    # [16, 6, 5, 5]
    b2 = np.asarray(params["conv2_b"], f32)    # [16]
    fw1 = np.asarray(params["fc1_w"], f32)     # [120, 400]

    # conv1 band: K = 5 row taps x 32 frame cols, N = (even|odd) x (c1*14 + wp).
    # Frame col for output col (2*wp + parity) and kernel col j is
    # 2*wp + parity + j - 2 ("same" padding); negative cols are the left zero
    # padding and are simply dropped, cols 28/29 hit the zero frame columns.
    cb1 = np.zeros((KS * 32, 2 * LANE), f32)
    for c in range(C1):
        for wp in range(P1):
            for parity in range(2):
                lane = parity * LANE + c * P1 + wp
                for i in range(KS):
                    for j in range(KS):
                        col = 2 * wp + parity + j - 2
                        if col >= 0:
                            cb1[i * 32 + col, lane] = w1[c, 0, i, j]

    # conv2 band: K = 5 row taps x 128 lanes (c1*14 + w_in), N = (even|odd) x
    # (c2*5 + wq).  No padding: w_in = 2*wq + parity + j (0..13).
    cb2 = np.zeros((KS * LANE, 2 * LANE), f32)
    for co in range(C2):
        for wq in range(P2):
            for parity in range(2):
                lane = parity * LANE + co * P2 + wq
                for ci in range(C1):
                    for i in range(KS):
                        for j in range(KS):
                            w_in = 2 * wq + parity + j
                            cb2[i * LANE + ci * P1 + w_in, lane] = w2[co, ci, i, j]

    b1row = np.zeros((1, LANE), f32)
    b1row[0, :C1 * P1] = np.repeat(b1, P1)
    b2row = np.zeros((1, LANE), f32)
    b2row[0, :C2 * P2] = np.repeat(b2, P2)

    # fc1 split per pooled row h; input lane layout c2*5 + wq matches torch's
    # x.view(-1, 400) flatten order (c2, h, wq).
    f1 = np.zeros((P2, LANE, LANE), f32)
    fw = fw1.reshape(N1, C2, P2, P2)                       # [k, c2, h, wq]
    f1[:, :C2 * P2, :N1] = np.transpose(fw, (2, 1, 3, 0)).reshape(P2, C2 * P2, N1)

    fb1 = np.zeros((1, LANE), f32)
    fb1[0, :N1] = np.asarray(params["fc1_b"], f32)
    w2t = np.zeros((LANE, LANE), f32)
    w2t[:N1, :N2] = np.asarray(params["fc2_w"], f32).T
    fb2 = np.zeros((1, LANE), f32)
    fb2[0, :N2] = np.asarray(params["fc2_b"], f32)
    w3t = np.zeros((LANE, LANE), f32)
    w3t[:N2, :N3] = np.asarray(params["fc3_w"], f32).T
    fb3 = np.zeros((1, LANE), f32)
    fb3[0, :N3] = np.asarray(params["fc3_b"], f32)

    return {k: jnp.asarray(v) for k, v in dict(
        cb1=cb1, b1=b1row, cb2=cb2, b2=b2row, f1=f1, fb1=fb1,
        w2t=w2t, fb2=fb2, w3t=w3t, fb3=fb3).items()}


# ----------------------------------------------------------------------------
# Forward pass: one fused pallas_call, grid-parallel over batch tiles
# ----------------------------------------------------------------------------
@jax.jit
def lenet_forward(prep, x):
    n = x.shape[0]
    assert x.shape[1:] == (1, 28, 28), x.shape
    x = x.astype(jnp.float32).reshape(n, 28, 28)

    bt = min(MAX_TILE, _round_up(n, 8))          # images per grid step
    n_pad = _round_up(n, bt)
    # Pad every image into a zero 32x32 frame (2 rows top/bottom, 4 cols right)
    # and stack along rows: image b occupies rows [b*32, (b+1)*32).
    xp = jnp.pad(x, ((0, n_pad - n), (2, 2), (0, 4)))
    x2d = xp.reshape(n_pad * FRAME, FRAME)

    grid = (n_pad // bt,)
    r1 = bt * FRAME
    r2 = bt * ROWS2

    def w2spec(shape):
        return pl.BlockSpec(shape, lambda g: (0, 0))

    grid_spec = pltpu.PrefetchScalarGridSpec(
        num_scalar_prefetch=0,
        grid=grid,
        in_specs=[
            pl.BlockSpec((r1, FRAME), lambda g: (g, 0)),          # padded images
            w2spec((KS * 32, 2 * LANE)),                          # conv1 band
            w2spec((1, LANE)),                                    # conv1 bias row
            w2spec((KS * LANE, 2 * LANE)),                        # conv2 band
            w2spec((1, LANE)),                                    # conv2 bias row
            pl.BlockSpec((P2, LANE, LANE), lambda g: (0, 0, 0)),  # fc1 per-row slices
            w2spec((1, LANE)),                                    # fc1 bias
            w2spec((LANE, LANE)),                                 # fc2 weight (pre-T)
            w2spec((1, LANE)),                                    # fc2 bias
            w2spec((LANE, LANE)),                                 # fc3 weight (pre-T)
            w2spec((1, LANE)),                                    # fc3 bias
        ],
        out_specs=pl.BlockSpec((bt, LANE), lambda g: (g, 0)),
        scratch_shapes=[
            pltpu.VMEM((r1, KS * 32), jnp.float32),     # st1: conv1 K-concat LHS
            pltpu.VMEM((r1 + 8, LANE), jnp.float32),    # s1 : conv1 act (width-pooled)
            pltpu.VMEM((r2, KS * LANE), jnp.float32),   # st2: conv2 K-concat LHS
            pltpu.VMEM((r2, LANE), jnp.float32),        # s3 : conv2 act (width-pooled)
        ],
    )

    flops_per_step = (2 * (r1 - 4) * (KS * 32) * (2 * LANE)       # conv1
                      + 2 * r2 * (KS * LANE) * (2 * LANE)         # conv2
                      + 2 * P2 * bt * LANE * LANE                 # fc1
                      + 2 * bt * LANE * LANE * 2)                 # fc2, fc3
    weight_bytes = 4 * sum(int(v.size) for v in prep.values())
    bytes_accessed = weight_bytes + 4 * (n_pad * FRAME * FRAME + n_pad * LANE)

    out = pl.pallas_call(
        _lenet_kernel,
        out_shape=jax.ShapeDtypeStruct((n_pad, LANE), jnp.float32),
        grid_spec=grid_spec,
        compiler_params=pltpu.CompilerParams(
            dimension_semantics=("parallel",)),
        cost_estimate=pl.CostEstimate(flops=grid[0] * flops_per_step,
                                      transcendentals=0,
                                      bytes_accessed=bytes_accessed),
    )(x2d, prep["cb1"], prep["b1"], prep["cb2"], prep["b2"], prep["f1"],
      prep["fb1"], prep["w2t"], prep["fb2"], prep["w3t"], prep["fb3"])

    return out[:n, :N3]


# ----------------------------------------------------------------------------
# Parameter init (PyTorch-style) and pure-JAX reference for a sanity check
# ----------------------------------------------------------------------------
def init_lenet_params(key):
    ks = jax.random.split(key, 10)

    def u(k, shape, fan_in):
        bound = 1.0 / jnp.sqrt(fan_in)
        return jax.random.uniform(k, shape, jnp.float32, -bound, bound)

    return {
        "conv1_w": u(ks[0], (6, 1, 5, 5), 1 * 5 * 5),
        "conv1_b": u(ks[1], (6,), 1 * 5 * 5),
        "conv2_w": u(ks[2], (16, 6, 5, 5), 6 * 5 * 5),
        "conv2_b": u(ks[3], (16,), 6 * 5 * 5),
        "fc1_w": u(ks[4], (120, 400), 400),
        "fc1_b": u(ks[5], (120,), 400),
        "fc2_w": u(ks[6], (84, 120), 120),
        "fc2_b": u(ks[7], (84,), 120),
        "fc3_w": u(ks[8], (10, 84), 84),
        "fc3_b": u(ks[9], (10,), 84),
    }


def _reference_forward(params, x):
    dn = jax.lax.conv_dimension_numbers(x.shape, params["conv1_w"].shape,
                                        ("NCHW", "OIHW", "NCHW"))
    y = jax.lax.conv_general_dilated(x, params["conv1_w"], (1, 1),
                                     [(2, 2), (2, 2)], dimension_numbers=dn)
    y = jax.nn.relu(y + params["conv1_b"][None, :, None, None])
    y = jax.lax.reduce_window(y, -jnp.inf, jax.lax.max, (1, 1, 2, 2),
                              (1, 1, 2, 2), "VALID")
    y = jax.lax.conv_general_dilated(y, params["conv2_w"], (1, 1),
                                     [(0, 0), (0, 0)], dimension_numbers=dn)
    y = jax.nn.relu(y + params["conv2_b"][None, :, None, None])
    y = jax.lax.reduce_window(y, -jnp.inf, jax.lax.max, (1, 1, 2, 2),
                              (1, 1, 2, 2), "VALID")
    y = y.reshape(y.shape[0], 400)
    y = jax.nn.relu(y @ params["fc1_w"].T + params["fc1_b"])
    y = jax.nn.relu(y @ params["fc2_w"].T + params["fc2_b"])
    y = y @ params["fc3_w"].T + params["fc3_b"]
    return y


if __name__ == "__main__":
    key = jax.random.PRNGKey(0)
    pkey, xkey = jax.random.split(key)
    params = init_lenet_params(pkey)
    prep = prepare_lenet_params(params)      # one-time weight re-layout

    # LeNet geometry requires 28x28 single-channel input (16*5*5 flatten).
    x = jax.random.normal(xkey, (2, 1, 28, 28), dtype=jnp.float32)

    out = jax.block_until_ready(lenet_forward(prep, x))
    assert out.shape == (2, 10), out.shape

    ref = _reference_forward(params, x)
    err = float(jnp.max(jnp.abs(out - ref)))
    assert jnp.allclose(out, ref, atol=1e-2, rtol=1e-2), err

    print("KERNEL_OK")
</pallas_src>

<mosaic_0001>
module attributes {stable_mosaic.version = 11 : i64} {
  func.func @_lenet_kernel(%arg0: i32, %arg1: memref<256x32xf32, #tpu.memory_space<vmem>>, %arg2: memref<160x256xf32, #tpu.memory_space<vmem>>, %arg3: memref<1x128xf32, #tpu.memory_space<vmem>>, %arg4: memref<640x256xf32, #tpu.memory_space<vmem>>, %arg5: memref<1x128xf32, #tpu.memory_space<vmem>>, %arg6: memref<5x128x128xf32, #tpu.memory_space<vmem>>, %arg7: memref<1x128xf32, #tpu.memory_space<vmem>>, %arg8: memref<128x128xf32, #tpu.memory_space<vmem>>, %arg9: memref<1x128xf32, #tpu.memory_space<vmem>>, %arg10: memref<128x128xf32, #tpu.memory_space<vmem>>, %arg11: memref<1x128xf32, #tpu.memory_space<vmem>>, %arg12: memref<8x128xf32, #tpu.memory_space<vmem>>, %arg13: memref<256x160xf32, #tpu.memory_space<vmem>>, %arg14: memref<264x128xf32, #tpu.memory_space<vmem>>, %arg15: memref<128x640xf32, #tpu.memory_space<vmem>>, %arg16: memref<128x128xf32, #tpu.memory_space<vmem>>) attributes {dimension_semantics = [#tpu.dimension_semantics<parallel>], iteration_bounds = array<i64: 1>, scalar_prefetch = 0 : i64, scratch_operands = 4 : i64, tpu.core_type = #tpu.core_type<tc>, window_params = [{transform_indices = @transform_0, window_bounds = array<i64: 256, 32>}, {pipeline_mode = #tpu.pipeline_mode<synchronous>, transform_indices = @transform_1, window_bounds = array<i64: 160, 256>}, {pipeline_mode = #tpu.pipeline_mode<synchronous>, transform_indices = @transform_2, window_bounds = array<i64: 1, 128>}, {pipeline_mode = #tpu.pipeline_mode<synchronous>, transform_indices = @transform_3, window_bounds = array<i64: 640, 256>}, {pipeline_mode = #tpu.pipeline_mode<synchronous>, transform_indices = @transform_4, window_bounds = array<i64: 1, 128>}, {pipeline_mode = #tpu.pipeline_mode<synchronous>, transform_indices = @transform_5, window_bounds = array<i64: 5, 128, 128>}, {pipeline_mode = #tpu.pipeline_mode<synchronous>, transform_indices = @transform_6, window_bounds = array<i64: 1, 128>}, {pipeline_mode = #tpu.pipeline_mode<synchronous>, transform_indices = @transform_7, window_bounds = array<i64: 128, 128>}, {pipeline_mode = #tpu.pipeline_mode<synchronous>, transform_indices = @transform_8, window_bounds = array<i64: 1, 128>}, {pipeline_mode = #tpu.pipeline_mode<synchronous>, transform_indices = @transform_9, window_bounds = array<i64: 128, 128>}, {pipeline_mode = #tpu.pipeline_mode<synchronous>, transform_indices = @transform_10, window_bounds = array<i64: 1, 128>}, {transform_indices = @transform_11, window_bounds = array<i64: 8, 128>}]} {
    %c0 = arith.constant 0 : index
    %c0_0 = arith.constant 0 : index
    %0 = vector.load %arg1[%c0, %c0_0] : memref<256x32xf32, #tpu.memory_space<vmem>>, vector<252x32xf32>
    %c0_1 = arith.constant 0 : index
    %c0_2 = arith.constant 0 : index
    %1 = vector.load %arg13[%c0_1, %c0_2] : memref<256x160xf32, #tpu.memory_space<vmem>>, vector<252x32xf32>
    tpu.vector_store %arg13[%c0_1, %c0_2], %0 {strides = array<i32>} : memref<256x160xf32, #tpu.memory_space<vmem>>, vector<252x32xf32>,
    %c1 = arith.constant 1 : index
    %c0_3 = arith.constant 0 : index
    %2 = vector.load %arg1[%c1, %c0_3] : memref<256x32xf32, #tpu.memory_space<vmem>>, vector<252x32xf32>
    %c0_4 = arith.constant 0 : index
    %c32 = arith.constant 32 : index
    %3 = vector.load %arg13[%c0_4, %c32] : memref<256x160xf32, #tpu.memory_space<vmem>>, vector<252x32xf32>
    tpu.vector_store %arg13[%c0_4, %c32], %2 {strides = array<i32>} : memref<256x160xf32, #tpu.memory_space<vmem>>, vector<252x32xf32>,
    %c2 = arith.constant 2 : index
    %c0_5 = arith.constant 0 : index
    %4 = vector.load %arg1[%c2, %c0_5] : memref<256x32xf32, #tpu.memory_space<vmem>>, vector<252x32xf32>
    %c0_6 = arith.constant 0 : index
    %c64 = arith.constant 64 : index
    %5 = vector.load %arg13[%c0_6, %c64] : memref<256x160xf32, #tpu.memory_space<vmem>>, vector<252x32xf32>
    tpu.vector_store %arg13[%c0_6, %c64], %4 {strides = array<i32>} : memref<256x160xf32, #tpu.memory_space<vmem>>, vector<252x32xf32>,
    %c3 = arith.constant 3 : index
    %c0_7 = arith.constant 0 : index
    %6 = vector.load %arg1[%c3, %c0_7] : memref<256x32xf32, #tpu.memory_space<vmem>>, vector<252x32xf32>
    %c0_8 = arith.constant 0 : index
    %c96 = arith.constant 96 : index
    %7 = vector.load %arg13[%c0_8, %c96] : memref<256x160xf32, #tpu.memory_space<vmem>>, vector<252x32xf32>
    tpu.vector_store %arg13[%c0_8, %c96], %6 {strides = array<i32>} : memref<256x160xf32, #tpu.memory_space<vmem>>, vector<252x32xf32>,
    %c4 = arith.constant 4 : index
    %c0_9 = arith.constant 0 : index
    %8 = vector.load %arg1[%c4, %c0_9] : memref<256x32xf32, #tpu.memory_space<vmem>>, vector<252x32xf32>
    %c0_10 = arith.constant 0 : index
    %c128 = arith.constant 128 : index
    %9 = vector.load %arg13[%c0_10, %c128] : memref<256x160xf32, #tpu.memory_space<vmem>>, vector<252x32xf32>
    tpu.vector_store %arg13[%c0_10, %c128], %8 {strides = array<i32>} : memref<256x160xf32, #tpu.memory_space<vmem>>, vector<252x32xf32>,
    %c0_11 = arith.constant 0 : index
    %c0_12 = arith.constant 0 : index
    %10 = vector.load %arg13[%c0_11, %c0_12] : memref<256x160xf32, #tpu.memory_space<vmem>>, vector<252x160xf32>
    %c0_13 = arith.constant 0 : index
    %c0_14 = arith.constant 0 : index
    %11 = vector.load %arg2[%c0_13, %c0_14] : memref<160x256xf32, #tpu.memory_space<vmem>>, vector<160x256xf32>
    %cst = arith.constant dense<0.000000e+00> : vector<252x256xf32>
    %12 = tpu.matmul %10, %11, %cst {dimension_numbers = #tpu.dot_dimension_numbers<[1], [0], [0], [1], [0, 0, 1, 1], [], []>} : vector<252x160xf32>, vector<160x256xf32>, vector<252x256xf32> -> vector<252x256xf32>
    %13 = vector.extract_strided_slice %12 {offsets = [0, 0], sizes = [252, 128], strides = [1, 1]} : vector<252x256xf32> to vector<252x128xf32>
    %14 = vector.extract_strided_slice %12 {offsets = [0, 128], sizes = [252, 128], strides = [1, 1]} : vector<252x256xf32> to vector<252x128xf32>
    %15 = arith.maximumf %13, %14 : vector<252x128xf32>
    %c0_15 = arith.constant 0 : index
    %c0_16 = arith.constant 0 : index
    %16 = vector.load %arg3[%c0_15, %c0_16] : memref<1x128xf32, #tpu.memory_space<vmem>>, vector<1x128xf32>
    %17 = vector.broadcast %16 : vector<1x128xf32> to vector<252x128xf32>
    %18 = arith.addf %15, %17 : vector<252x128xf32>
    %cst_17 = arith.constant 0.000000e+00 : f32
    %19 = vector.broadcast %cst_17 : f32 to vector<252x128xf32>
    %20 = arith.maximumf %18, %19 : vector<252x128xf32>
    %c0_18 = arith.constant 0 : index
    %c0_19 = arith.constant 0 : index
    %21 = vector.load %arg14[%c0_18, %c0_19] : memref<264x128xf32, #tpu.memory_space<vmem>>, vector<252x128xf32>
    tpu.vector_store %arg14[%c0_18, %c0_19], %20 {strides = array<i32>} : memref<264x128xf32, #tpu.memory_space<vmem>>, vector<252x128xf32>,
    %cst_20 = arith.constant 0.000000e+00 : f32
    %22 = vector.broadcast %cst_20 : f32 to vector<12x128xf32>
    %c252 = arith.constant 252 : index
    %c0_21 = arith.constant 0 : index
    %23 = vector.load %arg14[%c252, %c0_21] : memref<264x128xf32, #tpu.memory_space<vmem>>, vector<12x128xf32>
    tpu.vector_store %arg14[%c252, %c0_21], %22 {strides = array<i32>} : memref<264x128xf32, #tpu.memory_space<vmem>>, vector<12x128xf32>,
    %c0_22 = arith.constant 0 : index
    %c0_23 = arith.constant 0 : index
    %24 = tpu.strided_load %arg14[%c0_22, %c0_23] {strides = array<i32: 2, 1>} : memref<264x128xf32, #tpu.memory_space<vmem>>, vector<128x128xf32>
    %c1_24 = arith.constant 1 : index
    %c0_25 = arith.constant 0 : index
    %25 = tpu.strided_load %arg14[%c1_24, %c0_25] {strides = array<i32: 2, 1>} : memref<264x128xf32, #tpu.memory_space<vmem>>, vector<128x128xf32>
    %26 = arith.maximumf %24, %25 : vector<128x128xf32>
    %c0_26 = arith.constant 0 : index
    %c0_27 = arith.constant 0 : index
    %27 = vector.load %arg15[%c0_26, %c0_27] : memref<128x640xf32, #tpu.memory_space<vmem>>, vector<128x128xf32>
    tpu.vector_store %arg15[%c0_26, %c0_27], %26 {strides = array<i32>} : memref<128x640xf32, #tpu.memory_space<vmem>>, vector<128x128xf32>,
    %c2_28 = arith.constant 2 : index
    %c0_29 = arith.constant 0 : index
    %28 = tpu.strided_load %arg14[%c2_28, %c0_29] {strides = array<i32: 2, 1>} : memref<264x128xf32, #tpu.memory_space<vmem>>, vector<128x128xf32>
    %c3_30 = arith.constant 3 : index
    %c0_31 = arith.constant 0 : index
    %29 = tpu.strided_load %arg14[%c3_30, %c0_31] {strides = array<i32: 2, 1>} : memref<264x128xf32, #tpu.memory_space<vmem>>, vector<128x128xf32>
    %30 = arith.maximumf %28, %29 : vector<128x128xf32>
    %c0_32 = arith.constant 0 : index
    %c128_33 = arith.constant 128 : index
    %31 = vector.load %arg15[%c0_32, %c128_33] : memref<128x640xf32, #tpu.memory_space<vmem>>, vector<128x128xf32>
    tpu.vector_store %arg15[%c0_32, %c128_33], %30 {strides = array<i32>} : memref<128x640xf32, #tpu.memory_space<vmem>>, vector<128x128xf32>,
    %c4_34 = arith.constant 4 : index
    %c0_35 = arith.constant 0 : index
    %32 = tpu.strided_load %arg14[%c4_34, %c0_35] {strides = array<i32: 2, 1>} : memref<264x128xf32, #tpu.memory_space<vmem>>, vector<128x128xf32>
    %c5 = arith.constant 5 : index
    %c0_36 = arith.constant 0 : index
    %33 = tpu.strided_load %arg14[%c5, %c0_36] {strides = array<i32: 2, 1>} : memref<264x128xf32, #tpu.memory_space<vmem>>, vector<128x128xf32>
    %34 = arith.maximumf %32, %33 : vector<128x128xf32>
    %c0_37 = arith.constant 0 : index
    %c256 = arith.constant 256 : index
    %35 = vector.load %arg15[%c0_37, %c256] : memref<128x640xf32, #tpu.memory_space<vmem>>, vector<128x128xf32>
    tpu.vector_store %arg15[%c0_37, %c256], %34 {strides = array<i32>} : memref<128x640xf32, #tpu.memory_space<vmem>>, vector<128x128xf32>,
    %c6 = arith.constant 6 : index
    %c0_38 = arith.constant 0 : index
    %36 = tpu.strided_load %arg14[%c6, %c0_38] {strides = array<i32: 2, 1>} : memref<264x128xf32, #tpu.memory_space<vmem>>, vector<128x128xf32>
    %c7 = arith.constant 7 : index
    %c0_39 = arith.constant 0 : index
    %37 = tpu.strided_load %arg14[%c7, %c0_39] {strides = array<i32: 2, 1>} : memref<264x128xf32, #tpu.memory_space<vmem>>, vector<128x128xf32>
    %38 = arith.maximumf %36, %37 : vector<128x128xf32>
    %c0_40 = arith.constant 0 : index
    %c384 = arith.constant 384 : index
    %39 = vector.load %arg15[%c0_40, %c384] : memref<128x640xf32, #tpu.memory_space<vmem>>, vector<128x128xf32>
    tpu.vector_store %arg15[%c0_40, %c384], %38 {strides = array<i32>} : memref<128x640xf32, #tpu.memory_space<vmem>>, vector<128x128xf32>,
    %c8 = arith.constant 8 : index
    %c0_41 = arith.constant 0 : index
    %40 = tpu.strided_load %arg14[%c8, %c0_41] {strides = array<i32: 2, 1>} : memref<264x128xf32, #tpu.memory_space<vmem>>, vector<128x128xf32>
    %c9 = arith.constant 9 : index
    %c0_42 = arith.constant 0 : index
    %41 = tpu.strided_load %arg14[%c9, %c0_42] {strides = array<i32: 2, 1>} : memref<264x128xf32, #tpu.memory_space<vmem>>, vector<128x128xf32>
    %42 = arith.maximumf %40, %41 : vector<128x128xf32>
    %c0_43 = arith.constant 0 : index
    %c512 = arith.constant 512 : index
    %43 = vector.load %arg15[%c0_43, %c512] : memref<128x640xf32, #tpu.memory_space<vmem>>, vector<128x128xf32>
    tpu.vector_store %arg15[%c0_43, %c512], %42 {strides = array<i32>} : memref<128x640xf32, #tpu.memory_space<vmem>>, vector<128x128xf32>,
    %c0_44 = arith.constant 0 : index
    %c0_45 = arith.constant 0 : index
    %44 = vector.load %arg15[%c0_44, %c0_45] : memref<128x640xf32, #tpu.memory_space<vmem>>, vector<128x640xf32>
    %c0_46 = arith.constant 0 : index
    %c0_47 = arith.constant 0 : index
    %45 = vector.load %arg4[%c0_46, %c0_47] : memref<640x256xf32, #tpu.memory_space<vmem>>, vector<640x256xf32>
    %cst_48 = arith.constant dense<0.000000e+00> : vector<128x256xf32>
    %46 = tpu.matmul %44, %45, %cst_48 {dimension_numbers = #tpu.dot_dimension_numbers<[1], [0], [0], [1], [0, 0, 1, 1], [], []>} : vector<128x640xf32>, vector<640x256xf32>, vector<128x256xf32> -> vector<128x256xf32>
    %47 = vector.extract_strided_slice %46 {offsets = [0, 0], sizes = [128, 128], strides = [1, 1]} : vector<128x256xf32> to vector<128x128xf32>
    %48 = vector.extract_strided_slice %46 {offsets = [0, 128], sizes = [128, 128], strides = [1, 1]} : vector<128x256xf32> to vector<128x128xf32>
    %49 = arith.maximumf %47, %48 : vector<128x128xf32>
    %c0_49 = arith.constant 0 : index
    %c0_50 = arith.constant 0 : index
    %50 = vector.load %arg5[%c0_49, %c0_50] : memref<1x128xf32, #tpu.memory_space<vmem>>, vector<1x128xf32>
    %51 = vector.broadcast %50 : vector<1x128xf32> to vector<128x128xf32>
    %52 = arith.addf %49, %51 : vector<128x128xf32>
    %cst_51 = arith.constant 0.000000e+00 : f32
    %53 = vector.broadcast %cst_51 : f32 to vector<128x128xf32>
    %54 = arith.maximumf %52, %53 : vector<128x128xf32>
    %c0_52 = arith.constant 0 : index
    %c0_53 = arith.constant 0 : index
    %55 = vector.load %arg16[%c0_52, %c0_53] : memref<128x128xf32, #tpu.memory_space<vmem>>, vector<128x128xf32>
    tpu.vector_store %arg16[%c0_52, %c0_53], %54 {strides = array<i32>} : memref<128x128xf32, #tpu.memory_space<vmem>>, vector<128x128xf32>,
    %cst_54 = arith.constant 0.000000e+00 : f32
    %56 = vector.broadcast %cst_54 : f32 to vector<8x128xf32>
    %c0_55 = arith.constant 0 : index
    %c0_56 = arith.constant 0 : index
    %57 = tpu.strided_load %arg16[%c0_55, %c0_56] {strides = array<i32: 16, 1>} : memref<128x128xf32, #tpu.memory_space<vmem>>, vector<8x128xf32>
    %c1_57 = arith.constant 1 : index
    %c0_58 = arith.constant 0 : index
    %58 = tpu.strided_load %arg16[%c1_57, %c0_58] {strides = array<i32: 16, 1>} : memref<128x128xf32, #tpu.memory_space<vmem>>, vector<8x128xf32>
    %59 = arith.maximumf %57, %58 : vector<8x128xf32>
    %c0_59 = arith.constant 0 : index
    %c0_60 = arith.constant 0 : index
    %c0_61 = arith.constant 0 : index
    %60 = vector.load %arg6[%c0_59, %c0_60, %c0_61] : memref<5x128x128xf32, #tpu.memory_space<vmem>>, vector<1x128x128xf32>
    %61 = vector.shape_cast %60 : vector<1x128x128xf32> to vector<128x128xf32>
    %cst_62 = arith.constant dense<0.000000e+00> : vector<8x128xf32>
    %62 = tpu.matmul %59, %61, %cst_62 {dimension_numbers = #tpu.dot_dimension_numbers<[1], [0], [0], [1], [0, 0, 1, 1], [], []>} : vector<8x128xf32>, vector<128x128xf32>, vector<8x128xf32> -> vector<8x128xf32>
    %63 = arith.addf %56, %62 : vector<8x128xf32>
    %c2_63 = arith.constant 2 : index
    %c0_64 = arith.constant 0 : index
    %64 = tpu.strided_load %arg16[%c2_63, %c0_64] {strides = array<i32: 16, 1>} : memref<128x128xf32, #tpu.memory_space<vmem>>, vector<8x128xf32>
    %c3_65 = arith.constant 3 : index
    %c0_66 = arith.constant 0 : index
    %65 = tpu.strided_load %arg16[%c3_65, %c0_66] {strides = array<i32: 16, 1>} : memref<128x128xf32, #tpu.memory_space<vmem>>, vector<8x128xf32>
    %66 = arith.maximumf %64, %65 : vector<8x128xf32>
    %c1_67 = arith.constant 1 : index
    %c0_68 = arith.constant 0 : index
    %c0_69 = arith.constant 0 : index
    %67 = vector.load %arg6[%c1_67, %c0_68, %c0_69] : memref<5x128x128xf32, #tpu.memory_space<vmem>>, vector<1x128x128xf32>
    %68 = vector.shape_cast %67 : vector<1x128x128xf32> to vector<128x128xf32>
    %cst_70 = arith.constant dense<0.000000e+00> : vector<8x128xf32>
    %69 = tpu.matmul %66, %68, %cst_70 {dimension_numbers = #tpu.dot_dimension_numbers<[1], [0], [0], [1], [0, 0, 1, 1], [], []>} : vector<8x128xf32>, vector<128x128xf32>, vector<8x128xf32> -> vector<8x128xf32>
    %70 = arith.addf %63, %69 : vector<8x128xf32>
    %c4_71 = arith.constant 4 : index
    %c0_72 = arith.constant 0 : index
    %71 = tpu.strided_load %arg16[%c4_71, %c0_72] {strides = array<i32: 16, 1>} : memref<128x128xf32, #tpu.memory_space<vmem>>, vector<8x128xf32>
    %c5_73 = arith.constant 5 : index
    %c0_74 = arith.constant 0 : index
    %72 = tpu.strided_load %arg16[%c5_73, %c0_74] {strides = array<i32: 16, 1>} : memref<128x128xf32, #tpu.memory_space<vmem>>, vector<8x128xf32>
    %73 = arith.maximumf %71, %72 : vector<8x128xf32>
    %c2_75 = arith.constant 2 : index
    %c0_76 = arith.constant 0 : index
    %c0_77 = arith.constant 0 : index
    %74 = vector.load %arg6[%c2_75, %c0_76, %c0_77] : memref<5x128x128xf32, #tpu.memory_space<vmem>>, vector<1x128x128xf32>
    %75 = vector.shape_cast %74 : vector<1x128x128xf32> to vector<128x128xf32>
    %cst_78 = arith.constant dense<0.000000e+00> : vector<8x128xf32>
    %76 = tpu.matmul %73, %75, %cst_78 {dimension_numbers = #tpu.dot_dimension_numbers<[1], [0], [0], [1], [0, 0, 1, 1], [], []>} : vector<8x128xf32>, vector<128x128xf32>, vector<8x128xf32> -> vector<8x128xf32>
    %77 = arith.addf %70, %76 : vector<8x128xf32>
    %c6_79 = arith.constant 6 : index
    %c0_80 = arith.constant 0 : index
    %78 = tpu.strided_load %arg16[%c6_79, %c0_80] {strides = array<i32: 16, 1>} : memref<128x128xf32, #tpu.memory_space<vmem>>, vector<8x128xf32>
    %c7_81 = arith.constant 7 : index
    %c0_82 = arith.constant 0 : index
    %79 = tpu.strided_load %arg16[%c7_81, %c0_82] {strides = array<i32: 16, 1>} : memref<128x128xf32, #tpu.memory_space<vmem>>, vector<8x128xf32>
    %80 = arith.maximumf %78, %79 : vector<8x128xf32>
    %c3_83 = arith.constant 3 : index
    %c0_84 = arith.constant 0 : index
    %c0_85 = arith.constant 0 : index
    %81 = vector.load %arg6[%c3_83, %c0_84, %c0_85] : memref<5x128x128xf32, #tpu.memory_space<vmem>>, vector<1x128x128xf32>
    %82 = vector.shape_cast %81 : vector<1x128x128xf32> to vector<128x128xf32>
    %cst_86 = arith.constant dense<0.000000e+00> : vector<8x128xf32>
    %83 = tpu.matmul %80, %82, %cst_86 {dimension_numbers = #tpu.dot_dimension_numbers<[1], [0], [0], [1], [0, 0, 1, 1], [], []>} : vector<8x128xf32>, vector<128x128xf32>, vector<8x128xf32> -> vector<8x128xf32>
    %84 = arith.addf %77, %83 : vector<8x128xf32>
    %c8_87 = arith.constant 8 : index
    %c0_88 = arith.constant 0 : index
    %85 = tpu.strided_load %arg16[%c8_87, %c0_88] {strides = array<i32: 16, 1>} : memref<128x128xf32, #tpu.memory_space<vmem>>, vector<8x128xf32>
    %c9_89 = arith.constant 9 : index
    %c0_90 = arith.constant 0 : index
    %86 = tpu.strided_load %arg16[%c9_89, %c0_90] {strides = array<i32: 16, 1>} : memref<128x128xf32, #tpu.memory_space<vmem>>, vector<8x128xf32>
    %87 = arith.maximumf %85, %86 : vector<8x128xf32>
    %c4_91 = arith.constant 4 : index
    %c0_92 = arith.constant 0 : index
    %c0_93 = arith.constant 0 : index
    %88 = vector.load %arg6[%c4_91, %c0_92, %c0_93] : memref<5x128x128xf32, #tpu.memory_space<vmem>>, vector<1x128x128xf32>
    %89 = vector.shape_cast %88 : vector<1x128x128xf32> to vector<128x128xf32>
    %cst_94 = arith.constant dense<0.000000e+00> : vector<8x128xf32>
    %90 = tpu.matmul %87, %89, %cst_94 {dimension_numbers = #tpu.dot_dimension_numbers<[1], [0], [0], [1], [0, 0, 1, 1], [], []>} : vector<8x128xf32>, vector<128x128xf32>, vector<8x128xf32> -> vector<8x128xf32>
    %91 = arith.addf %84, %90 : vector<8x128xf32>
    %c0_95 = arith.constant 0 : index
    %c0_96 = arith.constant 0 : index
    %92 = vector.load %arg7[%c0_95, %c0_96] : memref<1x128xf32, #tpu.memory_space<vmem>>, vector<1x128xf32>
    %93 = vector.broadcast %92 : vector<1x128xf32> to vector<8x128xf32>
    %94 = arith.addf %91, %93 : vector<8x128xf32>
    %cst_97 = arith.constant 0.000000e+00 : f32
    %95 = vector.broadcast %cst_97 : f32 to vector<8x128xf32>
    %96 = arith.maximumf %94, %95 : vector<8x128xf32>
    %c0_98 = arith.constant 0 : index
    %c0_99 = arith.constant 0 : index
    %97 = vector.load %arg8[%c0_98, %c0_99] : memref<128x128xf32, #tpu.memory_space<vmem>>, vector<128x128xf32>
    %cst_100 = arith.constant dense<0.000000e+00> : vector<8x128xf32>
    %98 = tpu.matmul %96, %97, %cst_100 {dimension_numbers = #tpu.dot_dimension_numbers<[1], [0], [0], [1], [0, 0, 1, 1], [], []>} : vector<8x128xf32>, vector<128x128xf32>, vector<8x128xf32> -> vector<8x128xf32>
    %c0_101 = arith.constant 0 : index
    %c0_102 = arith.constant 0 : index
    %99 = vector.load %arg9[%c0_101, %c0_102] : memref<1x128xf32, #tpu.memory_space<vmem>>, vector<1x128xf32>
    %100 = vector.broadcast %99 : vector<1x128xf32> to vector<8x128xf32>
    %101 = arith.addf %98, %100 : vector<8x128xf32>
    %cst_103 = arith.constant 0.000000e+00 : f32
    %102 = vector.broadcast %cst_103 : f32 to vector<8x128xf32>
    %103 = arith.maximumf %101, %102 : vector<8x128xf32>
    %c0_104 = arith.constant 0 : index
    %c0_105 = arith.constant 0 : index
    %104 = vector.load %arg10[%c0_104, %c0_105] : memref<128x128xf32, #tpu.memory_space<vmem>>, vector<128x128xf32>
    %cst_106 = arith.constant dense<0.000000e+00> : vector<8x128xf32>
    %105 = tpu.matmul %103, %104, %cst_106 {dimension_numbers = #tpu.dot_dimension_numbers<[1], [0], [0], [1], [0, 0, 1, 1], [], []>} : vector<8x128xf32>, vector<128x128xf32>, vector<8x128xf32> -> vector<8x128xf32>
    %c0_107 = arith.constant 0 : index
    %c0_108 = arith.constant 0 : index
    %106 = vector.load %arg11[%c0_107, %c0_108] : memref<1x128xf32, #tpu.memory_space<vmem>>, vector<1x128xf32>
    %107 = vector.broadcast %106 : vector<1x128xf32> to vector<8x128xf32>
    %108 = arith.addf %105, %107 : vector<8x128xf32>
    %c0_109 = arith.constant 0 : index
    %c0_110 = arith.constant 0 : index
    %109 = vector.load %arg12[%c0_109, %c0_110] : memref<8x128xf32, #tpu.memory_space<vmem>>, vector<8x128xf32>
    tpu.vector_store %arg12[%c0_109, %c0_110], %108 {strides = array<i32>} : memref<8x128xf32, #tpu.memory_space<vmem>>, vector<8x128xf32>,
    return
  }
  func.func @transform_0(%arg0: i32) -> (i32, i32) {
    %c0_i32 = arith.constant 0 : i32
    %c0_i32_0 = arith.constant 0 : i32
    return %arg0, %c0_i32 : i32, i32
  }
  func.func @transform_1(%arg0: i32) -> (i32, i32) {
    %c0_i32 = arith.constant 0 : i32
    %c0_i32_0 = arith.constant 0 : i32
    %c0_i32_1 = arith.constant 0 : i32
    return %c0_i32, %c0_i32_0 : i32, i32
  }
  func.func @transform_2(%arg0: i32) -> (i32, i32) {
    %c0_i32 = arith.constant 0 : i32
    %c0_i32_0 = arith.constant 0 : i32
    %c0_i32_1 = arith.constant 0 : i32
    return %c0_i32, %c0_i32_0 : i32, i32
  }
  func.func @transform_3(%arg0: i32) -> (i32, i32) {
    %c0_i32 = arith.constant 0 : i32
    %c0_i32_0 = arith.constant 0 : i32
    %c0_i32_1 = arith.constant 0 : i32
    return %c0_i32, %c0_i32_0 : i32, i32
  }
  func.func @transform_4(%arg0: i32) -> (i32, i32) {
    %c0_i32 = arith.constant 0 : i32
    %c0_i32_0 = arith.constant 0 : i32
    %c0_i32_1 = arith.constant 0 : i32
    return %c0_i32, %c0_i32_0 : i32, i32
  }
  func.func @transform_5(%arg0: i32) -> (i32, i32, i32) {
    %c0_i32 = arith.constant 0 : i32
    %c0_i32_0 = arith.constant 0 : i32
    %c0_i32_1 = arith.constant 0 : i32
    %c0_i32_2 = arith.constant 0 : i32
    return %c0_i32, %c0_i32_0, %c0_i32_1 : i32, i32, i32
  }
  func.func @transform_6(%arg0: i32) -> (i32, i32) {
    %c0_i32 = arith.constant 0 : i32
    %c0_i32_0 = arith.constant 0 : i32
    %c0_i32_1 = arith.constant 0 : i32
    return %c0_i32, %c0_i32_0 : i32, i32
  }
  func.func @transform_7(%arg0: i32) -> (i32, i32) {
    %c0_i32 = arith.constant 0 : i32
    %c0_i32_0 = arith.constant 0 : i32
    %c0_i32_1 = arith.constant 0 : i32
    return %c0_i32, %c0_i32_0 : i32, i32
  }
  func.func @transform_8(%arg0: i32) -> (i32, i32) {
    %c0_i32 = arith.constant 0 : i32
    %c0_i32_0 = arith.constant 0 : i32
    %c0_i32_1 = arith.constant 0 : i32
    return %c0_i32, %c0_i32_0 : i32, i32
  }
  func.func @transform_9(%arg0: i32) -> (i32, i32) {
    %c0_i32 = arith.constant 0 : i32
    %c0_i32_0 = arith.constant 0 : i32
    %c0_i32_1 = arith.constant 0 : i32
    return %c0_i32, %c0_i32_0 : i32, i32
  }
  func.func @transform_10(%arg0: i32) -> (i32, i32) {
    %c0_i32 = arith.constant 0 : i32
    %c0_i32_0 = arith.constant 0 : i32
    %c0_i32_1 = arith.constant 0 : i32
    return %c0_i32, %c0_i32_0 : i32, i32
  }
  func.func @transform_11(%arg0: i32) -> (i32, i32) {
    %c0_i32 = arith.constant 0 : i32
    %c0_i32_0 = arith.constant 0 : i32
    return %arg0, %c0_i32 : i32, i32
  }
}

</mosaic_0001>

<bundles_post_ra>
// kernel: lenet_forward.1
= control target key start
LH: loop header
LB: loop body
LE: loop exit
PB: predicated region body
PF: predicated region fallthrough
CT: control target
= control target key end

     0   :  { %16 = vsyncpa [#allocation7], 0  ;;  %s5590_s0 = inlined_call_operand.vmem [shape: f32[256,32], index: 0, kind: input, shape index: {}]   ;;  %s5591_s1 = inlined_call_operand.vmem [shape: f32[160,256], index: 1, kind: input, shape index: {}]   ;;  %s5592_s2 = inlined_call_operand.vmem [shape: f32[1,128], index: 2, kind: input, shape index: {}]   ;;  %s5593_s3 = inlined_call_operand.hbm [shape: f32[640,256], index: 3, kind: input, shape index: {}]   ;;  %s5594_s4 = inlined_call_operand.vmem [shape: f32[1,128], index: 4, kind: input, shape index: {}]   ;;  %s5595_s5 = inlined_call_operand.hbm [shape: f32[5,128,128], index: 5, kind: input, shape index: {}]   ;;  %s5596_s6 = inlined_call_operand.vmem [shape: f32[1,128], index: 6, kind: input, shape index: {}]   ;;  %s5597_s7 = inlined_call_operand.vmem [shape: f32[128,128], index: 7, kind: input, shape index: {}]   ;;  %s5598_s8 = inlined_call_operand.hbm [shape: f32[1,128], index: 8, kind: input, shape index: {}]   ;;  %s5599_s9 = inlined_call_operand.vmem [shape: f32[128,128], index: 9, kind: input, shape index: {}]   ;;  %s5600_s10 = inlined_call_operand.hbm [shape: f32[1,128], index: 10, kind: input, shape index: {}]   ;;  %s5601_s11 = inlined_call_operand.vmem [shape: f32[8,128], index: 11, kind: output, shape index: {}]  }
   0x1   :  { %17 = vsyncpa [#allocation9], 0 }
   0x2   :  { %18 = vsyncpa [#allocation12], 0  ;;  %s4335_s17 = smov [#allocation8]   ;;  %s4241_s21 = scalar_lea.hbm %s5595_s5, 10240 }
   0x3   :  { %s44_s18 = sshll.u32 %s4335_s17, 4  ;;  %p4242_p0 = scmp.ne.s32.totalorder %s5595_s5, %s4241_s21  ;;  %s45_s18 = int_to_ptr.vmem [resolvable:$true] %s44_s18 }
   0x4   :  { %p4245_p1 = scmp.lt.u32.totalorder %s4241_s21, %s5595_s5 }
   0x6   :  { %p4247_p2 = pnand %p4245_p1, %p4242_p0 }
   0x8   :  { %4250 = shalt.err (!%p4247_p2)
}
   0x9   :  { %s4251_s26 = scalar_lea.vmem %s45_s18, 10240  ;;  %p4256_p4 = scmp.lt.s32.totalorder %s45_s18, %s45_s18 }
   0xa   :  { %p4252_p3 = scmp.ne.s32.totalorder %s45_s18, %s4251_s26  ;;  %p4257_p5 = scmp.lt.s32.totalorder %s4251_s26, %s4251_s26 }
   0xc   :  { %p4258_p6 = por %p4257_p5, %p4256_p4 }
   0xe   :  { %p4259_p7 = pnand %p4258_p6, %p4252_p3 }
  0x10   :  { %4262 = shalt.err (!%p4259_p7)
}
  0x11   :  { %s4336_s27 = smov 128   ;;  %s4337_s28 = smov 8  }
  0x12   :  { %50 = dma.hbm_to_vmem [thread:$0]  %s5595_s5, 10240, %s45_s18, [#allocation9], %s4336_s27, %s4336_s27, %s4337_s28  }
  0x13   :  { %s4338_s12 = smov [#allocation6]   ;;  %s4263_s16 = scalar_lea.hbm %s5593_s3, 20480 }
  0x14   :  { %s30_s13 = sshll.u32 %s4338_s12, 4  ;;  %p4264_p8 = scmp.ne.s32.totalorder %s5593_s3, %s4263_s16  ;;  %s31_s13 = int_to_ptr.vmem [resolvable:$true] %s30_s13 }
  0x15   :  { %p4267_p9 = scmp.lt.u32.totalorder %s4263_s16, %s5593_s3 }
  0x17   :  { %p4269_p10 = pnand %p4267_p9, %p4264_p8 }
  0x19   :  { %4272 = shalt.err (!%p4269_p10)
}
  0x1a   :  { %s4273_s22 = scalar_lea.vmem %s31_s13, 20480  ;;  %p4278_p12 = scmp.lt.s32.totalorder %s31_s13, %s31_s13 }
  0x1b   :  { %p4274_p11 = scmp.ne.s32.totalorder %s31_s13, %s4273_s22  ;;  %p4279_p13 = scmp.lt.s32.totalorder %s4273_s22, %s4273_s22 }
  0x1d   :  { %p4280_p0 = por %p4279_p13, %p4278_p12 }
  0x1f   :  { %p4281_p1 = pnand %p4280_p0, %p4274_p11 }
  0x21   :  { %4284 = shalt.err (!%p4281_p1)
}
  0x22   :  { %s4339_s5 = smov 256   ;;  %s4340_s18 = smov 16  }
  0x23   :  { %36 = dma.hbm_to_vmem [thread:$0]  %s5593_s3, 20480, %s31_s13, [#allocation7], %s4339_s5, %s4339_s5, %s4340_s18  }
  0x24   :  { %s4341_s25 = smov [#allocation10]   ;;  %s4342_s27 = smov [#allocation11]  }
  0x25   :  { %s61_s26 = sshll.u32 %s4341_s25, 4  ;;  %s73_s28 = sshll.u32 %s4342_s27, 4  ;;  %s62_s26 = int_to_ptr.vmem [resolvable:$true] %s61_s26  ;;  %s74_s28 = int_to_ptr.vmem [resolvable:$true] %s73_s28 }
  0x26   :  { %s4285_s12 = scalar_lea.hbm %s5598_s8, 16 }
  0x27   :  { %p4286_p2 = scmp.ne.s32.totalorder %s5598_s8, %s4285_s12  ;;  %p4289_p3 = scmp.lt.u32.totalorder %s4285_s12, %s5598_s8 }
  0x29   :  { %p4291_p4 = pnand %p4289_p3, %p4286_p2 }
  0x2b   :  { %4294 = shalt.err (!%p4291_p4)
}
  0x2c   :  { %s4295_s3 = scalar_lea.vmem %s62_s26, 16  ;;  %s4299_s13 = scalar_lea.vmem %s62_s26, 32 }
  0x2d   :  { %p4296_p5 = scmp.ne.s32.totalorder %s62_s26, %s4295_s3  ;;  %p4300_p6 = scmp.lt.s32.totalorder %s62_s26, %s62_s26 }
  0x2e   :  { %p4301_p7 = scmp.lt.s32.totalorder %s4299_s13, %s4295_s3 }
  0x30   :  { %p4302_p8 = por %p4301_p7, %p4300_p6 }
  0x32   :  { %p4303_p9 = pnand %p4302_p8, %p4296_p5 }
  0x34   :  { %4306 = shalt.err (!%p4303_p9)
}
  0x35   :  { %64 = dma.hbm_to_vmem [thread:$0]  %s5598_s8, 16, %s62_s26, [#allocation9]  }
  0x36   :  { %s4307_s5 = scalar_lea.hbm %s5600_s10, 16 }
  0x37   :  { %p4308_p10 = scmp.ne.s32.totalorder %s5600_s10, %s4307_s5  ;;  %p4311_p11 = scmp.lt.u32.totalorder %s4307_s5, %s5600_s10 }
  0x39   :  { %p4313_p12 = pnand %p4311_p11, %p4308_p10 }
  0x3b   :  { %4316 = shalt.err (!%p4313_p12)
}
  0x3c   :  { %s4317_s27 = scalar_lea.vmem %s74_s28, 16  ;;  %s4321_s29 = scalar_lea.vmem %s74_s28, 32 }
  0x3d   :  { %p4318_p13 = scmp.ne.s32.totalorder %s74_s28, %s4317_s27  ;;  %p4322_p0 = scmp.lt.s32.totalorder %s74_s28, %s74_s28 }
  0x3e   :  { %p4323_p1 = scmp.lt.s32.totalorder %s4321_s29, %s4317_s27 }
  0x40   :  { %p4324_p2 = por %p4323_p1, %p4322_p0 }
  0x42   :  { %p4325_p3 = pnand %p4324_p2, %p4318_p13 }
  0x44   :  { %4328 = shalt.err (!%p4325_p3)
}
  0x45   :  { %76 = dma.hbm_to_vmem [thread:$0]  %s5600_s10, 16, %s74_s28, [#allocation12]  }
  0x46   :  { %4329 = dma.done.wait [#allocation7], 20480  }
  0x47   :  { %4330 = vsyncadd [#allocation7], 4294946816 }
  0x48   :  { %4331 = dma.done.wait [#allocation9], 10256  }
  0x49   :  { %4332 = vsyncadd [#allocation9], 4294957040 }
  0x4a   :  { %4333 = dma.done.wait [#allocation12], 16  }
  0x4b   :  { %4334 = vsyncadd [#allocation12], 4294967280  ;;  %v155_v0 = vld [vmem:[%s5590_s0 + $0x1] sm:$0xff]  ;;  %s4343_s16 = smov 32   ;;  %s4344_s17 = smov 96   ;;  %v156_v3 = vld [vmem:[%s5590_s0 + $0x9] sm:$0xff] }
  0x4c   :  { %v543_v1 = vld [vmem:[%s5590_s0 + $0x3] sm:$0xff]  ;;  %219 = vrot.lane.b32.xlu0 %v155_v0, %s4343_s16  ;;  %s4345_s19 = smov 64   ;;  %v544_v5 = vld [vmem:[%s5590_s0 + $0xb] sm:$0xff]  ;;  %v545_v8 = vld [vmem:[%s5590_s0 + $0x13] sm:$0xff]  ;;  %vm121_vm0 = vcmask 261120   ;;  %vm315_vm1 = vcmask 523520  }
  0x4d   :  { %607 = vrot.lane.b32.xlu1 %v543_v1, %s4344_s17  ;;  %v349_v2 = vld [vmem:[%s5590_s0 + $0x2] sm:$0xff]  ;;  %v350_v4 = vld [vmem:[%s5590_s0 + $0xa] sm:$0xff]  ;;  %v351_v7 = vld [vmem:[%s5590_s0 + $0x12] sm:$0xff]  ;;  %vm509_vm2 = vcmask 785920   ;;  %vm703_vm3 = vcmask 1048320   ;;  %vm153_vm4 = vcmask 257024  }
  0x4e   :  { %v157_v6 = vld [vmem:[%s5590_s0 + $0x11] sm:$0xff]  ;;  %v158_v9 = vld [vmem:[%s5590_s0 + $0x19] sm:$0xff]  ;;  %v866_v11 = vld [vmem:[%s5591_s1 + $0x8] sm:$0xff]  ;;  %vm347_vm5 = vcmask 519424   ;;  %vm541_vm6 = vcmask 781824   ;;  %vm735_vm7 = vcmask 1044224  }
  0x4f   :  { %v352_v10 = vld [vmem:[%s5590_s0 + $0x1a] sm:$0xff]  ;;  %v867_v15 = vld [vmem:[%s5591_s1 + $0x10] sm:$0xff]  ;;  %v870_v18 = vld [vmem:[%s5591_s1 + $0x28] sm:$0xff]  ;;  %vm4348_vm8 = vmmov 0  }
  0x50   :  { %413 = vrot.lane.b32.xlu0 %v349_v2, %s4345_s19  ;;  %v868_v12 = vld [vmem:[%s5591_s1 + $0x18] sm:$0xff]  ;;  %v865_v14 = vld [vmem:[%s5591_s1] sm:$0xff]  ;;  %v871_v22 = vld [vmem:[%s5591_s1 + $0x30] sm:$0xff] }
  0x51   :  { %221 = vrot.lane.b32.xlu1 %v156_v3, %s4343_s16  ;;  %v3794_v13 = vpack.c.bf16 %v868_v12, %v866_v11  ;;  %v546_v16 = vld [vmem:[%s5590_s0 + $0x1b] sm:$0xff]  ;;  %v3796_v17 = vpack.c.bf16 %v867_v15, %v865_v14  ;;  %v874_v24 = vld [vmem:[%s5591_s1 + $0x48] sm:$0xff]  ;;  %v875_v30 = vld [vmem:[%s5591_s1 + $0x50] sm:$0xff] }
  0x52   :  { %v872_v19 = vld [vmem:[%s5591_s1 + $0x38] sm:$0xff]  ;;  %v869_v21 = vld [vmem:[%s5591_s1 + $0x20] sm:$0xff]  ;;  %v878_v31 = vld [vmem:[%s5591_s1 + $0x68] sm:$0xff] }
  0x53   :  { %3795 = vmatprep.subr.bf16.mxu0 %v3794_v13  ;;  %v3798_v20 = vpack.c.bf16 %v872_v19, %v870_v18  ;;  %v3800_v23 = vpack.c.bf16 %v871_v22, %v869_v21  ;;  %v876_v25 = vld [vmem:[%s5591_s1 + $0x58] sm:$0xff]  ;;  %v873_v26 = vld [vmem:[%s5591_s1 + $0x40] sm:$0xff]  ;;  %v879_v35 = vld [vmem:[%s5591_s1 + $0x70] sm:$0xff] }
  0x54   :  { %415 = vrot.lane.b32.xlu0 %v350_v4, %s4345_s19  ;;  %3797 = vmatpush1.bf16.msra.mxu0 %v3796_v17  ;;  %v159_v27 = vld [vmem:[%s5590_s0 + $0x21] sm:$0xff]  ;;  %v3802_v29 = vpack.c.bf16 %v876_v25, %v874_v24  ;;  %v880_v32 = vld [vmem:[%s5591_s1 + $0x78] sm:$0xff]  ;;  %v3804_v33 = vpack.c.bf16 %v875_v30, %v873_v26  ;;  %v160_v37 = vld [vmem:[%s5590_s0 + $0x29] sm:$0xff] }
  0x55   :  { %609 = vrot.lane.b32.xlu1 %v544_v5, %s4344_s17  ;;  %v353_v28 = vld [vmem:[%s5590_s0 + $0x22] sm:$0xff]  ;;  %3799 = vmatprep.subr.bf16.mxu0 %v3798_v20  ;;  %v3806_v38 = vpack.c.bf16 %v880_v32, %v878_v31  ;;  %v884_v40 = vld [vmem:[%s5591_s1 + $0x98] sm:$0xff]  ;;  %v883_v43 = vld [vmem:[%s5591_s1 + $0x90] sm:$0xff] }
  0x56   :  { %v877_v34 = vld [vmem:[%s5591_s1 + $0x60] sm:$0xff]  ;;  %v882_v39 = vld [vmem:[%s5591_s1 + $0x88] sm:$0xff]  ;;  %v888_v48 = vld [vmem:[%s5591_s1 + $0xb8] sm:$0xff] }
  0x57   :  { %v547_v36 = vld [vmem:[%s5590_s0 + $0x23] sm:$0xff]  ;;  %v3808_v41 = vpack.c.bf16 %v879_v35, %v877_v34  ;;  %v548_v45 = vld [vmem:[%s5590_s0 + $0x2b] sm:$0xff]  ;;  %v3810_v46 = vpack.c.bf16 %v884_v40, %v882_v39  ;;  %v892_v58 = vld [vmem:[%s5591_s1 + $0xd8] sm:$0xff] }
  0x58   :  { %223 = vrot.lane.b32.xlu0 %v157_v6, %s4343_s16  ;;  %3801 = vmatpush1.bf16.msra.mxu0 %v3800_v23  ;;  %v881_v42 = vld [vmem:[%s5591_s1 + $0x80] sm:$0xff]  ;;  %v354_v44 = vld [vmem:[%s5590_s0 + $0x2a] sm:$0xff]  ;;  %v355_v54 = vld [vmem:[%s5590_s0 + $0x32] sm:$0xff] }
  0x59   :  { %417 = vrot.lane.b32.xlu1 %v351_v7, %s4345_s19  ;;  %3803 = vmatprep.subr.bf16.mxu0 %v3802_v29  ;;  %v886_v47 = vld [vmem:[%s5591_s1 + $0xa8] sm:$0xff]  ;;  %v89_v49 = vld [vmem:[%s5590_s0] sm:$0xff]  ;;  %v3812_v50 = vpack.c.bf16 %v883_v43, %v881_v42  ;;  %v887_v52 = vld [vmem:[%s5591_s1 + $0xb0] sm:$0xff] }
  0x5a   :  { %122 = vst.msk [vmem:[#allocation2] sm:$0xff] %vm121_vm0, %v89_v49  ;;  %v885_v51 = vld [vmem:[%s5591_s1 + $0xa0] sm:$0xff]  ;;  %v161_v53 = vld [vmem:[%s5590_s0 + $0x31] sm:$0xff]  ;;  %v3814_v55 = vpack.c.bf16 %v888_v48, %v886_v47  ;;  %v90_v56 = vld [vmem:[%s5590_s0 + $0x8] sm:$0xff] }
  0x5b   :  { %v890_v57 = vld [vmem:[%s5591_s1 + $0xc8] sm:$0xff]  ;;  %123 = vst.msk [vmem:[#allocation2 + $0x10] sm:$0xff] %vm121_vm0, %v90_v56  ;;  %v3816_v59 = vpack.c.bf16 %v887_v52, %v885_v51  ;;  %v889_v60 = vld [vmem:[%s5591_s1 + $0xc0] sm:$0xff]  ;;  %v891_v61 = vld [vmem:[%s5591_s1 + $0xd0] sm:$0xff] }
  0x5c   :  { %611 = vrot.lane.b32.xlu0 %v545_v8, %s4344_s17  ;;  %3805 = vmatpush1.bf16.msra.mxu0 %v3804_v33  ;;  %v549_v62 = vld [vmem:[%s5590_s0 + $0x33] sm:$0xff]  ;;  %v3818_v0 = vpack.c.bf16 %v892_v58, %v890_v57  ;;  %v894_v2 = vld [vmem:[%s5591_s1 + $0xe8] sm:$0xff]  ;;  %v3820_v6 = vpack.c.bf16 %v891_v61, %v889_v60  ;;  %v550_v11 = vld [vmem:[%s5590_s0 + $0x3b] sm:$0xff] }
  0x5d   :  { %225 = vrot.lane.b32.xlu1 %v158_v9, %s4343_s16  ;;  %3807 = vmatprep.subr.bf16.mxu0 %v3806_v38  ;;  %v162_v63 = vld [vmem:[%s5590_s0 + $0x39] sm:$0xff]  ;;  %v91_v1 = vld [vmem:[%s5590_s0 + $0x10] sm:$0xff]  ;;  %v737_v4 = vld [vmem:[%s5590_s0 + $0x4] sm:$0xff] }
  0x5e   :  { %v896_v3 = vld [vmem:[%s5591_s1 + $0xf8] sm:$0xff]  ;;  %124 = vst.msk [vmem:[#allocation2 + $0x20] sm:$0xff] %vm121_vm0, %v91_v1  ;;  %769 = vst.msk [vmem:[#allocation2 + $0x8] sm:$0xff] %vm121_vm0, %v737_v4  ;;  %v738_v8 = vld [vmem:[%s5590_s0 + $0xc] sm:$0xff] }
  0x5f   :  { %v356_v5 = vld [vmem:[%s5590_s0 + $0x3a] sm:$0xff]  ;;  %770 = vst.msk [vmem:[#allocation2 + $0x18] sm:$0xff] %vm121_vm0, %v738_v8  ;;  %v3822_v12 = vpack.c.bf16 %v896_v3, %v894_v2  ;;  %v898_v15 = vld [vmem:[%s5591_s1 + $0x108] sm:$0xff]  ;;  %v899_v23 = vld [vmem:[%s5591_s1 + $0x110] sm:$0xff] }
  0x60   :  { %419 = vrot.lane.b32.xlu0 %v352_v10, %s4345_s19  ;;  %3809 = vmatpush1.bf16.msra.mxu0 %v3808_v41  ;;  %v92_v7 = vld [vmem:[%s5590_s0 + $0x18] sm:$0xff]  ;;  %v893_v9 = vld [vmem:[%s5591_s1 + $0xe0] sm:$0xff]  ;;  %v895_v10 = vld [vmem:[%s5591_s1 + $0xf0] sm:$0xff] }
  0x61   :  { %613 = vrot.lane.b32.xlu1 %v546_v16, %s4344_s17  ;;  %3811 = vmatprep.subr.bf16.mxu0 %v3810_v46  ;;  %125 = vst.msk [vmem:[#allocation2 + $0x30] sm:$0xff] %vm121_vm0, %v92_v7  ;;  %v93_v13 = vld [vmem:[%s5590_s0 + $0x20] sm:$0xff]  ;;  %v739_v14 = vld [vmem:[%s5590_s0 + $0x14] sm:$0xff]  ;;  %v94_v17 = vld [vmem:[%s5590_s0 + $0x28] sm:$0xff]  ;;  %v3824_v20 = vpack.c.bf16 %v895_v10, %v893_v9 }
  0x62   :  { %v900_v16 = vld [vmem:[%s5591_s1 + $0x118] sm:$0xff]  ;;  %126 = vst.msk [vmem:[#allocation2 + $0x40] sm:$0xff] %vm121_vm0, %v93_v13  ;;  %771 = vst.msk [vmem:[#allocation2 + $0x28] sm:$0xff] %vm121_vm0, %v739_v14  ;;  %v163_v18 = vld [vmem:[%s5590_s0 + $0x41] sm:$0xff] }
  0x63   :  { %v357_v19 = vld [vmem:[%s5590_s0 + $0x42] sm:$0xff]  ;;  %127 = vst.msk [vmem:[#allocation2 + $0x50] sm:$0xff] %vm121_vm0, %v94_v17  ;;  %v3826_v24 = vpack.c.bf16 %v900_v16, %v898_v15  ;;  %v95_v26 = vld [vmem:[%s5590_s0 + $0x30] sm:$0xff]  ;;  %v96_v30 = vld [vmem:[%s5590_s0 + $0x38] sm:$0xff] }
  0x64   :  { %227 = vrot.lane.b32.xlu0 %v159_v27, %s4343_s16  ;;  %3813 = vmatpush1.bf16.msra.mxu0 %v3812_v50  ;;  %v740_v21 = vld [vmem:[%s5590_s0 + $0x1c] sm:$0xff]  ;;  %v902_v25 = vld [vmem:[%s5591_s1 + $0x128] sm:$0xff]  ;;  %128 = vst.msk [vmem:[#allocation2 + $0x60] sm:$0xff] %vm121_vm0, %v95_v26  ;;  %129 = vst.msk [vmem:[#allocation2 + $0x70] sm:$0xff] %vm121_vm0, %v96_v30 }
  0x65   :  { %421 = vrot.lane.b32.xlu1 %v353_v28, %s4345_s19  ;;  %3815 = vmatprep.subr.bf16.mxu0 %v3814_v55  ;;  %v897_v22 = vld [vmem:[%s5591_s1 + $0x100] sm:$0xff]  ;;  %772 = vst.msk [vmem:[#allocation2 + $0x38] sm:$0xff] %vm121_vm0, %v740_v21  ;;  %v904_v28 = vld [vmem:[%s5591_s1 + $0x138] sm:$0xff]  ;;  %v802_v29 = vld [vmem:[#allocation2 + $0x8] sm:$0xff] }
  0x66   :  { %v741_v27 = vld [vmem:[%s5590_s0 + $0x24] sm:$0xff]  ;;  %v3828_v31 = vpack.c.bf16 %v899_v23, %v897_v22  ;;  %3393 = vmatprep.mubr.msk.f32.mxu0 %vm121_vm0, %v802_v29  ;;  %v742_v32 = vld [vmem:[%s5590_s0 + $0x2c] sm:$0xff]  ;;  %v743_v39 = vld [vmem:[%s5590_s0 + $0x34] sm:$0xff] }
  0x67   :  { %773 = vst.msk [vmem:[#allocation2 + $0x48] sm:$0xff] %vm121_vm0, %v741_v27  ;;  %v901_v33 = vld [vmem:[%s5591_s1 + $0x120] sm:$0xff]  ;;  %v903_v34 = vld [vmem:[%s5591_s1 + $0x130] sm:$0xff]  ;;  %774 = vst.msk [vmem:[#allocation2 + $0x58] sm:$0xff] %vm121_vm0, %v742_v32 }
  0x68   :  { %615 = vrot.lane.b32.xlu0 %v547_v36, %s4344_s17  ;;  %3817 = vmatpush1.bf16.msra.mxu0 %v3816_v59  ;;  %v551_v35 = vld [vmem:[%s5590_s0 + $0x43] sm:$0xff]  ;;  %v3832_v40 = vpack.c.bf16 %v903_v34, %v901_v33  ;;  %775 = vst.msk [vmem:[#allocation2 + $0x68] sm:$0xff] %vm121_vm0, %v743_v39  ;;  %v100_v47 = vld [vmem:[%s5590_s0 + $0x58] sm:$0xff]  ;;  %v746_v48 = vld [vmem:[%s5590_s0 + $0x4c] sm:$0xff] }
  0x69   :  { %229 = vrot.lane.b32.xlu1 %v160_v37, %s4343_s16  ;;  %3819 = vmatprep.subr.bf16.mxu0 %v3818_v0  ;;  %v164_v36 = vld [vmem:[%s5590_s0 + $0x49] sm:$0xff]  ;;  %v3830_v37 = vpack.c.bf16 %v904_v28, %v902_v25  ;;  %v97_v38 = vld [vmem:[%s5590_s0 + $0x40] sm:$0xff]  ;;  %133 = vst.msk [vmem:[#allocation2 + $0xb0] sm:$0xff] %vm121_vm0, %v100_v47  ;;  %v165_v49 = vld [vmem:[%s5590_s0 + $0x51] sm:$0xff] }
  0x6a   :  { %130 = vst.msk [vmem:[#allocation2 + $0x80] sm:$0xff] %vm121_vm0, %v97_v38  ;;  %v98_v41 = vld [vmem:[%s5590_s0 + $0x48] sm:$0xff]  ;;  %v744_v42 = vld [vmem:[%s5590_s0 + $0x3c] sm:$0xff]  ;;  %v359_v50 = vld [vmem:[%s5590_s0 + $0x52] sm:$0xff] }
  0x6b   :  { %131 = vst.msk [vmem:[#allocation2 + $0x90] sm:$0xff] %vm121_vm0, %v98_v41  ;;  %776 = vst.msk [vmem:[#allocation2 + $0x78] sm:$0xff] %vm121_vm0, %v744_v42  ;;  %v358_v43 = vld [vmem:[%s5590_s0 + $0x4a] sm:$0xff]  ;;  %v101_v51 = vld [vmem:[%s5590_s0 + $0x60] sm:$0xff] }
  0x6c   :  { %423 = vrot.lane.b32.xlu0 %v354_v44, %s4345_s19  ;;  %3821 = vmatpush1.bf16.msra.mxu0 %v3820_v6  ;;  %v552_v44 = vld [vmem:[%s5590_s0 + $0x4b] sm:$0xff]  ;;  %778 = vst.msk [vmem:[#allocation2 + $0x98] sm:$0xff] %vm121_vm0, %v746_v48  ;;  %v747_v52 = vld [vmem:[%s5590_s0 + $0x54] sm:$0xff]  ;;  %134 = vst.msk [vmem:[#allocation2 + $0xc0] sm:$0xff] %vm121_vm0, %v101_v51 }
  0x6d   :  { %617 = vrot.lane.b32.xlu1 %v548_v45, %s4344_s17  ;;  %3823 = vmatprep.subr.bf16.mxu0 %v3822_v12  ;;  %v99_v45 = vld [vmem:[%s5590_s0 + $0x50] sm:$0xff]  ;;  %v745_v46 = vld [vmem:[%s5590_s0 + $0x44] sm:$0xff]  ;;  %779 = vst.msk [vmem:[#allocation2 + $0xa8] sm:$0xff] %vm121_vm0, %v747_v52  ;;  %v166_v55 = vld [vmem:[%s5590_s0 + $0x59] sm:$0xff] }
  0x6e   :  { %132 = vst.msk [vmem:[#allocation2 + $0xa0] sm:$0xff] %vm121_vm0, %v99_v45  ;;  %777 = vst.msk [vmem:[#allocation2 + $0x88] sm:$0xff] %vm121_vm0, %v745_v46  ;;  %v749_v56 = vld [vmem:[%s5590_s0 + $0x64] sm:$0xff]  ;;  %v360_v58 = vld [vmem:[%s5590_s0 + $0x5a] sm:$0xff] }
  0x6f   :  { %v102_v57 = vld [vmem:[%s5590_s0 + $0x68] sm:$0xff]  ;;  %781 = vst.msk [vmem:[#allocation2 + $0xc8] sm:$0xff] %vm121_vm0, %v749_v56  ;;  %v554_v59 = vld [vmem:[%s5590_s0 + $0x5b] sm:$0xff]  ;;  %v169_v7 = vld [vmem:[%s5590_s0 + $0x71] sm:$0xff] }
  0x70   :  { %231 = vrot.lane.b32.xlu0 %v161_v53, %s4343_s16  ;;  %3825 = vmatpush1.bf16.msra.mxu0 %v3824_v20  ;;  %v748_v53 = vld [vmem:[%s5590_s0 + $0x5c] sm:$0xff]  ;;  %135 = vst.msk [vmem:[#allocation2 + $0xd0] sm:$0xff] %vm121_vm0, %v102_v57  ;;  %v750_v60 = vld [vmem:[%s5590_s0 + $0x6c] sm:$0xff]  ;;  %v751_v2 = vld [vmem:[%s5590_s0 + $0x74] sm:$0xff] }
  0x71   :  { %425 = vrot.lane.b32.xlu1 %v355_v54, %s4345_s19  ;;  %3827 = vmatprep.subr.bf16.mxu0 %v3826_v24  ;;  %780 = vst.msk [vmem:[#allocation2 + $0xb8] sm:$0xff] %vm121_vm0, %v748_v53  ;;  %v553_v54 = vld [vmem:[%s5590_s0 + $0x53] sm:$0xff]  ;;  %782 = vst.msk [vmem:[#allocation2 + $0xd8] sm:$0xff] %vm121_vm0, %v750_v60  ;;  %v167_v61 = vld [vmem:[%s5590_s0 + $0x61] sm:$0xff] }
  0x72   :  { %v555_v0 = vld [vmem:[%s5590_s0 + $0x63] sm:$0xff]  ;;  %v104_v3 = vld [vmem:[%s5590_s0 + $0x78] sm:$0xff]  ;;  %783 = vst.msk [vmem:[#allocation2 + $0xe8] sm:$0xff] %vm121_vm0, %v751_v2  ;;  %v754_v16 = vld [vmem:[%s5590_s0 + $0x8c] sm:$0xff] }
  0x73   :  { %v168_v1 = vld [vmem:[%s5590_s0 + $0x69] sm:$0xff]  ;;  %137 = vst.msk [vmem:[#allocation2 + $0xf0] sm:$0xff] %vm121_vm0, %v104_v3  ;;  %v752_v6 = vld [vmem:[%s5590_s0 + $0x7c] sm:$0xff]  ;;  %v363_v8 = vld [vmem:[%s5590_s0 + $0x72] sm:$0xff] }
  0x74   :  { %619 = vrot.lane.b32.xlu0 %v549_v62, %s4344_s17  ;;  %3829 = vmatpush1.bf16.msra.mxu0 %v3828_v31  ;;  %v361_v62 = vld [vmem:[%s5590_s0 + $0x62] sm:$0xff]  ;;  %v362_v4 = vld [vmem:[%s5590_s0 + $0x6a] sm:$0xff]  ;;  %784 = vst.msk [vmem:[#allocation2 + $0xf8] sm:$0xff] %vm121_vm0, %v752_v6  ;;  %v557_v10 = vld [vmem:[%s5590_s0 + $0x73] sm:$0xff] }
  0x75   :  { %233 = vrot.lane.b32.xlu1 %v162_v63, %s4343_s16  ;;  %3831 = vmatprep.subr.bf16.mxu0 %v3830_v37  ;;  %v103_v63 = vld [vmem:[%s5590_s0 + $0x70] sm:$0xff]  ;;  %v105_v9 = vld [vmem:[%s5590_s0 + $0x80] sm:$0xff]  ;;  %v106_v13 = vld [vmem:[%s5590_s0 + $0x88] sm:$0xff]  ;;  %786 = vst.msk [vmem:[#allocation2 + $0x118] sm:$0xff] %vm121_vm0, %v754_v16 }
  0x76   :  { %136 = vst.msk [vmem:[#allocation2 + $0xe0] sm:$0xff] %vm121_vm0, %v103_v63  ;;  %138 = vst.msk [vmem:[#allocation2 + $0x100] sm:$0xff] %vm121_vm0, %v105_v9  ;;  %v753_v12 = vld [vmem:[%s5590_s0 + $0x84] sm:$0xff]  ;;  %v364_v14 = vld [vmem:[%s5590_s0 + $0x7a] sm:$0xff] }
  0x77   :  { %785 = vst.msk [vmem:[#allocation2 + $0x108] sm:$0xff] %vm121_vm0, %v753_v12  ;;  %139 = vst.msk [vmem:[#allocation2 + $0x110] sm:$0xff] %vm121_vm0, %v106_v13  ;;  %v558_v15 = vld [vmem:[%s5590_s0 + $0x7b] sm:$0xff]  ;;  %v559_v20 = vld [vmem:[%s5590_s0 + $0x83] sm:$0xff] }
  0x78   :  { %427 = vrot.lane.b32.xlu0 %v356_v5, %s4345_s19  ;;  %3833 = vmatpush1.bf16.msra.mxu0 %v3832_v40  ;;  %v556_v5 = vld [vmem:[%s5590_s0 + $0x6b] sm:$0xff]  ;;  %v171_v17 = vld [vmem:[%s5590_s0 + $0x81] sm:$0xff]  ;;  %v755_v22 = vld [vmem:[%s5590_s0 + $0x94] sm:$0xff] }
  0x79   :  { %621 = vrot.lane.b32.xlu1 %v550_v11, %s4344_s17  ;;  %v170_v11 = vld [vmem:[%s5590_s0 + $0x79] sm:$0xff]  ;;  %v172_v21 = vld [vmem:[%s5590_s0 + $0x89] sm:$0xff]  ;;  %787 = vst.msk [vmem:[#allocation2 + $0x128] sm:$0xff] %vm121_vm0, %v755_v22  ;;  %v173_v27 = vld [vmem:[%s5590_s0 + $0x91] sm:$0xff] }
  0x7a   :  { %v108_v23 = vld [vmem:[%s5590_s0 + $0x98] sm:$0xff]  ;;  %v366_v24 = vld [vmem:[%s5590_s0 + $0x8a] sm:$0xff]  ;;  %v109_v29 = vld [vmem:[%s5590_s0 + $0xa0] sm:$0xff] }
  0x7b   :  { %141 = vst.msk [vmem:[#allocation2 + $0x130] sm:$0xff] %vm121_vm0, %v108_v23  ;;  %v560_v25 = vld [vmem:[%s5590_s0 + $0x8b] sm:$0xff]  ;;  %v756_v26 = vld [vmem:[%s5590_s0 + $0x9c] sm:$0xff]  ;;  %142 = vst.msk [vmem:[#allocation2 + $0x140] sm:$0xff] %vm121_vm0, %v109_v29 }
  0x7c   :  { %235 = vrot.lane.b32.xlu0 %v163_v18, %s4343_s16  ;;  %v365_v18 = vld [vmem:[%s5590_s0 + $0x82] sm:$0xff]  ;;  %788 = vst.msk [vmem:[#allocation2 + $0x138] sm:$0xff] %vm121_vm0, %v756_v26  ;;  %v367_v28 = vld [vmem:[%s5590_s0 + $0x92] sm:$0xff]  ;;  %v368_v34 = vld [vmem:[%s5590_s0 + $0x9a] sm:$0xff] }
  0x7d   :  { %429 = vrot.lane.b32.xlu1 %v357_v19, %s4345_s19  ;;  %v107_v19 = vld [vmem:[%s5590_s0 + $0x90] sm:$0xff]  ;;  %v174_v31 = vld [vmem:[%s5590_s0 + $0x99] sm:$0xff]  ;;  %v757_v32 = vld [vmem:[%s5590_s0 + $0xa4] sm:$0xff] }
  0x7e   :  { %140 = vst.msk [vmem:[#allocation2 + $0x120] sm:$0xff] %vm121_vm0, %v107_v19  ;;  %v561_v30 = vld [vmem:[%s5590_s0 + $0x93] sm:$0xff]  ;;  %v110_v33 = vld [vmem:[%s5590_s0 + $0xa8] sm:$0xff]  ;;  %789 = vst.msk [vmem:[#allocation2 + $0x148] sm:$0xff] %vm121_vm0, %v757_v32 }
  0x7f   :  { %143 = vst.msk [vmem:[#allocation2 + $0x150] sm:$0xff] %vm121_vm0, %v110_v33  ;;  %v758_v38 = vld [vmem:[%s5590_s0 + $0xac] sm:$0xff]  ;;  %v175_v39 = vld [vmem:[%s5590_s0 + $0xa1] sm:$0xff]  ;;  %v759_v46 = vld [vmem:[%s5590_s0 + $0xb4] sm:$0xff] }
  0x80   :  { %623 = vrot.lane.b32.xlu0 %v551_v35, %s4344_s17  ;;  %v562_v35 = vld [vmem:[%s5590_s0 + $0x9b] sm:$0xff]  ;;  %790 = vst.msk [vmem:[#allocation2 + $0x158] sm:$0xff] %vm121_vm0, %v758_v38  ;;  %v111_v41 = vld [vmem:[%s5590_s0 + $0xb0] sm:$0xff]  ;;  %791 = vst.msk [vmem:[#allocation2 + $0x168] sm:$0xff] %vm121_vm0, %v759_v46 }
  0x81   :  { %237 = vrot.lane.b32.xlu1 %v164_v36, %s4343_s16  ;;  %v369_v40 = vld [vmem:[%s5590_s0 + $0xa2] sm:$0xff]  ;;  %144 = vst.msk [vmem:[#allocation2 + $0x160] sm:$0xff] %vm121_vm0, %v111_v41  ;;  %v564_v53 = vld [vmem:[%s5590_s0 + $0xab] sm:$0xff]  ;;  %v372_v6 = vld [vmem:[%s5590_s0 + $0xba] sm:$0xff] }
  0x82   :  { %v176_v45 = vld [vmem:[%s5590_s0 + $0xa9] sm:$0xff]  ;;  %v177_v57 = vld [vmem:[%s5590_s0 + $0xb1] sm:$0xff]  ;;  %v179_v13 = vld [vmem:[%s5590_s0 + $0xc1] sm:$0xff] }
  0x83   :  { %v762_v12 = vld [vmem:[%s5590_s0 + $0xcc] sm:$0xff]  ;;  %v764_v32 = vld [vmem:[%s5590_s0 + $0xdc] sm:$0xff]  ;;  %v765_v41 = vld [vmem:[%s5590_s0 + $0xe4] sm:$0xff] }
  0x84   :  { %431 = vrot.lane.b32.xlu0 %v358_v43, %s4345_s19  ;;  %794 = vst.msk [vmem:[#allocation2 + $0x198] sm:$0xff] %vm121_vm0, %v762_v12  ;;  %v374_v26 = vld [vmem:[%s5590_s0 + $0xca] sm:$0xff]  ;;  %796 = vst.msk [vmem:[#allocation2 + $0x1b8] sm:$0xff] %vm121_vm0, %v764_v32  ;;  %v376_v46 = vld [vmem:[%s5590_s0 + $0xda] sm:$0xff] }
  0x85   :  { %625 = vrot.lane.b32.xlu1 %v552_v44, %s4344_s17  ;;  %v563_v44 = vld [vmem:[%s5590_s0 + $0xa3] sm:$0xff]  ;;  %v181_v33 = vld [vmem:[%s5590_s0 + $0xd1] sm:$0xff]  ;;  %797 = vst.msk [vmem:[#allocation2 + $0x1c8] sm:$0xff] %vm121_vm0, %v765_v41 }
  0x86   :  { %v814_v38 = vld [vmem:[#allocation2 + $0x68] sm:$0xff]  ;;  %v1965_v32 = vld [vmem:[#allocation6 + $0x58] sm:$0xff] }
  0x87   :  { %v1954_v12 = vld [vmem:[#allocation6] sm:$0xff] }
  0x88   :  { %239 = vrot.lane.b32.xlu0 %v165_v49, %s4343_s16  ;;  %v112_v49 = vld [vmem:[%s5590_s0 + $0xb8] sm:$0xff]  ;;  %v1966_v41 = vld [vmem:[#allocation6 + $0x60] sm:$0xff] }
  0x89   :  { %433 = vrot.lane.b32.xlu1 %v359_v50, %s4345_s19  ;;  %145 = vst.msk [vmem:[#allocation2 + $0x170] sm:$0xff] %vm121_vm0, %v112_v49  ;;  %v370_v50 = vld [vmem:[%s5590_s0 + $0xaa] sm:$0xff] }
  0x8c   :  { %627 = vrot.lane.b32.xlu0 %v553_v54, %s4344_s17  ;;  %v804_v54 = vld [vmem:[#allocation2 + $0x18] sm:$0xff] }
  0x8d   :  { %241 = vrot.lane.b32.xlu1 %v166_v55, %s4343_s16  ;;  %v760_v55 = vld [vmem:[%s5590_s0 + $0xbc] sm:$0xff] }
  0x8e   :  { %792 = vst.msk [vmem:[#allocation2 + $0x178] sm:$0xff] %vm121_vm0, %v760_v55 }
  0x90   :  { %435 = vrot.lane.b32.xlu0 %v360_v58, %s4345_s19  ;;  %v113_v58 = vld [vmem:[%s5590_s0 + $0xc0] sm:$0xff] }
  0x91   :  { %629 = vrot.lane.b32.xlu1 %v554_v59, %s4344_s17  ;;  %146 = vst.msk [vmem:[#allocation2 + $0x180] sm:$0xff] %vm121_vm0, %v113_v58  ;;  %v818_v58 = vld [vmem:[#allocation2 + $0x88] sm:$0xff] }
  0x94   :  { %243 = vrot.lane.b32.xlu0 %v167_v61, %s4343_s16  ;;  %v371_v61 = vld [vmem:[%s5590_s0 + $0xb2] sm:$0xff] }
  0x95   :  { %437 = vrot.lane.b32.xlu1 %v361_v62, %s4345_s19  ;;  %v806_v62 = vld [vmem:[#allocation2 + $0x28] sm:$0xff] }
  0x98   :  { %631 = vrot.lane.b32.xlu0 %v555_v0, %s4344_s17  ;;  %v565_v0 = vld [vmem:[%s5590_s0 + $0xb3] sm:$0xff] }
  0x99   :  { %245 = vrot.lane.b32.xlu1 %v168_v1, %s4343_s16  ;;  %v761_v1 = vld [vmem:[%s5590_s0 + $0xc4] sm:$0xff] }
  0x9a   :  { %793 = vst.msk [vmem:[#allocation2 + $0x188] sm:$0xff] %vm121_vm0, %v761_v1  ;;  %v120_v1 = vld [vmem:[%s5590_s0 + $0xf8] sm:$0xf] }
  0x9b   :  { %154 = vst.msk [vmem:[#allocation2 + $0x1f0] sm:$0xf] %vm153_vm4, %v120_v1  ;;  %v1981_v1 = vld [vmem:[#allocation6 + $0xd8] sm:$0xff] }
  0x9c   :  { %439 = vrot.lane.b32.xlu0 %v362_v4, %s4345_s19  ;;  %v178_v4 = vld [vmem:[%s5590_s0 + $0xb9] sm:$0xff] }
  0x9d   :  { %633 = vrot.lane.b32.xlu1 %v556_v5, %s4344_s17  ;;  %v114_v5 = vld [vmem:[%s5590_s0 + $0xc8] sm:$0xff] }
  0x9e   :  { %147 = vst.msk [vmem:[#allocation2 + $0x190] sm:$0xff] %vm121_vm0, %v114_v5  ;;  %v820_v5 = vld [vmem:[#allocation2 + $0x98] sm:$0xff] }
  0xa0   :  { %247 = vrot.lane.b32.xlu0 %v169_v7, %s4343_s16  ;;  %v808_v7 = vld [vmem:[#allocation2 + $0x38] sm:$0xff] }
  0xa1   :  { %441 = vrot.lane.b32.xlu1 %v363_v8, %s4345_s19 }
  0xa4   :  { %635 = vrot.lane.b32.xlu0 %v557_v10, %s4344_s17 }
  0xa5   :  { %249 = vrot.lane.b32.xlu1 %v170_v11, %s4343_s16  ;;  %v566_v11 = vld [vmem:[%s5590_s0 + $0xbb] sm:$0xff] }
  0xa8   :  { %443 = vrot.lane.b32.xlu0 %v364_v14, %s4345_s19  ;;  %v115_v14 = vld [vmem:[%s5590_s0 + $0xd0] sm:$0xff] }
  0xa9   :  { %637 = vrot.lane.b32.xlu1 %v558_v15, %s4344_s17  ;;  %148 = vst.msk [vmem:[#allocation2 + $0x1a0] sm:$0xff] %vm121_vm0, %v115_v14 }
  0xac   :  { %251 = vrot.lane.b32.xlu0 %v171_v17, %s4343_s16  ;;  %v373_v17 = vld [vmem:[%s5590_s0 + $0xc2] sm:$0xff] }
  0xad   :  { %445 = vrot.lane.b32.xlu1 %v365_v18, %s4345_s19  ;;  %v810_v18 = vld [vmem:[#allocation2 + $0x48] sm:$0xff] }
  0xb0   :  { %639 = vrot.lane.b32.xlu0 %v559_v20, %s4344_s17  ;;  %v567_v20 = vld [vmem:[%s5590_s0 + $0xc3] sm:$0xff] }
  0xb1   :  { %253 = vrot.lane.b32.xlu1 %v172_v21, %s4343_s16  ;;  %v763_v21 = vld [vmem:[%s5590_s0 + $0xd4] sm:$0xff] }
  0xb2   :  { %795 = vst.msk [vmem:[#allocation2 + $0x1a8] sm:$0xff] %vm121_vm0, %v763_v21  ;;  %v1961_v21 = vld [vmem:[#allocation6 + $0x38] sm:$0xff] }
  0xb4   :  { %447 = vrot.lane.b32.xlu0 %v366_v24, %s4345_s19  ;;  %v180_v24 = vld [vmem:[%s5590_s0 + $0xc9] sm:$0xff] }
  0xb5   :  { %641 = vrot.lane.b32.xlu1 %v560_v25, %s4344_s17  ;;  %v116_v25 = vld [vmem:[%s5590_s0 + $0xd8] sm:$0xff] }
  0xb6   :  { %149 = vst.msk [vmem:[#allocation2 + $0x1b0] sm:$0xff] %vm121_vm0, %v116_v25  ;;  %v1960_v25 = vld [vmem:[#allocation6 + $0x30] sm:$0xff] }
  0xb8   :  { %255 = vrot.lane.b32.xlu0 %v173_v27, %s4343_s16  ;;  %v812_v27 = vld [vmem:[#allocation2 + $0x58] sm:$0xff] }
  0xb9   :  { %449 = vrot.lane.b32.xlu1 %v367_v28, %s4345_s19 }
  0xbc   :  { %643 = vrot.lane.b32.xlu0 %v561_v30, %s4344_s17 }
  0xbd   :  { %257 = vrot.lane.b32.xlu1 %v174_v31, %s4343_s16  ;;  %v568_v31 = vld [vmem:[%s5590_s0 + $0xcb] sm:$0xff] }
  0xbe   :  { %v220_v36 = vpop.permute.xlu0 %219 }
  0xbf   :  { %v608_v37 = vpop.permute.xlu1 %607  ;;  %316 = vst.msk [vmem:[#allocation2] sm:$0xff] %vm315_vm1, %v220_v36 }
  0xc0   :  { %451 = vrot.lane.b32.xlu0 %v368_v34, %s4345_s19  ;;  %v117_v34 = vld [vmem:[%s5590_s0 + $0xe0] sm:$0xff] }
  0xc1   :  { %645 = vrot.lane.b32.xlu1 %v562_v35, %s4344_s17  ;;  %150 = vst.msk [vmem:[#allocation2 + $0x1c0] sm:$0xff] %vm121_vm0, %v117_v34  ;;  %v824_v34 = vld [vmem:[#allocation2 + $0xb8] sm:$0xff] }
  0xc2   :  { %v414_v42 = vpop.permute.xlu0 %413 }
  0xc3   :  { %v222_v43 = vpop.permute.xlu1 %221  ;;  %510 = vst.msk [vmem:[#allocation2] sm:$0xff] %vm509_vm2, %v414_v42 }
  0xc4   :  { %317 = vst.msk [vmem:[#allocation2 + $0x10] sm:$0xff] %vm315_vm1, %v222_v43  ;;  %259 = vrot.lane.b32.xlu0 %v175_v39, %s4343_s16 }
  0xc5   :  { %704 = vst.msk [vmem:[#allocation2] sm:$0xff] %vm703_vm3, %v608_v37  ;;  %453 = vrot.lane.b32.xlu1 %v369_v40, %s4345_s19  ;;  %v375_v37 = vld [vmem:[%s5590_s0 + $0xd2] sm:$0xff] }
  0xc6   :  { %v416_v47 = vpop.permute.xlu0 %415  ;;  %v569_v40 = vld [vmem:[%s5590_s0 + $0xd3] sm:$0xff] }
  0xc7   :  { %v610_v48 = vpop.permute.xlu1 %609  ;;  %511 = vst.msk [vmem:[#allocation2 + $0x10] sm:$0xff] %vm509_vm2, %v416_v47  ;;  %v816_v47 = vld [vmem:[#allocation2 + $0x78] sm:$0xff] }
  0xc8   :  { %705 = vst.msk [vmem:[#allocation2 + $0x10] sm:$0xff] %vm703_vm3, %v610_v48  ;;  %647 = vrot.lane.b32.xlu0 %v563_v44, %s4344_s17  ;;  %v182_v44 = vld [vmem:[%s5590_s0 + $0xd9] sm:$0xff] }
  0xc9   :  { %261 = vrot.lane.b32.xlu1 %v176_v45, %s4343_s16  ;;  %v118_v45 = vld [vmem:[%s5590_s0 + $0xe8] sm:$0xff] }
  0xca   :  { %v224_v51 = vpop.permute.xlu0 %223  ;;  %151 = vst.msk [vmem:[#allocation2 + $0x1d0] sm:$0xff] %vm121_vm0, %v118_v45  ;;  %v1973_v45 = vld [vmem:[#allocation6 + $0x98] sm:$0xff] }
  0xcb   :  { %v418_v52 = vpop.permute.xlu1 %417  ;;  %318 = vst.msk [vmem:[#allocation2 + $0x20] sm:$0xff] %vm315_vm1, %v224_v51  ;;  %v570_v51 = vld [vmem:[%s5590_s0 + $0xdb] sm:$0xff] }
  0xcc   :  { %v801_v56 = vld [vmem:[#allocation2] sm:$0xff]  ;;  %512 = vst.msk [vmem:[#allocation2 + $0x20] sm:$0xff] %vm509_vm2, %v418_v52  ;;  %455 = vrot.lane.b32.xlu0 %v370_v50, %s4345_s19  ;;  %v766_v52 = vld [vmem:[%s5590_s0 + $0xec] sm:$0xff] }
  0xcd   :  { %1066 = vmatmul.mubr.f32.vlgmr.msra.gmra.mrb[0].mxu0 %v801_v56  ;;  %649 = vrot.lane.b32.xlu1 %v564_v53, %s4344_s17  ;;  %798 = vst.msk [vmem:[#allocation2 + $0x1d8] sm:$0xff] %vm121_vm0, %v766_v52  ;;  %v183_v53 = vld [vmem:[%s5590_s0 + $0xe1] sm:$0xff] }
  0xce   :  { %3394 = vmatprep.mubr.msk.f32.mxu0 %vm121_vm0, %v804_v54  ;;  %v612_v59 = vpop.permute.xlu0 %611  ;;  %v119_v54 = vld [vmem:[%s5590_s0 + $0xf0] sm:$0xff]  ;;  %v1970_v52 = vld [vmem:[#allocation6 + $0x80] sm:$0xff] }
  0xcf   :  { %v226_v60 = vpop.permute.xlu1 %225  ;;  %706 = vst.msk [vmem:[#allocation2 + $0x20] sm:$0xff] %vm703_vm3, %v612_v59  ;;  %v803_v63 = vld [vmem:[#allocation2 + $0x10] sm:$0xff] }
  0xd0   :  { %319 = vst.msk [vmem:[#allocation2 + $0x30] sm:$0xff] %vm315_vm1, %v226_v60  ;;  %263 = vrot.lane.b32.xlu0 %v177_v57, %s4343_s16  ;;  %v377_v57 = vld [vmem:[%s5590_s0 + $0xe2] sm:$0xff] }
  0xd1   :  { %1072 = vmatmul.mubr.f32.gmra.mrb[2].mxu0 %v803_v63  ;;  %457 = vrot.lane.b32.xlu1 %v371_v61, %s4345_s19  ;;  %152 = vst.msk [vmem:[#allocation2 + $0x1e0] sm:$0xff] %vm121_vm0, %v119_v54  ;;  %v571_v60 = vld [vmem:[%s5590_s0 + $0xe3] sm:$0xff]  ;;  %v767_v61 = vld [vmem:[%s5590_s0 + $0xf4] sm:$0xff] }
  0xd2   :  { %3395 = vmatprep.mubr.msk.f32.mxu0 %vm121_vm0, %v806_v62  ;;  %v420_v2 = vpop.permute.xlu0 %419  ;;  %799 = vst.msk [vmem:[#allocation2 + $0x1e8] sm:$0xff] %vm121_vm0, %v767_v61  ;;  %v1975_v54 = vld [vmem:[#allocation6 + $0xa8] sm:$0xff] }
  0xd3   :  { %v614_v3 = vpop.permute.xlu1 %613  ;;  %513 = vst.msk [vmem:[#allocation2 + $0x30] sm:$0xff] %vm509_vm2, %v420_v2  ;;  %v768_v2 = vld [vmem:[%s5590_s0 + $0xfc] sm:$0xf] }
  0xd4   :  { %707 = vst.msk [vmem:[#allocation2 + $0x30] sm:$0xff] %vm703_vm3, %v614_v3  ;;  %651 = vrot.lane.b32.xlu0 %v565_v0, %s4344_s17  ;;  %v184_v0 = vld [vmem:[%s5590_s0 + $0xe9] sm:$0xff] }
  0xd5   :  { %265 = vrot.lane.b32.xlu1 %v178_v4, %s4343_s16  ;;  %800 = vst.msk [vmem:[#allocation2 + $0x1f8] sm:$0xf] %vm153_vm4, %v768_v2  ;;  %v378_v3 = vld [vmem:[%s5590_s0 + $0xea] sm:$0xff] }
  0xd6   :  { %v228_v8 = vpop.permute.xlu0 %227  ;;  %v805_v10 = vld [vmem:[#allocation2 + $0x20] sm:$0xff]  ;;  %v572_v4 = vld [vmem:[%s5590_s0 + $0xeb] sm:$0xff] }
  0xd7   :  { %v422_v9 = vpop.permute.xlu1 %421  ;;  %320 = vst.msk [vmem:[#allocation2 + $0x40] sm:$0xff] %vm315_vm1, %v228_v8  ;;  %1078 = vmatmul.mubr.f32.gmra.mrb[4].mxu0 %v805_v10  ;;  %v1957_v10 = vld [vmem:[#allocation6 + $0x18] sm:$0xff] }
  0xd8   :  { %514 = vst.msk [vmem:[#allocation2 + $0x40] sm:$0xff] %vm509_vm2, %v422_v9  ;;  %459 = vrot.lane.b32.xlu0 %v372_v6, %s4345_s19  ;;  %3396 = vmatprep.mubr.msk.f32.mxu0 %vm121_vm0, %v808_v7  ;;  %v1955_v9 = vld [vmem:[#allocation6 + $0x8] sm:$0xff] }
  0xd9   :  { %653 = vrot.lane.b32.xlu1 %v566_v11, %s4344_s17  ;;  %v3834_v11 = vpack.c.bf16 %v1957_v10, %v1955_v9  ;;  %v1983_v9 = vld [vmem:[#allocation6 + $0xe8] sm:$0xff]  ;;  %v1985_v10 = vld [vmem:[#allocation6 + $0xf8] sm:$0xff] }
  0xda   :  { %v616_v15 = vpop.permute.xlu0 %615 }
  0xdb   :  { %v230_v16 = vpop.permute.xlu1 %229  ;;  %708 = vst.msk [vmem:[#allocation2 + $0x40] sm:$0xff] %vm703_vm3, %v616_v15  ;;  %v807_v19 = vld [vmem:[#allocation2 + $0x30] sm:$0xff]  ;;  %3835 = vmatprep.subr.bf16.mxu1 %v3834_v11 }
  0xdc   :  { %321 = vst.msk [vmem:[#allocation2 + $0x50] sm:$0xff] %vm315_vm1, %v230_v16  ;;  %267 = vrot.lane.b32.xlu0 %v179_v13, %s4343_s16  ;;  %1084 = vmatmul.mubr.f32.gmra.mrb[6].mxu0 %v807_v19  ;;  %v1956_v13 = vld [vmem:[#allocation6 + $0x10] sm:$0xff]  ;;  %v822_v19 = vld [vmem:[#allocation2 + $0xa8] sm:$0xff] }
  0xdd   :  { %461 = vrot.lane.b32.xlu1 %v373_v17, %s4345_s19  ;;  %3397 = vmatprep.mubr.msk.f32.mxu0 %vm121_vm0, %v810_v18  ;;  %v3836_v14 = vpack.c.bf16 %v1956_v13, %v1954_v12  ;;  %v185_v15 = vld [vmem:[%s5590_s0 + $0xf1] sm:$0xff] }
  0xde   :  { %v424_v22 = vpop.permute.xlu0 %423  ;;  %v379_v16 = vld [vmem:[%s5590_s0 + $0xf2] sm:$0xff] }
  0xdf   :  { %v618_v23 = vpop.permute.xlu1 %617  ;;  %515 = vst.msk [vmem:[#allocation2 + $0x50] sm:$0xff] %vm509_vm2, %v424_v22  ;;  %3837 = vmatpush1.bf16.msra.mxu1 %v3836_v14 }
  0xe0   :  { %709 = vst.msk [vmem:[#allocation2 + $0x50] sm:$0xff] %vm703_vm3, %v618_v23  ;;  %655 = vrot.lane.b32.xlu0 %v567_v20, %s4344_s17  ;;  %v1959_v20 = vld [vmem:[#allocation6 + $0x28] sm:$0xff] }
  0xe1   :  { %269 = vrot.lane.b32.xlu1 %v180_v24, %s4343_s16  ;;  %v3838_v23 = vpack.c.bf16 %v1961_v21, %v1959_v20  ;;  %v1958_v24 = vld [vmem:[#allocation6 + $0x20] sm:$0xff] }
  0xe2   :  { %v232_v28 = vpop.permute.xlu0 %231  ;;  %v809_v30 = vld [vmem:[#allocation2 + $0x40] sm:$0xff] }
  0xe3   :  { %v426_v29 = vpop.permute.xlu1 %425  ;;  %322 = vst.msk [vmem:[#allocation2 + $0x60] sm:$0xff] %vm315_vm1, %v232_v28  ;;  %1090 = vmatmul.mubr.f32.gmra.mrb[8].mxu0 %v809_v30  ;;  %v186_v30 = vld [vmem:[%s5590_s0 + $0xf9] sm:$0xf]  ;;  %3839 = vmatprep.subr.bf16.mxu1 %v3838_v23 }
  0xe4   :  { %516 = vst.msk [vmem:[#allocation2 + $0x60] sm:$0xff] %vm509_vm2, %v426_v29  ;;  %463 = vrot.lane.b32.xlu0 %v374_v26, %s4345_s19  ;;  %3398 = vmatprep.mubr.msk.f32.mxu0 %vm121_vm0, %v812_v27  ;;  %v3840_v26 = vpack.c.bf16 %v1960_v25, %v1958_v24  ;;  %v573_v27 = vld [vmem:[%s5590_s0 + $0xf3] sm:$0xff] }
  0xe5   :  { %657 = vrot.lane.b32.xlu1 %v568_v31, %s4344_s17  ;;  %v1963_v31 = vld [vmem:[#allocation6 + $0x48] sm:$0xff] }
  0xe6   :  { %v620_v35 = vpop.permute.xlu0 %619  ;;  %3841 = vmatpush1.bf16.msra.mxu1 %v3840_v26  ;;  %v1986_v26 = vld [vmem:[#allocation6 + $0x100] sm:$0xff] }
  0xe7   :  { %v234_v36 = vpop.permute.xlu1 %233  ;;  %710 = vst.msk [vmem:[#allocation2 + $0x60] sm:$0xff] %vm703_vm3, %v620_v35  ;;  %v811_v39 = vld [vmem:[#allocation2 + $0x50] sm:$0xff]  ;;  %v3842_v35 = vpack.c.bf16 %v1965_v32, %v1963_v31  ;;  %v832_v31 = vld [vmem:[#allocation2 + $0xf8] sm:$0xff] }
  0xe8   :  { %323 = vst.msk [vmem:[#allocation2 + $0x70] sm:$0xff] %vm315_vm1, %v234_v36  ;;  %271 = vrot.lane.b32.xlu0 %v181_v33, %s4343_s16  ;;  %1096 = vmatmul.mubr.f32.gmra.mrb[10].mxu0 %v811_v39  ;;  %v380_v33 = vld [vmem:[%s5590_s0 + $0xfa] sm:$0xf]  ;;  %v1962_v36 = vld [vmem:[#allocation6 + $0x40] sm:$0xff]  ;;  %v1967_v39 = vld [vmem:[#allocation6 + $0x68] sm:$0xff] }
  0xe9   :  { %465 = vrot.lane.b32.xlu1 %v375_v37, %s4345_s19  ;;  %3399 = vmatprep.mubr.msk.f32.mxu0 %vm121_vm0, %v814_v38  ;;  %v1964_v37 = vld [vmem:[#allocation6 + $0x50] sm:$0xff] }
  0xea   :  { %v428_v42 = vpop.permute.xlu0 %427  ;;  %v3844_v38 = vpack.c.bf16 %v1964_v37, %v1962_v36  ;;  %3843 = vmatprep.subr.bf16.mxu1 %v3842_v35  ;;  %v1991_v35 = vld [vmem:[#allocation6 + $0x128] sm:$0xff]  ;;  %v1993_v36 = vld [vmem:[#allocation6 + $0x138] sm:$0xff] }
  0xeb   :  { %v622_v43 = vpop.permute.xlu1 %621  ;;  %517 = vst.msk [vmem:[#allocation2 + $0x70] sm:$0xff] %vm509_vm2, %v428_v42  ;;  %v3870_v37 = vpack.c.bf16 %v1993_v36, %v1991_v35  ;;  %v842_v35 = vld [vmem:[#allocation2 + $0x148] sm:$0xff] }
  0xec   :  { %711 = vst.msk [vmem:[#allocation2 + $0x70] sm:$0xff] %vm703_vm3, %v622_v43  ;;  %659 = vrot.lane.b32.xlu0 %v569_v40, %s4344_s17  ;;  %v1969_v40 = vld [vmem:[#allocation6 + $0x78] sm:$0xff]  ;;  %v1968_v43 = vld [vmem:[#allocation6 + $0x70] sm:$0xff]  ;;  %3845 = vmatpush1.bf16.msra.mxu1 %v3844_v38  ;;  %v1990_v38 = vld [vmem:[#allocation6 + $0x120] sm:$0xff] }
  0xed   :  { %273 = vrot.lane.b32.xlu1 %v182_v44, %s4343_s16  ;;  %v3846_v42 = vpack.c.bf16 %v1969_v40, %v1967_v39  ;;  %v1971_v44 = vld [vmem:[#allocation6 + $0x88] sm:$0xff]  ;;  %v1992_v39 = vld [vmem:[#allocation6 + $0x130] sm:$0xff] }
  0xee   :  { %v236_v48 = vpop.permute.xlu0 %235  ;;  %v813_v50 = vld [vmem:[#allocation2 + $0x60] sm:$0xff]  ;;  %v3872_v40 = vpack.c.bf16 %v1992_v39, %v1990_v38  ;;  %v844_v39 = vld [vmem:[#allocation2 + $0x158] sm:$0xff] }
  0xef   :  { %v430_v49 = vpop.permute.xlu1 %429  ;;  %324 = vst.msk [vmem:[#allocation2 + $0x80] sm:$0xff] %vm315_vm1, %v236_v48  ;;  %1102 = vmatmul.mubr.f32.gmra.mrb[12].mxu0 %v813_v50  ;;  %v3848_v50 = vpack.c.bf16 %v1968_v43, %v1966_v41  ;;  %3847 = vmatprep.subr.bf16.mxu1 %v3846_v42  ;;  %v834_v43 = vld [vmem:[#allocation2 + $0x108] sm:$0xff] }
  0xf0   :  { %518 = vst.msk [vmem:[#allocation2 + $0x80] sm:$0xff] %vm509_vm2, %v430_v49  ;;  %467 = vrot.lane.b32.xlu0 %v376_v46, %s4345_s19  ;;  %3400 = vmatprep.mubr.msk.f32.mxu0 %vm121_vm0, %v816_v47  ;;  %v574_v49 = vld [vmem:[%s5590_s0 + $0xfb] sm:$0xf] }
  0xf1   :  { %661 = vrot.lane.b32.xlu1 %v570_v51, %s4344_s17  ;;  %v3850_v51 = vpack.c.bf16 %v1973_v45, %v1971_v44  ;;  %3849 = vmatpush1.bf16.msra.mxu1 %v3848_v50  ;;  %v1995_v44 = vld [vmem:[#allocation6 + $0x148] sm:$0xff]  ;;  %v1997_v45 = vld [vmem:[#allocation6 + $0x158] sm:$0xff] }
  0xf2   :  { %v624_v55 = vpop.permute.xlu0 %623 }
  0xf3   :  { %v238_v56 = vpop.permute.xlu1 %237  ;;  %712 = vst.msk [vmem:[#allocation2 + $0x80] sm:$0xff] %vm703_vm3, %v624_v55  ;;  %v815_v59 = vld [vmem:[#allocation2 + $0x70] sm:$0xff]  ;;  %v1977_v55 = vld [vmem:[#allocation6 + $0xb8] sm:$0xff]  ;;  %3851 = vmatprep.subr.bf16.mxu1 %v3850_v51 }
  0xf4   :  { %325 = vst.msk [vmem:[#allocation2 + $0x90] sm:$0xff] %vm315_vm1, %v238_v56  ;;  %275 = vrot.lane.b32.xlu0 %v183_v53, %s4343_s16  ;;  %1108 = vmatmul.mubr.f32.gmra.mrb[14].mxu0 %v815_v59  ;;  %v1972_v53 = vld [vmem:[#allocation6 + $0x90] sm:$0xff]  ;;  %v3854_v61 = vpack.c.bf16 %v1977_v55, %v1975_v54  ;;  %v2001_v54 = vld [vmem:[#allocation6 + $0x178] sm:$0xff] }
  0xf5   :  { %469 = vrot.lane.b32.xlu1 %v377_v57, %s4345_s19  ;;  %3401 = vmatprep.mubr.msk.f32.mxu0 %vm121_vm0, %v818_v58  ;;  %v826_v58 = vld [vmem:[#allocation2 + $0xc8] sm:$0xff] }
  0xf6   :  { %v432_v62 = vpop.permute.xlu0 %431 }
  0xf7   :  { %v626_v63 = vpop.permute.xlu1 %625  ;;  %519 = vst.msk [vmem:[#allocation2 + $0x90] sm:$0xff] %vm509_vm2, %v432_v62  ;;  %v1974_v62 = vld [vmem:[#allocation6 + $0xa0] sm:$0xff] }
  0xf8   :  { %713 = vst.msk [vmem:[#allocation2 + $0x90] sm:$0xff] %vm703_vm3, %v626_v63  ;;  %663 = vrot.lane.b32.xlu0 %v571_v60, %s4344_s17  ;;  %v3852_v60 = vpack.c.bf16 %v1972_v53, %v1970_v52  ;;  %v1976_v63 = vld [vmem:[#allocation6 + $0xb0] sm:$0xff]  ;;  %v1999_v53 = vld [vmem:[#allocation6 + $0x168] sm:$0xff] }
  0xf9   :  { %277 = vrot.lane.b32.xlu1 %v184_v0, %s4343_s16  ;;  %v1979_v0 = vld [vmem:[#allocation6 + $0xc8] sm:$0xff]  ;;  %v3878_v55 = vpack.c.bf16 %v2001_v54, %v1999_v53  ;;  %v850_v54 = vld [vmem:[#allocation2 + $0x188] sm:$0xff] }
  0xfa   :  { %v240_v6 = vpop.permute.xlu0 %239  ;;  %v817_v8 = vld [vmem:[#allocation2 + $0x80] sm:$0xff]  ;;  %3853 = vmatpush1.bf16.msra.mxu1 %v3852_v60 }
  0xfb   :  { %v434_v7 = vpop.permute.xlu1 %433  ;;  %326 = vst.msk [vmem:[#allocation2 + $0xa0] sm:$0xff] %vm315_vm1, %v240_v6  ;;  %1114 = vmatmul.mubr.f32.gmra.mrb[16].mxu0 %v817_v8  ;;  %3855 = vmatprep.subr.bf16.mxu1 %v3854_v61  ;;  %v1978_v6 = vld [vmem:[#allocation6 + $0xc0] sm:$0xff]  ;;  %v828_v8 = vld [vmem:[#allocation2 + $0xd8] sm:$0xff] }
  0xfc   :  { %520 = vst.msk [vmem:[#allocation2 + $0xa0] sm:$0xff] %vm509_vm2, %v434_v7  ;;  %471 = vrot.lane.b32.xlu0 %v378_v3, %s4345_s19  ;;  %3402 = vmatprep.mubr.msk.f32.mxu0 %vm121_vm0, %v820_v5  ;;  %v3858_v5 = vpack.c.bf16 %v1981_v1, %v1979_v0  ;;  %v1980_v7 = vld [vmem:[#allocation6 + $0xd0] sm:$0xff]  ;;  %v2005_v0 = vld [vmem:[#allocation6 + $0x198] sm:$0xff] }
  0xfd   :  { %665 = vrot.lane.b32.xlu1 %v572_v4, %s4344_s17  ;;  %v3856_v4 = vpack.c.bf16 %v1976_v63, %v1974_v62  ;;  %v3860_v14 = vpack.c.bf16 %v1980_v7, %v1978_v6  ;;  %v2003_v63 = vld [vmem:[#allocation6 + $0x188] sm:$0xff]  ;;  %v838_v7 = vld [vmem:[#allocation2 + $0x128] sm:$0xff] }
  0xfe   :  { %v628_v17 = vpop.permute.xlu0 %627  ;;  %v3882_v1 = vpack.c.bf16 %v2005_v0, %v2003_v63  ;;  %v854_v0 = vld [vmem:[#allocation2 + $0x1a8] sm:$0xff] }
  0xff   :  { %v242_v18 = vpop.permute.xlu1 %241  ;;  %714 = vst.msk [vmem:[#allocation2 + $0xa0] sm:$0xff] %vm703_vm3, %v628_v17  ;;  %v819_v22 = vld [vmem:[#allocation2 + $0x90] sm:$0xff]  ;;  %3857 = vmatpush1.bf16.msra.mxu1 %v3856_v4  ;;  %v1984_v17 = vld [vmem:[#allocation6 + $0xf0] sm:$0xff] }
 0x100   :  { %327 = vst.msk [vmem:[#allocation2 + $0xb0] sm:$0xff] %vm315_vm1, %v242_v18  ;;  %279 = vrot.lane.b32.xlu0 %v185_v15, %s4343_s16  ;;  %1120 = vmatmul.mubr.f32.gmra.mrb[18].mxu0 %v819_v22  ;;  %v3862_v15 = vpack.c.bf16 %v1985_v10, %v1983_v9  ;;  %v1987_v18 = vld [vmem:[#allocation6 + $0x108] sm:$0xff]  ;;  %v830_v22 = vld [vmem:[#allocation2 + $0xe8] sm:$0xff]  ;;  %v2009_v9 = vld [vmem:[#allocation6 + $0x1b8] sm:$0xff] }
 0x101   :  { %473 = vrot.lane.b32.xlu1 %v379_v16, %s4345_s19  ;;  %3403 = vmatprep.mubr.msk.f32.mxu0 %vm121_vm0, %v822_v19  ;;  %v1982_v16 = vld [vmem:[#allocation6 + $0xe0] sm:$0xff]  ;;  %v1989_v19 = vld [vmem:[#allocation6 + $0x118] sm:$0xff] }
 0x102   :  { %v436_v28 = vpop.permute.xlu0 %435  ;;  %3859 = vmatprep.subr.bf16.mxu1 %v3858_v5  ;;  %v3864_v24 = vpack.c.bf16 %v1984_v17, %v1982_v16  ;;  %v3866_v25 = vpack.c.bf16 %v1989_v19, %v1987_v18  ;;  %v2011_v17 = vld [vmem:[#allocation6 + $0x1c8] sm:$0xff]  ;;  %v2013_v18 = vld [vmem:[#allocation6 + $0x1d8] sm:$0xff] }
 0x103   :  { %v630_v29 = vpop.permute.xlu1 %629  ;;  %521 = vst.msk [vmem:[#allocation2 + $0xb0] sm:$0xff] %vm509_vm2, %v436_v28  ;;  %3861 = vmatpush1.bf16.msra.mxu1 %v3860_v14  ;;  %v3890_v19 = vpack.c.bf16 %v2013_v18, %v2011_v17 }
 0x104   :  { %715 = vst.msk [vmem:[#allocation2 + $0xb0] sm:$0xff] %vm703_vm3, %v630_v29  ;;  %667 = vrot.lane.b32.xlu0 %v573_v27, %s4344_s17  ;;  %3863 = vmatprep.subr.bf16.mxu1 %v3862_v15  ;;  %v1988_v27 = vld [vmem:[#allocation6 + $0x110] sm:$0xff] }
 0x105   :  { %281 = vrot.lane.b32.xlu1 %v186_v30, %s4343_s16  ;;  %v3868_v30 = vpack.c.bf16 %v1988_v27, %v1986_v26  ;;  %v2015_v27 = vld [vmem:[#allocation6 + $0x1e8] sm:$0xff] }
 0x106   :  { %v244_v46 = vpop.permute.xlu0 %243  ;;  %v821_v48 = vld [vmem:[#allocation2 + $0xa0] sm:$0xff] }
 0x107   :  { %v438_v47 = vpop.permute.xlu1 %437  ;;  %328 = vst.msk [vmem:[#allocation2 + $0xc0] sm:$0xff] %vm315_vm1, %v244_v46  ;;  %1126 = vmatmul.mubr.f32.gmra.mrb[20].mxu0 %v821_v48  ;;  %3865 = vmatpush1.bf16.msra.mxu1 %v3864_v24  ;;  %v1994_v48 = vld [vmem:[#allocation6 + $0x140] sm:$0xff] }
 0x108   :  { %522 = vst.msk [vmem:[#allocation2 + $0xc0] sm:$0xff] %vm509_vm2, %v438_v47  ;;  %475 = vrot.lane.b32.xlu0 %v380_v33, %s4345_s19  ;;  %3404 = vmatprep.mubr.msk.f32.mxu0 %vm121_vm0, %v824_v34  ;;  %v3874_v47 = vpack.c.bf16 %v1997_v45, %v1995_v44  ;;  %v846_v44 = vld [vmem:[#allocation2 + $0x168] sm:$0xff] }
 0x109   :  { %669 = vrot.lane.b32.xlu1 %v574_v49, %s4344_s17  ;;  %3867 = vmatprep.subr.bf16.mxu1 %v3866_v25  ;;  %v1996_v49 = vld [vmem:[#allocation6 + $0x150] sm:$0xff] }
 0x10a   :  { %v632_v56 = vpop.permute.xlu0 %631  ;;  %v3876_v50 = vpack.c.bf16 %v1996_v49, %v1994_v48  ;;  %v848_v49 = vld [vmem:[#allocation2 + $0x178] sm:$0xff] }
 0x10b   :  { %v246_v57 = vpop.permute.xlu1 %245  ;;  %716 = vst.msk [vmem:[#allocation2 + $0xc0] sm:$0xff] %vm703_vm3, %v632_v56  ;;  %v823_v59 = vld [vmem:[#allocation2 + $0xb0] sm:$0xff]  ;;  %3869 = vmatpush1.bf16.msra.mxu1 %v3868_v30  ;;  %v1998_v56 = vld [vmem:[#allocation6 + $0x160] sm:$0xff] }
 0x10c   :  { %329 = vst.msk [vmem:[#allocation2 + $0xd0] sm:$0xff] %vm315_vm1, %v246_v57  ;;  %1132 = vmatmul.mubr.f32.gmra.mrb[22].mxu0 %v823_v59  ;;  %3871 = vmatprep.subr.bf16.mxu1 %v3870_v37  ;;  %v2000_v57 = vld [vmem:[#allocation6 + $0x170] sm:$0xff]  ;;  %v2014_v30 = vld [vmem:[#allocation6 + $0x1e0] sm:$0xff] }
 0x10d   :  { %3405 = vmatprep.mubr.msk.f32.mxu0 %vm121_vm0, %v826_v58  ;;  %v3880_v58 = vpack.c.bf16 %v2000_v57, %v1998_v56  ;;  %v836_v59 = vld [vmem:[#allocation2 + $0x118] sm:$0xff] }
 0x10e   :  { %v440_v2 = vpop.permute.xlu0 %439 }
 0x10f   :  { %v634_v3 = vpop.permute.xlu1 %633  ;;  %523 = vst.msk [vmem:[#allocation2 + $0xd0] sm:$0xff] %vm509_vm2, %v440_v2  ;;  %3873 = vmatpush1.bf16.msra.mxu1 %v3872_v40  ;;  %v2002_v2 = vld [vmem:[#allocation6 + $0x180] sm:$0xff] }
 0x110   :  { %717 = vst.msk [vmem:[#allocation2 + $0xd0] sm:$0xff] %vm703_vm3, %v634_v3  ;;  %3875 = vmatprep.subr.bf16.mxu1 %v3874_v47  ;;  %v2004_v3 = vld [vmem:[#allocation6 + $0x190] sm:$0xff] }
 0x111   :  { %v3884_v4 = vpack.c.bf16 %v2004_v3, %v2002_v2 }
 0x112   :  { %v248_v11 = vpop.permute.xlu0 %247  ;;  %v825_v13 = vld [vmem:[#allocation2 + $0xc0] sm:$0xff] }
 0x113   :  { %v442_v12 = vpop.permute.xlu1 %441  ;;  %330 = vst.msk [vmem:[#allocation2 + $0xe0] sm:$0xff] %vm315_vm1, %v248_v11  ;;  %1138 = vmatmul.mubr.f32.gmra.mrb[24].mxu0 %v825_v13  ;;  %3877 = vmatpush1.bf16.msra.mxu1 %v3876_v50  ;;  %v2008_v13 = vld [vmem:[#allocation6 + $0x1b0] sm:$0xff] }
 0x114   :  { %524 = vst.msk [vmem:[#allocation2 + $0xe0] sm:$0xff] %vm509_vm2, %v442_v12  ;;  %3406 = vmatprep.mubr.msk.f32.mxu0 %vm121_vm0, %v828_v8  ;;  %3879 = vmatprep.subr.bf16.mxu1 %v3878_v55  ;;  %v2007_v8 = vld [vmem:[#allocation6 + $0x1a8] sm:$0xff]  ;;  %v2006_v12 = vld [vmem:[#allocation6 + $0x1a0] sm:$0xff] }
 0x115   :  { %v3886_v11 = vpack.c.bf16 %v2009_v9, %v2007_v8  ;;  %v3888_v14 = vpack.c.bf16 %v2008_v13, %v2006_v12 }
 0x116   :  { %v636_v20 = vpop.permute.xlu0 %635 }
 0x117   :  { %v250_v21 = vpop.permute.xlu1 %249  ;;  %718 = vst.msk [vmem:[#allocation2 + $0xe0] sm:$0xff] %vm703_vm3, %v636_v20  ;;  %v827_v23 = vld [vmem:[#allocation2 + $0xd0] sm:$0xff]  ;;  %3881 = vmatpush1.bf16.msra.mxu1 %v3880_v58  ;;  %v2010_v20 = vld [vmem:[#allocation6 + $0x1c0] sm:$0xff] }
 0x118   :  { %331 = vst.msk [vmem:[#allocation2 + $0xf0] sm:$0xff] %vm315_vm1, %v250_v21  ;;  %1144 = vmatmul.mubr.f32.gmra.mrb[26].mxu0 %v827_v23  ;;  %3883 = vmatprep.subr.bf16.mxu1 %v3882_v1  ;;  %v2012_v21 = vld [vmem:[#allocation6 + $0x1d0] sm:$0xff] }
 0x119   :  { %3407 = vmatprep.mubr.msk.f32.mxu0 %vm121_vm0, %v830_v22  ;;  %v3892_v22 = vpack.c.bf16 %v2012_v21, %v2010_v20  ;;  %v840_v23 = vld [vmem:[#allocation2 + $0x138] sm:$0xff]  ;;  %v862_v20 = vld [vmem:[#allocation2 + $0x1e8] sm:$0xff] }
 0x11a   :  { %v444_v28 = vpop.permute.xlu0 %443 }
 0x11b   :  { %v638_v29 = vpop.permute.xlu1 %637  ;;  %525 = vst.msk [vmem:[#allocation2 + $0xf0] sm:$0xff] %vm509_vm2, %v444_v28  ;;  %3885 = vmatpush1.bf16.msra.mxu1 %v3884_v4  ;;  %v2017_v28 = vld [vmem:[#allocation6 + $0x1f8] sm:$0xff] }
 0x11c   :  { %719 = vst.msk [vmem:[#allocation2 + $0xf0] sm:$0xff] %vm703_vm3, %v638_v29  ;;  %3887 = vmatprep.subr.bf16.mxu1 %v3886_v11  ;;  %v3894_v29 = vpack.c.bf16 %v2017_v28, %v2015_v27 }
 0x11e   :  { %v252_v32 = vpop.permute.xlu0 %251  ;;  %v829_v34 = vld [vmem:[#allocation2 + $0xe0] sm:$0xff] }
 0x11f   :  { %v446_v33 = vpop.permute.xlu1 %445  ;;  %332 = vst.msk [vmem:[#allocation2 + $0x100] sm:$0xff] %vm315_vm1, %v252_v32  ;;  %1150 = vmatmul.mubr.f32.gmra.mrb[28].mxu0 %v829_v34  ;;  %3889 = vmatpush1.bf16.msra.mxu1 %v3888_v14 }
 0x120   :  { %526 = vst.msk [vmem:[#allocation2 + $0x100] sm:$0xff] %vm509_vm2, %v446_v33  ;;  %3408 = vmatprep.mubr.msk.f32.mxu0 %vm121_vm0, %v832_v31  ;;  %3891 = vmatprep.subr.bf16.mxu1 %v3890_v19  ;;  %v2016_v31 = vld [vmem:[#allocation6 + $0x1f0] sm:$0xff] }
 0x121   :  { %v3896_v32 = vpack.c.bf16 %v2016_v31, %v2014_v30  ;;  %v5343_v30 = vld [vmem:[%s5592_s2] ss:$0 sm:$0xff] }
 0x122   :  { %v640_v41 = vpop.permute.xlu0 %639 }
 0x123   :  { %v254_v42 = vpop.permute.xlu1 %253  ;;  %720 = vst.msk [vmem:[#allocation2 + $0x100] sm:$0xff] %vm703_vm3, %v640_v41  ;;  %v831_v46 = vld [vmem:[#allocation2 + $0xf0] sm:$0xff]  ;;  %3893 = vmatpush1.bf16.msra.mxu1 %v3892_v22 }
 0x124   :  { %333 = vst.msk [vmem:[#allocation2 + $0x110] sm:$0xff] %vm315_vm1, %v254_v42  ;;  %1156 = vmatmul.mubr.f32.gmra.mrb[30].mxu0 %v831_v46  ;;  %3895 = vmatprep.subr.bf16.mxu1 %v3894_v29 }
 0x125   :  { %3409 = vmatprep.mubr.msk.f32.mxu0 %vm121_vm0, %v834_v43 }
 0x126   :  { %v448_v51 = vpop.permute.xlu0 %447 }
 0x127   :  { %v642_v52 = vpop.permute.xlu1 %641  ;;  %527 = vst.msk [vmem:[#allocation2 + $0x110] sm:$0xff] %vm509_vm2, %v448_v51  ;;  %3897 = vmatpush1.bf16.msra.mxu1 %v3896_v32 }
 0x128   :  { %721 = vst.msk [vmem:[#allocation2 + $0x110] sm:$0xff] %vm703_vm3, %v642_v52 }
 0x12a   :  { %v256_v60 = vpop.permute.xlu0 %255  ;;  %v833_v62 = vld [vmem:[#allocation2 + $0x100] sm:$0xff] }
 0x12b   :  { %v450_v61 = vpop.permute.xlu1 %449  ;;  %334 = vst.msk [vmem:[#allocation2 + $0x120] sm:$0xff] %vm315_vm1, %v256_v60  ;;  %1162 = vmatmul.mubr.f32.gmra.mrb[32].mxu0 %v833_v62 }
 0x12c   :  { %528 = vst.msk [vmem:[#allocation2 + $0x120] sm:$0xff] %vm509_vm2, %v450_v61  ;;  %3410 = vmatprep.mubr.msk.f32.mxu0 %vm121_vm0, %v836_v59  ;;  %v852_v59 = vld [vmem:[#allocation2 + $0x198] sm:$0xff] }
 0x12e   :  { %v644_v5 = vpop.permute.xlu0 %643 }
 0x12f   :  { %v258_v6 = vpop.permute.xlu1 %257  ;;  %722 = vst.msk [vmem:[#allocation2 + $0x120] sm:$0xff] %vm703_vm3, %v644_v5  ;;  %v835_v10 = vld [vmem:[#allocation2 + $0x110] sm:$0xff]  ;;  %v856_v5 = vld [vmem:[#allocation2 + $0x1b8] sm:$0xff] }
 0x130   :  { %335 = vst.msk [vmem:[#allocation2 + $0x130] sm:$0xff] %vm315_vm1, %v258_v6  ;;  %1168 = vmatmul.mubr.f32.gmra.mrb[34].mxu0 %v835_v10  ;;  %v858_v10 = vld [vmem:[#allocation2 + $0x1c8] sm:$0xff] }
 0x131   :  { %3411 = vmatprep.mubr.msk.f32.mxu0 %vm121_vm0, %v838_v7 }
 0x132   :  { %v452_v15 = vpop.permute.xlu0 %451 }
 0x133   :  { %v646_v16 = vpop.permute.xlu1 %645  ;;  %529 = vst.msk [vmem:[#allocation2 + $0x130] sm:$0xff] %vm509_vm2, %v452_v15  ;;  %v860_v15 = vld [vmem:[#allocation2 + $0x1d8] sm:$0xff] }
 0x134   :  { %723 = vst.msk [vmem:[#allocation2 + $0x130] sm:$0xff] %vm703_vm3, %v646_v16 }
 0x136   :  { %v260_v24 = vpop.permute.xlu0 %259  ;;  %v837_v26 = vld [vmem:[#allocation2 + $0x120] sm:$0xff] }
 0x137   :  { %v454_v25 = vpop.permute.xlu1 %453  ;;  %336 = vst.msk [vmem:[#allocation2 + $0x140] sm:$0xff] %vm315_vm1, %v260_v24  ;;  %1174 = vmatmul.mubr.f32.gmra.mrb[36].mxu0 %v837_v26 }
 0x138   :  { %530 = vst.msk [vmem:[#allocation2 + $0x140] sm:$0xff] %vm509_vm2, %v454_v25  ;;  %3412 = vmatprep.mubr.msk.f32.mxu0 %vm121_vm0, %v840_v23  ;;  %v864_v25 = vld [vmem:[#allocation2 + $0x1f8] sm:$0xf] }
 0x13a   :  { %v648_v33 = vpop.permute.xlu0 %647 }
 0x13b   :  { %v262_v34 = vpop.permute.xlu1 %261  ;;  %724 = vst.msk [vmem:[#allocation2 + $0x140] sm:$0xff] %vm703_vm3, %v648_v33  ;;  %v839_v36 = vld [vmem:[#allocation2 + $0x130] sm:$0xff] }
 0x13c   :  { %337 = vst.msk [vmem:[#allocation2 + $0x150] sm:$0xff] %vm315_vm1, %v262_v34  ;;  %1180 = vmatmul.mubr.f32.gmra.mrb[38].mxu0 %v839_v36 }
 0x13d   :  { %3413 = vmatprep.mubr.msk.f32.mxu0 %vm121_vm0, %v842_v35 }
 0x13e   :  { %v456_v37 = vpop.permute.xlu0 %455 }
 0x13f   :  { %531 = vst.msk [vmem:[#allocation2 + $0x150] sm:$0xff] %vm509_vm2, %v456_v37  ;;  %v650_v38 = vpop.permute.xlu1 %649 }
 0x140   :  { %725 = vst.msk [vmem:[#allocation2 + $0x150] sm:$0xff] %vm703_vm3, %v650_v38 }
 0x142   :  { %v264_v40 = vpop.permute.xlu0 %263  ;;  %v841_v41 = vld [vmem:[#allocation2 + $0x140] sm:$0xff] }
 0x143   :  { %338 = vst.msk [vmem:[#allocation2 + $0x160] sm:$0xff] %vm315_vm1, %v264_v40  ;;  %v458_v42 = vpop.permute.xlu1 %457  ;;  %1186 = vmatmul.mubr.f32.gmra.mrb[40].mxu0 %v841_v41  ;;  %v2019_v41 = vld [vmem:[#allocation6 + $0x208] sm:$0xff] }
 0x144   :  { %532 = vst.msk [vmem:[#allocation2 + $0x160] sm:$0xff] %vm509_vm2, %v458_v42  ;;  %3414 = vmatprep.mubr.msk.f32.mxu0 %vm121_vm0, %v844_v39  ;;  %v2021_v42 = vld [vmem:[#allocation6 + $0x218] sm:$0xff] }
 0x146   :  { %v652_v43 = vpop.permute.xlu0 %651 }
 0x147   :  { %726 = vst.msk [vmem:[#allocation2 + $0x160] sm:$0xff] %vm703_vm3, %v652_v43  ;;  %v266_v45 = vpop.permute.xlu1 %265  ;;  %v843_v46 = vld [vmem:[#allocation2 + $0x150] sm:$0xff] }
 0x148   :  { %339 = vst.msk [vmem:[#allocation2 + $0x170] sm:$0xff] %vm315_vm1, %v266_v45  ;;  %1192 = vmatmul.mubr.f32.gmra.mrb[42].mxu0 %v843_v46 }
 0x149   :  { %3415 = vmatprep.mubr.msk.f32.mxu0 %vm121_vm0, %v846_v44  ;;  %v3898_v44 = vpack.c.bf16 %v2021_v42, %v2019_v41  ;;  %v2036_v41 = vld [vmem:[#allocation6 + $0x290] sm:$0xff] }
 0x14a   :  { %v460_v47 = vpop.permute.xlu0 %459 }
 0x14b   :  { %533 = vst.msk [vmem:[#allocation2 + $0x170] sm:$0xff] %vm509_vm2, %v460_v47  ;;  %v654_v48 = vpop.permute.xlu1 %653  ;;  %3899 = vmatprep.subr.bf16.mxu1 %v3898_v44  ;;  %v2039_v44 = vld [vmem:[#allocation6 + $0x2a8] sm:$0xff] }
 0x14c   :  { %727 = vst.msk [vmem:[#allocation2 + $0x170] sm:$0xff] %vm703_vm3, %v654_v48 }
 0x14e   :  { %v268_v50 = vpop.permute.xlu0 %267  ;;  %v845_v51 = vld [vmem:[#allocation2 + $0x160] sm:$0xff] }
 0x14f   :  { %340 = vst.msk [vmem:[#allocation2 + $0x180] sm:$0xff] %vm315_vm1, %v268_v50  ;;  %v462_v52 = vpop.permute.xlu1 %461  ;;  %1198 = vmatmul.mubr.f32.gmra.mrb[44].mxu0 %v845_v51 }
 0x150   :  { %534 = vst.msk [vmem:[#allocation2 + $0x180] sm:$0xff] %vm509_vm2, %v462_v52  ;;  %3416 = vmatprep.mubr.msk.f32.mxu0 %vm121_vm0, %v848_v49 }
 0x152   :  { %v656_v53 = vpop.permute.xlu0 %655 }
 0x153   :  { %728 = vst.msk [vmem:[#allocation2 + $0x180] sm:$0xff] %vm703_vm3, %v656_v53  ;;  %v270_v55 = vpop.permute.xlu1 %269  ;;  %v847_v56 = vld [vmem:[#allocation2 + $0x170] sm:$0xff] }
 0x154   :  { %341 = vst.msk [vmem:[#allocation2 + $0x190] sm:$0xff] %vm315_vm1, %v270_v55  ;;  %1204 = vmatmul.mubr.f32.gmra.mrb[46].mxu0 %v847_v56  ;;  %v2020_v55 = vld [vmem:[#allocation6 + $0x210] sm:$0xff]  ;;  %v2023_v56 = vld [vmem:[#allocation6 + $0x228] sm:$0xff] }
 0x155   :  { %3417 = vmatprep.mubr.msk.f32.mxu0 %vm121_vm0, %v850_v54  ;;  %v2018_v54 = vld [vmem:[#allocation6 + $0x200] sm:$0xff] }
 0x156   :  { %v464_v57 = vpop.permute.xlu0 %463 }
 0x157   :  { %535 = vst.msk [vmem:[#allocation2 + $0x190] sm:$0xff] %vm509_vm2, %v464_v57  ;;  %v658_v58 = vpop.permute.xlu1 %657 }
 0x158   :  { %729 = vst.msk [vmem:[#allocation2 + $0x190] sm:$0xff] %vm703_vm3, %v658_v58 }
 0x15a   :  { %v272_v60 = vpop.permute.xlu0 %271  ;;  %v849_v61 = vld [vmem:[#allocation2 + $0x180] sm:$0xff] }
 0x15b   :  { %342 = vst.msk [vmem:[#allocation2 + $0x1a0] sm:$0xff] %vm315_vm1, %v272_v60  ;;  %v466_v62 = vpop.permute.xlu1 %465  ;;  %1210 = vmatmul.mubr.f32.gmra.mrb[48].mxu0 %v849_v61  ;;  %v2025_v60 = vld [vmem:[#allocation6 + $0x238] sm:$0xff] }
 0x15c   :  { %536 = vst.msk [vmem:[#allocation2 + $0x1a0] sm:$0xff] %vm509_vm2, %v466_v62  ;;  %3418 = vmatprep.mubr.msk.f32.mxu0 %vm121_vm0, %v852_v59 }
 0x15e   :  { %v660_v63 = vpop.permute.xlu0 %659 }
 0x15f   :  { %730 = vst.msk [vmem:[#allocation2 + $0x1a0] sm:$0xff] %vm703_vm3, %v660_v63  ;;  %v274_v1 = vpop.permute.xlu1 %273  ;;  %v851_v2 = vld [vmem:[#allocation2 + $0x190] sm:$0xff] }
 0x160   :  { %343 = vst.msk [vmem:[#allocation2 + $0x1b0] sm:$0xff] %vm315_vm1, %v274_v1  ;;  %1216 = vmatmul.mubr.f32.gmra.mrb[50].mxu0 %v851_v2  ;;  %v3900_v1 = vpack.c.bf16 %v2020_v55, %v2018_v54 }
 0x161   :  { %3419 = vmatprep.mubr.msk.f32.mxu0 %vm121_vm0, %v854_v0 }
 0x162   :  { %v468_v3 = vpop.permute.xlu0 %467 }
 0x163   :  { %537 = vst.msk [vmem:[#allocation2 + $0x1b0] sm:$0xff] %vm509_vm2, %v468_v3  ;;  %v662_v4 = vpop.permute.xlu1 %661 }
 0x164   :  { %731 = vst.msk [vmem:[#allocation2 + $0x1b0] sm:$0xff] %vm703_vm3, %v662_v4  ;;  %v3902_v4 = vpack.c.bf16 %v2025_v60, %v2023_v56  ;;  %v2044_v60 = vld [vmem:[#allocation6 + $0x2d0] sm:$0xff] }
 0x166   :  { %v276_v6 = vpop.permute.xlu0 %275  ;;  %v853_v7 = vld [vmem:[#allocation2 + $0x1a0] sm:$0xff] }
 0x167   :  { %344 = vst.msk [vmem:[#allocation2 + $0x1c0] sm:$0xff] %vm315_vm1, %v276_v6  ;;  %v470_v8 = vpop.permute.xlu1 %469  ;;  %1222 = vmatmul.mubr.f32.gmra.mrb[52].mxu0 %v853_v7  ;;  %v2024_v6 = vld [vmem:[#allocation6 + $0x230] sm:$0xff] }
 0x168   :  { %538 = vst.msk [vmem:[#allocation2 + $0x1c0] sm:$0xff] %vm509_vm2, %v470_v8  ;;  %3420 = vmatprep.mubr.msk.f32.mxu0 %vm121_vm0, %v856_v5  ;;  %v2022_v5 = vld [vmem:[#allocation6 + $0x220] sm:$0xff] }
 0x16a   :  { %v664_v9 = vpop.permute.xlu0 %663 }
 0x16b   :  { %732 = vst.msk [vmem:[#allocation2 + $0x1c0] sm:$0xff] %vm703_vm3, %v664_v9  ;;  %v278_v11 = vpop.permute.xlu1 %277  ;;  %v855_v12 = vld [vmem:[#allocation2 + $0x1b0] sm:$0xff] }
 0x16c   :  { %345 = vst.msk [vmem:[#allocation2 + $0x1d0] sm:$0xff] %vm315_vm1, %v278_v11  ;;  %1228 = vmatmul.mubr.f32.gmra.mrb[54].mxu0 %v855_v12  ;;  %v2027_v9 = vld [vmem:[#allocation6 + $0x248] sm:$0xff]  ;;  %v3904_v12 = vpack.c.bf16 %v2024_v6, %v2022_v5 }
 0x16d   :  { %3421 = vmatprep.mubr.msk.f32.mxu0 %vm121_vm0, %v858_v10  ;;  %v2029_v10 = vld [vmem:[#allocation6 + $0x258] sm:$0xff] }
 0x16e   :  { %v472_v13 = vpop.permute.xlu0 %471 }
 0x16f   :  { %539 = vst.msk [vmem:[#allocation2 + $0x1d0] sm:$0xff] %vm509_vm2, %v472_v13  ;;  %v666_v14 = vpop.permute.xlu1 %665 }
 0x170   :  { %733 = vst.msk [vmem:[#allocation2 + $0x1d0] sm:$0xff] %vm703_vm3, %v666_v14  ;;  %v3906_v14 = vpack.c.bf16 %v2029_v10, %v2027_v9  ;;  %v2046_v10 = vld [vmem:[#allocation6 + $0x2e0] sm:$0xff] }
 0x172   :  { %v280_v16 = vpop.permute.xlu0 %279  ;;  %v857_v17 = vld [vmem:[#allocation2 + $0x1c0] sm:$0xff] }
 0x173   :  { %346 = vst.msk [vmem:[#allocation2 + $0x1e0] sm:$0xff] %vm315_vm1, %v280_v16  ;;  %v474_v18 = vpop.permute.xlu1 %473  ;;  %1234 = vmatmul.mubr.f32.gmra.mrb[56].mxu0 %v857_v17  ;;  %v2028_v16 = vld [vmem:[#allocation6 + $0x250] sm:$0xff]  ;;  %v2031_v17 = vld [vmem:[#allocation6 + $0x268] sm:$0xff] }
 0x174   :  { %540 = vst.msk [vmem:[#allocation2 + $0x1e0] sm:$0xff] %vm509_vm2, %v474_v18  ;;  %3422 = vmatprep.mubr.msk.f32.mxu0 %vm121_vm0, %v860_v15  ;;  %v2026_v15 = vld [vmem:[#allocation6 + $0x240] sm:$0xff]  ;;  %v2033_v18 = vld [vmem:[#allocation6 + $0x278] sm:$0xff] }
 0x176   :  { %v668_v19 = vpop.permute.xlu0 %667 }
 0x177   :  { %734 = vst.msk [vmem:[#allocation2 + $0x1e0] sm:$0xff] %vm703_vm3, %v668_v19  ;;  %v282_v21 = vpop.permute.xlu1 %281  ;;  %v859_v22 = vld [vmem:[#allocation2 + $0x1d0] sm:$0xff] }
 0x178   :  { %348 = vst.msk [vmem:[#allocation2 + $0x1f0] sm:$0xf] %vm347_vm5, %v282_v21  ;;  %1240 = vmatmul.mubr.f32.gmra.mrb[58].mxu0 %v859_v22  ;;  %v3908_v21 = vpack.c.bf16 %v2028_v16, %v2026_v15  ;;  %v2053_v15 = vld [vmem:[#allocation6 + $0x318] sm:$0xff] }
 0x179   :  { %3423 = vmatprep.mubr.msk.f32.mxu0 %vm121_vm0, %v862_v20 }
 0x17a   :  { %v476_v23 = vpop.permute.xlu0 %475 }
 0x17b   :  { %542 = vst.msk [vmem:[#allocation2 + $0x1f0] sm:$0xf] %vm541_vm6, %v476_v23  ;;  %v670_v24 = vpop.permute.xlu1 %669  ;;  %v3910_v23 = vpack.c.bf16 %v2033_v18, %v2031_v17 }
 0x17c   :  { %736 = vst.msk [vmem:[#allocation2 + $0x1f0] sm:$0xf] %vm735_vm7, %v670_v24  ;;  %v2030_v24 = vld [vmem:[#allocation6 + $0x260] sm:$0xff] }
 0x17e   :  { %v861_v26 = vld [vmem:[#allocation2 + $0x1e0] sm:$0xff] }
 0x17f   :  { %1246 = vmatmul.mubr.f32.gmra.mrb[60].mxu0 %v861_v26  ;;  %v2035_v26 = vld [vmem:[#allocation6 + $0x288] sm:$0xff] }
 0x180   :  { %3424 = vmatprep.mubr.msk.f32.mxu0 %vm121_vm0, %v864_v25  ;;  %v2032_v25 = vld [vmem:[#allocation6 + $0x270] sm:$0xff] }
 0x183   :  { %v863_v27 = vld [vmem:[#allocation2 + $0x1f0] sm:$0xf] }
 0x184   :  { %1252 = vmatmul.mubr.f32.gmra.mrb[62].mxu0 %v863_v27 }
 0x1a0   :  { %v1067_v28 = vpop.f32.mrb[0].mxu0 }
 0x1a1   :  { %v1069_v29 = vpop.f32.mrb[1].mxu0 }
 0x1a2   :  { %v1258_v31 = vmax.f32 %v1067_v28, %v1069_v29 }
 0x1a4   :  { %v1297_v32 = vadd.f32 %v5343_v30, %v1258_v31  ;;  %v1073_v33 = vpop.f32.mrb[2].mxu0  ;;  %v2037_v31 = vld [vmem:[#allocation6 + $0x298] sm:$0xff] }
 0x1a5   :  { %v1075_v34 = vpop.f32.mrb[3].mxu0 }
 0x1a6   :  { %v1329_v35 = vmax.f32 %v1297_v32, 0.0  ;;  %v1259_v36 = vmax.f32 %v1073_v33, %v1075_v34 }
 0x1a8   :  { %1361 = vst [vmem:[#allocation3] sm:$0xff] %v1329_v35  ;;  %v1298_v37 = vadd.f32 %v5343_v30, %v1259_v36  ;;  %v3912_v36 = vpack.c.bf16 %v2032_v25, %v2030_v24 }
 0x1aa   :  { %v1330_v38 = vmax.f32 %v1298_v37, 0.0  ;;  %v1079_v39 = vpop.f32.mrb[4].mxu0 }
 0x1ab   :  { %v1081_v40 = vpop.f32.mrb[5].mxu0 }
 0x1ac   :  { %1362 = vst [vmem:[#allocation3 + $0x8] sm:$0xff] %v1330_v38  ;;  %v1260_v43 = vmax.f32 %v1079_v39, %v1081_v40  ;;  %v3914_v39 = vpack.c.bf16 %v2037_v31, %v2035_v26  ;;  %v2034_v40 = vld [vmem:[#allocation6 + $0x280] sm:$0xff]  ;;  %v2056_v31 = vld [vmem:[#allocation6 + $0x330] sm:$0xff] }
 0x1ae   :  { %v1299_v45 = vadd.f32 %v5343_v30, %v1260_v43 }
 0x1af   :  { %v1085_v46 = vpop.f32.mrb[6].mxu0 }
 0x1b0   :  { %v1331_v47 = vmax.f32 %v1299_v45, 0.0  ;;  %v1087_v48 = vpop.f32.mrb[7].mxu0  ;;  %v2041_v45 = vld [vmem:[#allocation6 + $0x2b8] sm:$0xff] }
 0x1b1   :  { %v1261_v49 = vmax.f32 %v1085_v46, %v1087_v48 }
 0x1b2   :  { %1363 = vst [vmem:[#allocation3 + $0x10] sm:$0xff] %v1331_v47  ;;  %v3916_v47 = vpack.c.bf16 %v2036_v41, %v2034_v40 }
 0x1b3   :  { %v1300_v50 = vadd.f32 %v5343_v30, %v1261_v49  ;;  %v1395_v58 = vld [vmem:[#allocation3] ss:$2 sm:$0xff]  ;;  %v1427_v59 = vld [vmem:[#allocation3 + $0x1] ss:$2 sm:$0xff]  ;;  %v3918_v49 = vpack.c.bf16 %v2041_v45, %v2039_v44 }
 0x1b4   :  { %v1458_v3 = vmax.f32 %v1395_v58, %v1427_v59  ;;  %v2042_v59 = vld [vmem:[#allocation6 + $0x2c0] sm:$0xff] }
 0x1b5   :  { %v1332_v51 = vmax.f32 %v1300_v50, 0.0  ;;  %v2038_v50 = vld [vmem:[#allocation6 + $0x2a0] sm:$0xff]  ;;  %v3924_v6 = vpack.c.bf16 %v2044_v60, %v2042_v59  ;;  %v2069_v59 = vld [vmem:[#allocation6 + $0x398] sm:$0xff] }
 0x1b6   :  { %v1091_v52 = vpop.f32.mrb[8].mxu0  ;;  %v2058_v45 = vld [vmem:[#allocation6 + $0x340] sm:$0xff] }
 0x1b7   :  { %1364 = vst [vmem:[#allocation3 + $0x18] sm:$0xff] %v1332_v51  ;;  %v1093_v53 = vpop.f32.mrb[9].mxu0  ;;  %v2040_v51 = vld [vmem:[#allocation6 + $0x2b0] sm:$0xff] }
 0x1b8   :  { %v1262_v57 = vmax.f32 %v1091_v52, %v1093_v53  ;;  %v2043_v52 = vld [vmem:[#allocation6 + $0x2c8] sm:$0xff]  ;;  %v2045_v53 = vld [vmem:[#allocation6 + $0x2d8] sm:$0xff]  ;;  %v3920_v56 = vpack.c.bf16 %v2040_v51, %v2038_v50 }
 0x1b9   :  { %v1491_v61 = vld [vmem:[#allocation3 + $0x2] ss:$2 sm:$0xff]  ;;  %v1523_v62 = vld [vmem:[#allocation3 + $0x3] ss:$2 sm:$0xff]  ;;  %v3922_v58 = vpack.c.bf16 %v2045_v53, %v2043_v52 }
 0x1ba   :  { %v1301_v63 = vadd.f32 %v5343_v30, %v1262_v57  ;;  %v1554_v0 = vmax.f32 %v1491_v61, %v1523_v62  ;;  %v2047_v61 = vld [vmem:[#allocation6 + $0x2e8] sm:$0xff]  ;;  %v2065_v51 = vld [vmem:[#allocation6 + $0x378] sm:$0xff] }
 0x1bb   :  { %v1097_v2 = vpop.f32.mrb[10].mxu0  ;;  %v2063_v50 = vld [vmem:[#allocation6 + $0x368] sm:$0xff] }
 0x1bc   :  { %v1333_v7 = vmax.f32 %v1301_v63, 0.0  ;;  %v1099_v8 = vpop.f32.mrb[11].mxu0  ;;  %2178 = vmatprep.mubr.f32.mxu1 %v1554_v0 }
 0x1bd   :  { %v1263_v11 = vmax.f32 %v1097_v2, %v1099_v8  ;;  %2179 = vmatmul.mubr.f32.vlgmr.msra.gmra.mrb[0].mxu1 %v1458_v3 }
 0x1be   :  { %1365 = vst [vmem:[#allocation3 + $0x20] sm:$0xff] %v1333_v7  ;;  %3901 = vmatpush1.bf16.msra.mxu1 %v3900_v1  ;;  %v1397_v28 = vld [vmem:[#allocation3 + $0x10] ss:$2 sm:$0xff]  ;;  %v1429_v29 = vld [vmem:[#allocation3 + $0x11] ss:$2 sm:$0xff]  ;;  %v2049_v1 = vld [vmem:[#allocation6 + $0x2f8] sm:$0xff] }
 0x1bf   :  { %v1302_v13 = vadd.f32 %v5343_v30, %v1263_v11  ;;  %3903 = vmatprep.subr.bf16.mxu1 %v3902_v4  ;;  %v1459_v38 = vmax.f32 %v1397_v28, %v1429_v29  ;;  %v3926_v9 = vpack.c.bf16 %v2049_v1, %v2047_v61  ;;  %v2048_v11 = vld [vmem:[#allocation6 + $0x2f0] sm:$0xff]  ;;  %v2054_v29 = vld [vmem:[#allocation6 + $0x320] sm:$0xff] }
 0x1c0   :  { %v3928_v17 = vpack.c.bf16 %v2048_v11, %v2046_v10  ;;  %v3936_v41 = vpack.c.bf16 %v2056_v31, %v2054_v29  ;;  %v2066_v1 = vld [vmem:[#allocation6 + $0x380] sm:$0xff]  ;;  %v2081_v29 = vld [vmem:[#allocation6 + $0x3f8] sm:$0xff] }
 0x1c1   :  { %v1334_v19 = vmax.f32 %v1302_v13, 0.0 }
 0x1c2   :  { %v1103_v20 = vpop.f32.mrb[12].mxu0  ;;  %3905 = vmatpush1.bf16.msra.mxu1 %v3904_v12 }
 0x1c3   :  { %1366 = vst [vmem:[#allocation3 + $0x28] sm:$0xff] %v1334_v19  ;;  %v1105_v22 = vpop.f32.mrb[13].mxu0  ;;  %3907 = vmatprep.subr.bf16.mxu1 %v3906_v14  ;;  %v2051_v14 = vld [vmem:[#allocation6 + $0x308] sm:$0xff] }
 0x1c4   :  { %v1264_v27 = vmax.f32 %v1103_v20, %v1105_v22  ;;  %v3930_v19 = vpack.c.bf16 %v2053_v15, %v2051_v14  ;;  %v2050_v20 = vld [vmem:[#allocation6 + $0x300] sm:$0xff]  ;;  %v2055_v22 = vld [vmem:[#allocation6 + $0x328] sm:$0xff] }
 0x1c5   :  { %v1493_v32 = vld [vmem:[#allocation3 + $0x12] ss:$2 sm:$0xff]  ;;  %v1525_v33 = vld [vmem:[#allocation3 + $0x13] ss:$2 sm:$0xff] }
 0x1c6   :  { %v1303_v34 = vadd.f32 %v5343_v30, %v1264_v27  ;;  %v1555_v35 = vmax.f32 %v1493_v32, %v1525_v33  ;;  %3909 = vmatpush1.bf16.msra.mxu1 %v3908_v21  ;;  %v2052_v21 = vld [vmem:[#allocation6 + $0x310] sm:$0xff]  ;;  %v2059_v32 = vld [vmem:[#allocation6 + $0x348] sm:$0xff] }
 0x1c7   :  { %v1109_v37 = vpop.f32.mrb[14].mxu0  ;;  %3911 = vmatprep.subr.bf16.mxu1 %v3910_v23  ;;  %v2057_v23 = vld [vmem:[#allocation6 + $0x338] sm:$0xff]  ;;  %v3932_v26 = vpack.c.bf16 %v2052_v21, %v2050_v20  ;;  %v2075_v20 = vld [vmem:[#allocation6 + $0x3c8] sm:$0xff] }
 0x1c8   :  { %v1335_v42 = vmax.f32 %v1303_v34, 0.0  ;;  %v1111_v43 = vpop.f32.mrb[15].mxu0  ;;  %2184 = vmatprep.mubr.f32.mxu1 %v1555_v35  ;;  %v3934_v28 = vpack.c.bf16 %v2057_v23, %v2055_v22  ;;  %v2077_v21 = vld [vmem:[#allocation6 + $0x3d8] sm:$0xff] }
 0x1c9   :  { %v1265_v46 = vmax.f32 %v1109_v37, %v1111_v43  ;;  %2185 = vmatmul.mubr.f32.gmra.mrb[2].mxu1 %v1459_v38 }
 0x1ca   :  { %1367 = vst [vmem:[#allocation3 + $0x30] sm:$0xff] %v1335_v42  ;;  %3913 = vmatpush1.bf16.msra.mxu1 %v3912_v36  ;;  %v1399_v63 = vld [vmem:[#allocation3 + $0x20] ss:$2 sm:$0xff]  ;;  %v1431_v0 = vld [vmem:[#allocation3 + $0x21] ss:$2 sm:$0xff] }
 0x1cb   :  { %v1304_v48 = vadd.f32 %v5343_v30, %v1265_v46  ;;  %3915 = vmatprep.subr.bf16.mxu1 %v3914_v39  ;;  %v1460_v8 = vmax.f32 %v1399_v63, %v1431_v0  ;;  %v2061_v36 = vld [vmem:[#allocation6 + $0x358] sm:$0xff]  ;;  %v2060_v46 = vld [vmem:[#allocation6 + $0x350] sm:$0xff] }
 0x1cc   :  { %v3938_v44 = vpack.c.bf16 %v2061_v36, %v2059_v32  ;;  %v3940_v53 = vpack.c.bf16 %v2060_v46, %v2058_v45  ;;  %v2078_v36 = vld [vmem:[#allocation6 + $0x3e0] sm:$0xff] }
 0x1cd   :  { %v1336_v54 = vmax.f32 %v1304_v48, 0.0 }
 0x1ce   :  { %v1115_v55 = vpop.f32.mrb[16].mxu0  ;;  %3917 = vmatpush1.bf16.msra.mxu1 %v3916_v47  ;;  %v4346_v47 = vmov 0.0  }
 0x1cf   :  { %1368 = vst [vmem:[#allocation3 + $0x38] sm:$0xff] %v1336_v54  ;;  %v1117_v57 = vpop.f32.mrb[17].mxu0  ;;  %3919 = vmatprep.subr.bf16.mxu1 %v3918_v49  ;;  %1393 = vst [vmem:[#allocation3 + $0xfc] sm:$0xff] %v4346_v47 }
 0x1d0   :  { %v1266_v62 = vmax.f32 %v1115_v55, %v1117_v57  ;;  %1394 = vst [vmem:[#allocation3 + $0x104] sm:$0xf] %v4346_v47  ;;  %v3942_v55 = vpack.c.bf16 %v2065_v51, %v2063_v50  ;;  %v2064_v57 = vld [vmem:[#allocation6 + $0x370] sm:$0xff] }
 0x1d1   :  { %v1495_v2 = vld [vmem:[#allocation3 + $0x22] ss:$2 sm:$0xff]  ;;  %v1527_v3 = vld [vmem:[#allocation3 + $0x23] ss:$2 sm:$0xff] }
 0x1d2   :  { %v1305_v4 = vadd.f32 %v5343_v30, %v1266_v62  ;;  %v1556_v5 = vmax.f32 %v1495_v2, %v1527_v3  ;;  %3921 = vmatpush1.bf16.msra.mxu1 %v3920_v56  ;;  %v2062_v56 = vld [vmem:[#allocation6 + $0x360] sm:$0xff]  ;;  %v2068_v2 = vld [vmem:[#allocation6 + $0x390] sm:$0xff]  ;;  %v2071_v3 = vld [vmem:[#allocation6 + $0x3a8] sm:$0xff] }
 0x1d3   :  { %v1121_v7 = vpop.f32.mrb[18].mxu0  ;;  %3923 = vmatprep.subr.bf16.mxu1 %v3922_v58  ;;  %v2067_v58 = vld [vmem:[#allocation6 + $0x388] sm:$0xff]  ;;  %v3944_v62 = vpack.c.bf16 %v2064_v57, %v2062_v56 }
 0x1d4   :  { %v1337_v12 = vmax.f32 %v1305_v4, 0.0  ;;  %v1123_v13 = vpop.f32.mrb[19].mxu0  ;;  %2190 = vmatprep.mubr.f32.mxu1 %v1556_v5  ;;  %v3946_v0 = vpack.c.bf16 %v2069_v59, %v2067_v58 }
 0x1d5   :  { %v1267_v16 = vmax.f32 %v1121_v7, %v1123_v13  ;;  %2191 = vmatmul.mubr.f32.gmra.mrb[4].mxu1 %v1460_v8  ;;  %v2073_v7 = vld [vmem:[#allocation6 + $0x3b8] sm:$0xff] }
 0x1d6   :  { %1369 = vst [vmem:[#allocation3 + $0x40] sm:$0xff] %v1337_v12  ;;  %3925 = vmatpush1.bf16.msra.mxu1 %v3924_v6  ;;  %v1401_v34 = vld [vmem:[#allocation3 + $0x30] ss:$2 sm:$0xff]  ;;  %v1433_v35 = vld [vmem:[#allocation3 + $0x31] ss:$2 sm:$0xff]  ;;  %v3948_v12 = vpack.c.bf16 %v2068_v2, %v2066_v1  ;;  %v3950_v15 = vpack.c.bf16 %v2073_v7, %v2071_v3 }
 0x1d7   :  { %v1306_v18 = vadd.f32 %v5343_v30, %v1267_v16  ;;  %3927 = vmatprep.subr.bf16.mxu1 %v3926_v9  ;;  %v1461_v43 = vmax.f32 %v1401_v34, %v1433_v35  ;;  %v2070_v16 = vld [vmem:[#allocation6 + $0x3a0] sm:$0xff] }
 0x1d9   :  { %v1338_v24 = vmax.f32 %v1306_v18, 0.0 }
 0x1da   :  { %v1127_v25 = vpop.f32.mrb[20].mxu0  ;;  %3929 = vmatpush1.bf16.msra.mxu1 %v3928_v17  ;;  %v2072_v17 = vld [vmem:[#allocation6 + $0x3b0] sm:$0xff] }
 0x1db   :  { %1370 = vst [vmem:[#allocation3 + $0x48] sm:$0xff] %v1338_v24  ;;  %v1129_v27 = vpop.f32.mrb[21].mxu0  ;;  %3931 = vmatprep.subr.bf16.mxu1 %v3930_v19  ;;  %v3952_v23 = vpack.c.bf16 %v2072_v17, %v2070_v16 }
 0x1dc   :  { %v1268_v33 = vmax.f32 %v1127_v25, %v1129_v27  ;;  %v3954_v25 = vpack.c.bf16 %v2077_v21, %v2075_v20  ;;  %v2076_v27 = vld [vmem:[#allocation6 + $0x3d0] sm:$0xff] }
 0x1dd   :  { %v1497_v37 = vld [vmem:[#allocation3 + $0x32] ss:$2 sm:$0xff]  ;;  %v1529_v38 = vld [vmem:[#allocation3 + $0x33] ss:$2 sm:$0xff] }
 0x1de   :  { %v1307_v39 = vadd.f32 %v5343_v30, %v1268_v33  ;;  %v1557_v40 = vmax.f32 %v1497_v37, %v1529_v38  ;;  %3933 = vmatpush1.bf16.msra.mxu1 %v3932_v26  ;;  %v2074_v26 = vld [vmem:[#allocation6 + $0x3c0] sm:$0xff]  ;;  %v2080_v37 = vld [vmem:[#allocation6 + $0x3f0] sm:$0xff]  ;;  %v2083_v38 = vld [vmem:[#allocation6 + $0x408] sm:$0xff] }
 0x1df   :  { %v1133_v42 = vpop.f32.mrb[22].mxu0  ;;  %3935 = vmatprep.subr.bf16.mxu1 %v3934_v28  ;;  %v2079_v28 = vld [vmem:[#allocation6 + $0x3e8] sm:$0xff]  ;;  %v3956_v33 = vpack.c.bf16 %v2076_v27, %v2074_v26 }
 0x1e0   :  { %v1339_v48 = vmax.f32 %v1307_v39, 0.0  ;;  %v1135_v49 = vpop.f32.mrb[23].mxu0  ;;  %2196 = vmatprep.mubr.f32.mxu1 %v1557_v40  ;;  %v3958_v35 = vpack.c.bf16 %v2081_v29, %v2079_v28 }
 0x1e1   :  { %v1269_v52 = vmax.f32 %v1133_v42, %v1135_v49  ;;  %2197 = vmatmul.mubr.f32.gmra.mrb[6].mxu1 %v1461_v43  ;;  %v2085_v42 = vld [vmem:[#allocation6 + $0x418] sm:$0xff] }
 0x1e2   :  { %1371 = vst [vmem:[#allocation3 + $0x50] sm:$0xff] %v1339_v48  ;;  %3937 = vmatpush1.bf16.msra.mxu1 %v3936_v41  ;;  %v1403_v5 = vld [vmem:[#allocation3 + $0x40] ss:$2 sm:$0xff]  ;;  %v1435_v6 = vld [vmem:[#allocation3 + $0x41] ss:$2 sm:$0xff]  ;;  %v3960_v48 = vpack.c.bf16 %v2080_v37, %v2078_v36  ;;  %v3962_v51 = vpack.c.bf16 %v2085_v42, %v2083_v38 }
 0x1e3   :  { %v1308_v54 = vadd.f32 %v5343_v30, %v1269_v52  ;;  %3939 = vmatprep.subr.bf16.mxu1 %v3938_v44  ;;  %v1462_v14 = vmax.f32 %v1403_v5, %v1435_v6 }
 0x1e5   :  { %v1340_v60 = vmax.f32 %v1308_v54, 0.0 }
 0x1e6   :  { %v1139_v61 = vpop.f32.mrb[24].mxu0  ;;  %3941 = vmatpush1.bf16.msra.mxu1 %v3940_v53 }
 0x1e7   :  { %1372 = vst [vmem:[#allocation3 + $0x58] sm:$0xff] %v1340_v60  ;;  %v1141_v63 = vpop.f32.mrb[25].mxu0  ;;  %3943 = vmatprep.subr.bf16.mxu1 %v3942_v55 }
 0x1e8   :  { %v1270_v4 = vmax.f32 %v1139_v61, %v1141_v63 }
 0x1e9   :  { %v1499_v8 = vld [vmem:[#allocation3 + $0x42] ss:$2 sm:$0xff]  ;;  %v1531_v9 = vld [vmem:[#allocation3 + $0x43] ss:$2 sm:$0xff] }
 0x1ea   :  { %v1309_v10 = vadd.f32 %v5343_v30, %v1270_v4  ;;  %v1558_v11 = vmax.f32 %v1499_v8, %v1531_v9  ;;  %3945 = vmatpush1.bf16.msra.mxu1 %v3944_v62 }
 0x1eb   :  { %v1145_v13 = vpop.f32.mrb[26].mxu0  ;;  %3947 = vmatprep.subr.bf16.mxu1 %v3946_v0 }
 0x1ec   :  { %v1341_v18 = vmax.f32 %v1309_v10, 0.0  ;;  %v1147_v19 = vpop.f32.mrb[27].mxu0  ;;  %2202 = vmatprep.mubr.f32.mxu1 %v1558_v11 }
 0x1ed   :  { %v1271_v22 = vmax.f32 %v1145_v13, %v1147_v19  ;;  %2203 = vmatmul.mubr.f32.gmra.mrb[8].mxu1 %v1462_v14 }
 0x1ee   :  { %1373 = vst [vmem:[#allocation3 + $0x60] sm:$0xff] %v1341_v18  ;;  %3949 = vmatpush1.bf16.msra.mxu1 %v3948_v12  ;;  %v1405_v40 = vld [vmem:[#allocation3 + $0x50] ss:$2 sm:$0xff]  ;;  %v1437_v41 = vld [vmem:[#allocation3 + $0x51] ss:$2 sm:$0xff] }
 0x1ef   :  { %v1310_v24 = vadd.f32 %v5343_v30, %v1271_v22  ;;  %3951 = vmatprep.subr.bf16.mxu1 %v3950_v15  ;;  %v1463_v50 = vmax.f32 %v1405_v40, %v1437_v41 }
 0x1f1   :  { %v1342_v31 = vmax.f32 %v1310_v24, 0.0 }
 0x1f2   :  { %v1151_v32 = vpop.f32.mrb[28].mxu0  ;;  %3953 = vmatpush1.bf16.msra.mxu1 %v3952_v23 }
 0x1f3   :  { %1374 = vst [vmem:[#allocation3 + $0x68] sm:$0xff] %v1342_v31  ;;  %v1153_v34 = vpop.f32.mrb[29].mxu0  ;;  %3955 = vmatprep.subr.bf16.mxu1 %v3954_v25 }
 0x1f4   :  { %v1272_v39 = vmax.f32 %v1151_v32, %v1153_v34 }
 0x1f5   :  { %v1501_v43 = vld [vmem:[#allocation3 + $0x52] ss:$2 sm:$0xff]  ;;  %v1533_v44 = vld [vmem:[#allocation3 + $0x53] ss:$2 sm:$0xff] }
 0x1f6   :  { %v1311_v45 = vadd.f32 %v5343_v30, %v1272_v39  ;;  %v1559_v46 = vmax.f32 %v1501_v43, %v1533_v44  ;;  %3957 = vmatpush1.bf16.msra.mxu1 %v3956_v33 }
 0x1f7   :  { %v1157_v49 = vpop.f32.mrb[30].mxu0  ;;  %3959 = vmatprep.subr.bf16.mxu1 %v3958_v35 }
 0x1f8   :  { %v1343_v52 = vmax.f32 %v1311_v45, 0.0  ;;  %v1159_v53 = vpop.f32.mrb[31].mxu0  ;;  %2208 = vmatprep.mubr.f32.mxu1 %v1559_v46 }
 0x1f9   :  { %v1273_v54 = vmax.f32 %v1157_v49, %v1159_v53  ;;  %2209 = vmatmul.mubr.f32.gmra.mrb[10].mxu1 %v1463_v50 }
 0x1fa   :  { %1375 = vst [vmem:[#allocation3 + $0x70] sm:$0xff] %v1343_v52  ;;  %3961 = vmatpush1.bf16.msra.mxu1 %v3960_v48  ;;  %v1407_v60 = vld [vmem:[#allocation3 + $0x60] ss:$2 sm:$0xff]  ;;  %v1439_v61 = vld [vmem:[#allocation3 + $0x61] ss:$2 sm:$0xff] }
 0x1fb   :  { %v1312_v55 = vadd.f32 %v5343_v30, %v1273_v54  ;;  %3963 = vmatprep.subr.bf16.mxu1 %v3962_v51  ;;  %v1464_v3 = vmax.f32 %v1407_v60, %v1439_v61 }
 0x1fd   :  { %v1344_v56 = vmax.f32 %v1312_v55, 0.0 }
 0x1fe   :  { %v1163_v57 = vpop.f32.mrb[32].mxu0 }
 0x1ff   :  { %1376 = vst [vmem:[#allocation3 + $0x78] sm:$0xff] %v1344_v56  ;;  %v1165_v58 = vpop.f32.mrb[33].mxu0 }
 0x200   :  { %v1274_v59 = vmax.f32 %v1163_v57, %v1165_v58 }
 0x201   :  { %v1503_v62 = vld [vmem:[#allocation3 + $0x62] ss:$2 sm:$0xff]  ;;  %v1535_v63 = vld [vmem:[#allocation3 + $0x63] ss:$2 sm:$0xff] }
 0x202   :  { %v1313_v0 = vadd.f32 %v5343_v30, %v1274_v59  ;;  %v1560_v1 = vmax.f32 %v1503_v62, %v1535_v63 }
 0x203   :  { %v1169_v2 = vpop.f32.mrb[34].mxu0 }
 0x204   :  { %v1345_v4 = vmax.f32 %v1313_v0, 0.0  ;;  %v1171_v5 = vpop.f32.mrb[35].mxu0  ;;  %2214 = vmatprep.mubr.f32.mxu1 %v1560_v1 }
 0x205   :  { %v1275_v6 = vmax.f32 %v1169_v2, %v1171_v5  ;;  %2215 = vmatmul.mubr.f32.gmra.mrb[12].mxu1 %v1464_v3 }
 0x206   :  { %1377 = vst [vmem:[#allocation3 + $0x80] sm:$0xff] %v1345_v4  ;;  %v1409_v12 = vld [vmem:[#allocation3 + $0x70] ss:$2 sm:$0xff]  ;;  %v1441_v13 = vld [vmem:[#allocation3 + $0x71] ss:$2 sm:$0xff] }
 0x207   :  { %v1314_v7 = vadd.f32 %v5343_v30, %v1275_v6  ;;  %v1465_v19 = vmax.f32 %v1409_v12, %v1441_v13 }
 0x209   :  { %v1346_v8 = vmax.f32 %v1314_v7, 0.0 }
 0x20a   :  { %v1175_v9 = vpop.f32.mrb[36].mxu0 }
 0x20b   :  { %1378 = vst [vmem:[#allocation3 + $0x88] sm:$0xff] %v1346_v8  ;;  %v1177_v10 = vpop.f32.mrb[37].mxu0 }
 0x20c   :  { %v1276_v11 = vmax.f32 %v1175_v9, %v1177_v10 }
 0x20d   :  { %v1505_v14 = vld [vmem:[#allocation3 + $0x72] ss:$2 sm:$0xff]  ;;  %v1537_v15 = vld [vmem:[#allocation3 + $0x73] ss:$2 sm:$0xff] }
 0x20e   :  { %v1315_v16 = vadd.f32 %v5343_v30, %v1276_v11  ;;  %v1561_v17 = vmax.f32 %v1505_v14, %v1537_v15 }
 0x20f   :  { %v1181_v18 = vpop.f32.mrb[38].mxu0 }
 0x210   :  { %v1347_v20 = vmax.f32 %v1315_v16, 0.0  ;;  %v1183_v21 = vpop.f32.mrb[39].mxu0  ;;  %2220 = vmatprep.mubr.f32.mxu1 %v1561_v17 }
 0x211   :  { %v1277_v22 = vmax.f32 %v1181_v18, %v1183_v21  ;;  %2221 = vmatmul.mubr.f32.gmra.mrb[14].mxu1 %v1465_v19 }
 0x212   :  { %1379 = vst [vmem:[#allocation3 + $0x90] sm:$0xff] %v1347_v20  ;;  %v1411_v28 = vld [vmem:[#allocation3 + $0x80] ss:$2 sm:$0xff]  ;;  %v1443_v29 = vld [vmem:[#allocation3 + $0x81] ss:$2 sm:$0xff] }
 0x213   :  { %v1316_v23 = vadd.f32 %v5343_v30, %v1277_v22  ;;  %v1466_v36 = vmax.f32 %v1411_v28, %v1443_v29 }
 0x215   :  { %v1348_v24 = vmax.f32 %v1316_v23, 0.0 }
 0x216   :  { %v1187_v25 = vpop.f32.mrb[40].mxu0 }
 0x217   :  { %1380 = vst [vmem:[#allocation3 + $0x98] sm:$0xff] %v1348_v24  ;;  %v1189_v26 = vpop.f32.mrb[41].mxu0 }
 0x218   :  { %v1278_v27 = vmax.f32 %v1187_v25, %v1189_v26 }
 0x219   :  { %v1507_v31 = vld [vmem:[#allocation3 + $0x82] ss:$2 sm:$0xff]  ;;  %v1539_v32 = vld [vmem:[#allocation3 + $0x83] ss:$2 sm:$0xff] }
 0x21a   :  { %v1317_v33 = vadd.f32 %v5343_v30, %v1278_v27  ;;  %v1562_v34 = vmax.f32 %v1507_v31, %v1539_v32 }
 0x21b   :  { %v1193_v35 = vpop.f32.mrb[42].mxu0 }
 0x21c   :  { %v1349_v37 = vmax.f32 %v1317_v33, 0.0  ;;  %v1195_v38 = vpop.f32.mrb[43].mxu0  ;;  %2226 = vmatprep.mubr.f32.mxu1 %v1562_v34 }
 0x21d   :  { %v1279_v39 = vmax.f32 %v1193_v35, %v1195_v38  ;;  %2227 = vmatmul.mubr.f32.gmra.mrb[16].mxu1 %v1466_v36 }
 0x21e   :  { %1381 = vst [vmem:[#allocation3 + $0xa0] sm:$0xff] %v1349_v37  ;;  %v1413_v45 = vld [vmem:[#allocation3 + $0x90] ss:$2 sm:$0xff]  ;;  %v1445_v46 = vld [vmem:[#allocation3 + $0x91] ss:$2 sm:$0xff] }
 0x21f   :  { %v1318_v40 = vadd.f32 %v5343_v30, %v1279_v39  ;;  %v1467_v53 = vmax.f32 %v1413_v45, %v1445_v46 }
 0x221   :  { %v1350_v41 = vmax.f32 %v1318_v40, 0.0 }
 0x222   :  { %v1199_v42 = vpop.f32.mrb[44].mxu0 }
 0x223   :  { %1382 = vst [vmem:[#allocation3 + $0xa8] sm:$0xff] %v1350_v41  ;;  %v1201_v43 = vpop.f32.mrb[45].mxu0 }
 0x224   :  { %v1280_v44 = vmax.f32 %v1199_v42, %v1201_v43 }
 0x225   :  { %v1509_v48 = vld [vmem:[#allocation3 + $0x92] ss:$2 sm:$0xff]  ;;  %v1541_v49 = vld [vmem:[#allocation3 + $0x93] ss:$2 sm:$0xff] }
 0x226   :  { %v1319_v50 = vadd.f32 %v5343_v30, %v1280_v44  ;;  %v1563_v51 = vmax.f32 %v1509_v48, %v1541_v49 }
 0x227   :  { %v1205_v52 = vpop.f32.mrb[46].mxu0 }
 0x228   :  { %v1351_v54 = vmax.f32 %v1319_v50, 0.0  ;;  %v1207_v55 = vpop.f32.mrb[47].mxu0  ;;  %2232 = vmatprep.mubr.f32.mxu1 %v1563_v51 }
 0x229   :  { %v1281_v56 = vmax.f32 %v1205_v52, %v1207_v55  ;;  %2233 = vmatmul.mubr.f32.gmra.mrb[18].mxu1 %v1467_v53 }
 0x22a   :  { %1383 = vst [vmem:[#allocation3 + $0xb0] sm:$0xff] %v1351_v54  ;;  %v1415_v62 = vld [vmem:[#allocation3 + $0xa0] ss:$2 sm:$0xff]  ;;  %v1447_v63 = vld [vmem:[#allocation3 + $0xa1] ss:$2 sm:$0xff] }
 0x22b   :  { %v1320_v57 = vadd.f32 %v5343_v30, %v1281_v56  ;;  %v1468_v5 = vmax.f32 %v1415_v62, %v1447_v63 }
 0x22d   :  { %v1352_v58 = vmax.f32 %v1320_v57, 0.0 }
 0x22e   :  { %v1211_v59 = vpop.f32.mrb[48].mxu0 }
 0x22f   :  { %1384 = vst [vmem:[#allocation3 + $0xb8] sm:$0xff] %v1352_v58  ;;  %v1213_v60 = vpop.f32.mrb[49].mxu0 }
 0x230   :  { %v1282_v61 = vmax.f32 %v1211_v59, %v1213_v60 }
 0x231   :  { %v1511_v0 = vld [vmem:[#allocation3 + $0xa2] ss:$2 sm:$0xff]  ;;  %v1543_v1 = vld [vmem:[#allocation3 + $0xa3] ss:$2 sm:$0xff] }
 0x232   :  { %v1321_v2 = vadd.f32 %v5343_v30, %v1282_v61  ;;  %v1564_v3 = vmax.f32 %v1511_v0, %v1543_v1 }
 0x233   :  { %v1217_v4 = vpop.f32.mrb[50].mxu0 }
 0x234   :  { %v1353_v6 = vmax.f32 %v1321_v2, 0.0  ;;  %v1219_v7 = vpop.f32.mrb[51].mxu0  ;;  %2238 = vmatprep.mubr.f32.mxu1 %v1564_v3  ;;  %v1683_v3 = vld [vmem:[#allocation3 + $0x6] ss:$2 sm:$0xff] }
 0x235   :  { %v1283_v8 = vmax.f32 %v1217_v4, %v1219_v7  ;;  %2239 = vmatmul.mubr.f32.gmra.mrb[20].mxu1 %v1468_v5  ;;  %v1715_v4 = vld [vmem:[#allocation3 + $0x7] ss:$2 sm:$0xff] }
 0x236   :  { %1385 = vst [vmem:[#allocation3 + $0xc0] sm:$0xff] %v1353_v6  ;;  %v1417_v14 = vld [vmem:[#allocation3 + $0xb0] ss:$2 sm:$0xff]  ;;  %v1449_v15 = vld [vmem:[#allocation3 + $0xb1] ss:$2 sm:$0xff] }
 0x237   :  { %v1322_v9 = vadd.f32 %v5343_v30, %v1283_v8  ;;  %v1469_v21 = vmax.f32 %v1417_v14, %v1449_v15  ;;  %v1685_v14 = vld [vmem:[#allocation3 + $0x16] ss:$2 sm:$0xff]  ;;  %v1746_v15 = vmax.f32 %v1683_v3, %v1715_v4  ;;  %v1691_v4 = vld [vmem:[#allocation3 + $0x46] ss:$2 sm:$0xff] }
 0x239   :  { %v1354_v10 = vmax.f32 %v1322_v9, 0.0 }
 0x23a   :  { %v1223_v11 = vpop.f32.mrb[52].mxu0 }
 0x23b   :  { %1386 = vst [vmem:[#allocation3 + $0xc8] sm:$0xff] %v1354_v10  ;;  %v1225_v12 = vpop.f32.mrb[53].mxu0  ;;  %v1587_v10 = vld [vmem:[#allocation3 + $0x4] ss:$2 sm:$0xff] }
 0x23c   :  { %v1284_v13 = vmax.f32 %v1223_v11, %v1225_v12  ;;  %v1619_v11 = vld [vmem:[#allocation3 + $0x5] ss:$2 sm:$0xff] }
 0x23d   :  { %v1513_v16 = vld [vmem:[#allocation3 + $0xb2] ss:$2 sm:$0xff]  ;;  %v1545_v17 = vld [vmem:[#allocation3 + $0xb3] ss:$2 sm:$0xff]  ;;  %v2082_v12 = vld [vmem:[#allocation6 + $0x400] sm:$0xff] }
 0x23e   :  { %v1323_v18 = vadd.f32 %v5343_v30, %v1284_v13  ;;  %v1565_v19 = vmax.f32 %v1513_v16, %v1545_v17  ;;  %v2084_v13 = vld [vmem:[#allocation6 + $0x410] sm:$0xff]  ;;  %v2087_v17 = vld [vmem:[#allocation6 + $0x428] sm:$0xff] }
 0x23f   :  { %v1229_v20 = vpop.f32.mrb[54].mxu0  ;;  %v1717_v16 = vld [vmem:[#allocation3 + $0x17] ss:$2 sm:$0xff] }
 0x240   :  { %v1355_v22 = vmax.f32 %v1323_v18, 0.0  ;;  %v1231_v23 = vpop.f32.mrb[55].mxu0  ;;  %2244 = vmatprep.mubr.f32.mxu1 %v1565_v19  ;;  %v2089_v18 = vld [vmem:[#allocation6 + $0x438] sm:$0xff]  ;;  %v2718_v19 = vld [vmem:[#allocation8 + $0x80] sm:$0xff] }
 0x241   :  { %v1285_v24 = vmax.f32 %v1229_v20, %v1231_v23  ;;  %2245 = vmatmul.mubr.f32.gmra.mrb[22].mxu1 %v1469_v21  ;;  %v2719_v20 = vld [vmem:[#allocation8 + $0x88] sm:$0xff]  ;;  %v2720_v21 = vld [vmem:[#allocation8 + $0x90] sm:$0xff] }
 0x242   :  { %1387 = vst [vmem:[#allocation3 + $0xd0] sm:$0xff] %v1355_v22  ;;  %v1419_v31 = vld [vmem:[#allocation3 + $0xc0] ss:$2 sm:$0xff]  ;;  %v1451_v32 = vld [vmem:[#allocation3 + $0xc1] ss:$2 sm:$0xff]  ;;  %v3964_v22 = vpack.c.bf16 %v2084_v13, %v2082_v12  ;;  %v2103_v13 = vld [vmem:[#allocation6 + $0x4a8] sm:$0xff] }
 0x243   :  { %v1324_v25 = vadd.f32 %v5343_v30, %v1285_v24  ;;  %v1470_v38 = vmax.f32 %v1419_v31, %v1451_v32  ;;  %v1589_v23 = vld [vmem:[#allocation3 + $0x14] ss:$2 sm:$0xff]  ;;  %v4347_v24 = vmov 0.0|0.0   ;;  %v2086_v31 = vld [vmem:[#allocation6 + $0x420] sm:$0xff] }
 0x244   :  { %3994 = vmatprep.subr.bf16.mxu0 %v4347_v24  ;;  %v2088_v32 = vld [vmem:[#allocation6 + $0x430] sm:$0xff]  ;;  %v1627_v12 = vld [vmem:[#allocation3 + $0x45] ss:$2 sm:$0xff] }
 0x245   :  { %v1356_v26 = vmax.f32 %v1324_v25, 0.0  ;;  %v3995_v25 = vpack.c.bf16 %v2719_v20, %v2718_v19  ;;  %v1597_v19 = vld [vmem:[#allocation3 + $0x54] ss:$2 sm:$0xff] }
 0x246   :  { %v1235_v27 = vpop.f32.mrb[56].mxu0 }
 0x247   :  { %1388 = vst [vmem:[#allocation3 + $0xd8] sm:$0xff] %v1356_v26  ;;  %v1237_v28 = vpop.f32.mrb[57].mxu0  ;;  %v2721_v26 = vld [vmem:[#allocation8 + $0x98] sm:$0xff]  ;;  %3996 = vmatpush3.bf16.msra.mxu0 %v3995_v25 }
 0x248   :  { %v1286_v29 = vmax.f32 %v1235_v27, %v1237_v28  ;;  %v1650_v27 = vmax.f32 %v1587_v10, %v1619_v11  ;;  %v1621_v28 = vld [vmem:[#allocation3 + $0x15] ss:$2 sm:$0xff]  ;;  %3997 = vmatprep.subr.bf16.mxu0 %v4347_v24  ;;  %v2098_v10 = vld [vmem:[#allocation6 + $0x480] sm:$0xff] }
 0x249   :  { %v1515_v33 = vld [vmem:[#allocation3 + $0xc2] ss:$2 sm:$0xff]  ;;  %v1547_v34 = vld [vmem:[#allocation3 + $0xc3] ss:$2 sm:$0xff]  ;;  %v2100_v11 = vld [vmem:[#allocation6 + $0x490] sm:$0xff] }
 0x24a   :  { %v1325_v35 = vadd.f32 %v5343_v30, %v1286_v29  ;;  %v1566_v36 = vmax.f32 %v1515_v33, %v1547_v34  ;;  %v3966_v29 = vpack.c.bf16 %v2089_v18, %v2087_v17  ;;  %v1747_v33 = vmax.f32 %v1685_v14, %v1717_v16  ;;  %v1687_v34 = vld [vmem:[#allocation3 + $0x26] ss:$2 sm:$0xff]  ;;  %v1725_v16 = vld [vmem:[#allocation3 + $0x57] ss:$2 sm:$0xff] }
 0x24b   :  { %v1241_v37 = vpop.f32.mrb[58].mxu0  ;;  %v2105_v14 = vld [vmem:[#allocation6 + $0x4b8] sm:$0xff]  ;;  %v3980_v17 = vpack.c.bf16 %v2100_v11, %v2098_v10 }
 0x24c   :  { %v1357_v39 = vmax.f32 %v1325_v35, 0.0  ;;  %v1243_v40 = vpop.f32.mrb[59].mxu0  ;;  %2250 = vmatprep.mubr.f32.mxu1 %v1566_v36  ;;  %v2091_v35 = vld [vmem:[#allocation6 + $0x448] sm:$0xff]  ;;  %v2093_v36 = vld [vmem:[#allocation6 + $0x458] sm:$0xff]  ;;  %v3982_v20 = vpack.c.bf16 %v2105_v14, %v2103_v13 }
 0x24d   :  { %v1287_v41 = vmax.f32 %v1241_v37, %v1243_v40  ;;  %2251 = vmatmul.mubr.f32.gmra.mrb[24].mxu1 %v1470_v38  ;;  %v3998_v37 = vpack.c.bf16 %v2721_v26, %v2720_v21  ;;  %v1719_v38 = vld [vmem:[#allocation3 + $0x27] ss:$2 sm:$0xff]  ;;  %v1609_v11 = vld [vmem:[#allocation3 + $0xb4] ss:$2 sm:$0xff] }
 0x24e   :  { %1389 = vst [vmem:[#allocation3 + $0xe0] sm:$0xff] %v1357_v39  ;;  %v1421_v48 = vld [vmem:[#allocation3 + $0xd0] ss:$2 sm:$0xff]  ;;  %v1453_v49 = vld [vmem:[#allocation3 + $0xd1] ss:$2 sm:$0xff]  ;;  %v2722_v39 = vld [vmem:[#allocation8 + $0xa0] sm:$0xff] }
 0x24f   :  { %v1326_v42 = vadd.f32 %v5343_v30, %v1287_v41  ;;  %v1471_v55 = vmax.f32 %v1421_v48, %v1453_v49  ;;  %v2723_v40 = vld [vmem:[#allocation8 + $0xa8] sm:$0xff]  ;;  %v2092_v48 = vld [vmem:[#allocation6 + $0x450] sm:$0xff]  ;;  %v1748_v49 = vmax.f32 %v1687_v34, %v1719_v38  ;;  %3999 = vmatpush3.bf16.msra.mxu0 %v3998_v37  ;;  %v2102_v21 = vld [vmem:[#allocation6 + $0x4a0] sm:$0xff] }
 0x250   :  { %v1591_v41 = vld [vmem:[#allocation3 + $0x24] ss:$2 sm:$0xff]  ;;  %4000 = vmatprep.subr.bf16.mxu0 %v4347_v24  ;;  %v1629_v25 = vld [vmem:[#allocation3 + $0x55] ss:$2 sm:$0xff]  ;;  %v1631_v38 = vld [vmem:[#allocation3 + $0x65] ss:$2 sm:$0xff] }
 0x251   :  { %v1358_v43 = vmax.f32 %v1326_v42, 0.0  ;;  %v3968_v42 = vpack.c.bf16 %v2088_v32, %v2086_v31  ;;  %v2107_v26 = vld [vmem:[#allocation6 + $0x4c8] sm:$0xff]  ;;  %v1655_v32 = vmax.f32 %v1597_v19, %v1629_v25 }
 0x252   :  { %v1247_v44 = vpop.f32.mrb[60].mxu0  ;;  %v1739_v13 = vld [vmem:[#allocation3 + $0xc7] ss:$2 sm:$0xff] }
 0x253   :  { %1390 = vst [vmem:[#allocation3 + $0xe8] sm:$0xff] %v1358_v43  ;;  %v1249_v45 = vpop.f32.mrb[61].mxu0  ;;  %v1651_v43 = vmax.f32 %v1589_v23, %v1621_v28  ;;  %v1695_v28 = vld [vmem:[#allocation3 + $0x66] ss:$2 sm:$0xff] }
 0x254   :  { %v1288_v46 = vmax.f32 %v1247_v44, %v1249_v45  ;;  %v1623_v44 = vld [vmem:[#allocation3 + $0x25] ss:$2 sm:$0xff]  ;;  %v3970_v45 = vpack.c.bf16 %v2093_v36, %v2091_v35  ;;  %v2108_v36 = vld [vmem:[#allocation6 + $0x4d0] sm:$0xff] }
 0x255   :  { %v1517_v50 = vld [vmem:[#allocation3 + $0xd2] ss:$2 sm:$0xff]  ;;  %v1549_v51 = vld [vmem:[#allocation3 + $0xd3] ss:$2 sm:$0xff]  ;;  %v2106_v35 = vld [vmem:[#allocation6 + $0x4c0] sm:$0xff] }
 0x256   :  { %v1327_v52 = vadd.f32 %v5343_v30, %v1288_v46  ;;  %v1567_v53 = vmax.f32 %v1517_v50, %v1549_v51  ;;  %v2090_v46 = vld [vmem:[#allocation6 + $0x440] sm:$0xff]  ;;  %v1689_v50 = vld [vmem:[#allocation3 + $0x36] ss:$2 sm:$0xff]  ;;  %v1741_v19 = vld [vmem:[#allocation3 + $0xd7] ss:$2 sm:$0xff] }
 0x257   :  { %v1253_v54 = vpop.f32.mrb[62].mxu0  ;;  %v2095_v51 = vld [vmem:[#allocation6 + $0x468] sm:$0xff] }
 0x258   :  { %v1359_v56 = vmax.f32 %v1327_v52, 0.0  ;;  %v1255_v57 = vpop.f32.mrb[63].mxu0  ;;  %2256 = vmatprep.mubr.f32.mxu1 %v1567_v53  ;;  %v2097_v52 = vld [vmem:[#allocation6 + $0x478] sm:$0xff]  ;;  %v4001_v53 = vpack.c.bf16 %v2723_v40, %v2722_v39  ;;  %v2111_v39 = vld [vmem:[#allocation6 + $0x4e8] sm:$0xff] }
 0x259   :  { %v1289_v58 = vmax.f32 %v1253_v54, %v1255_v57  ;;  %2257 = vmatmul.mubr.f32.gmra.mrb[26].mxu1 %v1471_v55  ;;  %v1721_v54 = vld [vmem:[#allocation3 + $0x37] ss:$2 sm:$0xff]  ;;  %v3972_v57 = vpack.c.bf16 %v2092_v48, %v2090_v46  ;;  %v2110_v46 = vld [vmem:[#allocation6 + $0x4e0] sm:$0xff] }
 0x25a   :  { %1391 = vst [vmem:[#allocation3 + $0xf0] sm:$0xff] %v1359_v56  ;;  %v1423_v61 = vld [vmem:[#allocation3 + $0xe0] ss:$2 sm:$0xff]  ;;  %v1455_v62 = vld [vmem:[#allocation3 + $0xe1] ss:$2 sm:$0xff]  ;;  %v2724_v55 = vld [vmem:[#allocation8 + $0xb0] sm:$0xff]  ;;  %4002 = vmatpush3.bf16.msra.mxu0 %v4001_v53 }
 0x25b   :  { %v1328_v59 = vadd.f32 %v5343_v30, %v1289_v58  ;;  %v1472_v2 = vmax.f32 %v1423_v61, %v1455_v62  ;;  %v2725_v56 = vld [vmem:[#allocation8 + $0xb8] sm:$0xff]  ;;  %v1652_v58 = vmax.f32 %v1591_v41, %v1623_v44  ;;  %v2094_v61 = vld [vmem:[#allocation6 + $0x460] sm:$0xff]  ;;  %v2096_v62 = vld [vmem:[#allocation6 + $0x470] sm:$0xff]  ;;  %4003 = vmatprep.subr.bf16.mxu0 %v4347_v24 }
 0x25c   :  { %v4004_v3 = vpack.c.bf16 %v2725_v56, %v2724_v55  ;;  %v2113_v40 = vld [vmem:[#allocation6 + $0x4f8] sm:$0xff]  ;;  %v2112_v48 = vld [vmem:[#allocation6 + $0x4f0] sm:$0xff] }
 0x25d   :  { %v1360_v60 = vmax.f32 %v1328_v59, 0.0  ;;  %v1593_v59 = vld [vmem:[#allocation3 + $0x34] ss:$2 sm:$0xff]  ;;  %v1731_v53 = vld [vmem:[#allocation3 + $0x87] ss:$2 sm:$0xff] }
 0x25e   :  { %4005 = vmatpush3.bf16.msra.mxu0 %v4004_v3  ;;  %v1697_v41 = vld [vmem:[#allocation3 + $0x76] ss:$2 sm:$0xff] }
 0x25f   :  { %1392 = vst [vmem:[#allocation3 + $0xf8] sm:$0xf] %v1360_v60  ;;  %v3974_v60 = vpack.c.bf16 %v2097_v52, %v2095_v51  ;;  %4006 = vmatprep.subr.bf16.mxu0 %v4347_v24  ;;  %v1633_v51 = vld [vmem:[#allocation3 + $0x75] ss:$2 sm:$0xff]  ;;  %v1699_v52 = vld [vmem:[#allocation3 + $0x86] ss:$2 sm:$0xff] }
 0x260   :  { %v1754_v56 = vmax.f32 %v1699_v52, %v1731_v53  ;;  %v1787_v52 = vld [vmem:[#allocation3 + $0x48] ss:$2 sm:$0xff]  ;;  %v1819_v53 = vld [vmem:[#allocation3 + $0x49] ss:$2 sm:$0xff] }
 0x261   :  { %v1519_v63 = vld [vmem:[#allocation3 + $0xe2] ss:$2 sm:$0xff]  ;;  %v1551_v0 = vld [vmem:[#allocation3 + $0xe3] ss:$2 sm:$0xff] }
 0x262   :  { %v1568_v1 = vmax.f32 %v1519_v63, %v1551_v0  ;;  %v1749_v63 = vmax.f32 %v1689_v50, %v1721_v54  ;;  %v1625_v0 = vld [vmem:[#allocation3 + $0x35] ss:$2 sm:$0xff]  ;;  %v1601_v50 = vld [vmem:[#allocation3 + $0x74] ss:$2 sm:$0xff]  ;;  %v3992_v54 = vpack.c.bf16 %v2112_v48, %v2110_v46 }
 0x263   :  { %v1657_v55 = vmax.f32 %v1601_v50, %v1633_v51  ;;  %v1711_v25 = vld [vmem:[#allocation3 + $0xe6] ss:$2 sm:$0xff]  ;;  %v1815_v46 = vld [vmem:[#allocation3 + $0x29] ss:$2 sm:$0xff]  ;;  %v1817_v50 = vld [vmem:[#allocation3 + $0x39] ss:$2 sm:$0xff] }
 0x264   :  { %2262 = vmatprep.mubr.f32.mxu1 %v1568_v1  ;;  %v2099_v1 = vld [vmem:[#allocation6 + $0x488] sm:$0xff] }
 0x265   :  { %2263 = vmatmul.mubr.f32.gmra.mrb[28].mxu1 %v1472_v2  ;;  %v2101_v2 = vld [vmem:[#allocation6 + $0x498] sm:$0xff] }
 0x266   :  { %v1521_v5 = vld [vmem:[#allocation3 + $0xf2] ss:$2 sm:$0xff]  ;;  %v1553_v6 = vld [vmem:[#allocation3 + $0xf3] ss:$2 sm:$0xff] }
 0x267   :  { %v1425_v7 = vld [vmem:[#allocation3 + $0xf0] ss:$2 sm:$0xff]  ;;  %v1569_v8 = vmax.f32 %v1521_v5, %v1553_v6  ;;  %v1457_v9 = vld [vmem:[#allocation3 + $0xf1] ss:$2 sm:$0xff]  ;;  %v3976_v6 = vpack.c.bf16 %v2096_v62, %v2094_v61 }
 0x268   :  { %v1473_v30 = vmax.f32 %v1425_v7, %v1457_v9  ;;  %v1723_v5 = vld [vmem:[#allocation3 + $0x47] ss:$2 sm:$0xff]  ;;  %v1653_v7 = vmax.f32 %v1593_v59, %v1625_v0  ;;  %v3978_v9 = vpack.c.bf16 %v2101_v2, %v2099_v1  ;;  %v1701_v59 = vld [vmem:[#allocation3 + $0x96] ss:$2 sm:$0xff]  ;;  %v1703_v1 = vld [vmem:[#allocation3 + $0xa6] ss:$2 sm:$0xff] }
 0x269   :  { %2268 = vmatprep.mubr.f32.mxu1 %v1569_v8  ;;  %v1595_v8 = vld [vmem:[#allocation3 + $0x44] ss:$2 sm:$0xff]  ;;  %v1637_v0 = vld [vmem:[#allocation3 + $0x95] ss:$2 sm:$0xff] }
 0x26a   :  { %2269 = vmatmul.mubr.f32.gmra.mrb[30].mxu1 %v1473_v30  ;;  %v1750_v30 = vmax.f32 %v1691_v4, %v1723_v5  ;;  %v1654_v18 = vmax.f32 %v1595_v8, %v1627_v12  ;;  %v1735_v2 = vld [vmem:[#allocation3 + $0xa7] ss:$2 sm:$0xff]  ;;  %v1607_v5 = vld [vmem:[#allocation3 + $0xa4] ss:$2 sm:$0xff]  ;;  %v1737_v8 = vld [vmem:[#allocation3 + $0xb7] ss:$2 sm:$0xff] }
 0x26b   :  { %2339 = vmatprep.mubr.f32.mxu1 %v1746_v15  ;;  %v1693_v15 = vld [vmem:[#allocation3 + $0x56] ss:$2 sm:$0xff]  ;;  %v1756_v4 = vmax.f32 %v1703_v1, %v1735_v2  ;;  %v1707_v12 = vld [vmem:[#allocation3 + $0xc6] ss:$2 sm:$0xff]  ;;  %v1827_v1 = vld [vmem:[#allocation3 + $0x89] ss:$2 sm:$0xff] }
 0x26c   :  { %v1751_v23 = vmax.f32 %v1693_v15, %v1725_v16  ;;  %v1758_v15 = vmax.f32 %v1707_v12, %v1739_v13  ;;  %v1611_v16 = vld [vmem:[#allocation3 + $0xc4] ss:$2 sm:$0xff]  ;;  %v1835_v12 = vld [vmem:[#allocation3 + $0xc9] ss:$2 sm:$0xff] }
 0x26e   :  { %2340 = vmatmul.mubr.f32.vlgmr.msra.gmra.mrb[0].mxu1 %v1650_v27  ;;  %v2109_v27 = vld [vmem:[#allocation6 + $0x4d8] sm:$0xff] }
 0x26f   :  { %3965 = vmatpush1.bf16.msra.mxu1 %v3964_v22  ;;  %2345 = vmatprep.mubr.f32.mxu1 %v1747_v33  ;;  %v2104_v22 = vld [vmem:[#allocation6 + $0x4b0] sm:$0xff]  ;;  %v1599_v33 = vld [vmem:[#allocation3 + $0x64] ss:$2 sm:$0xff]  ;;  %v3986_v34 = vpack.c.bf16 %v2109_v27, %v2107_v26  ;;  %v1743_v26 = vld [vmem:[#allocation3 + $0xe7] ss:$2 sm:$0xff] }
 0x270   :  { %3967 = vmatprep.subr.bf16.mxu1 %v3966_v29  ;;  %v1727_v29 = vld [vmem:[#allocation3 + $0x67] ss:$2 sm:$0xff]  ;;  %v3984_v31 = vpack.c.bf16 %v2104_v22, %v2102_v21  ;;  %v1656_v44 = vmax.f32 %v1599_v33, %v1631_v38  ;;  %v1613_v22 = vld [vmem:[#allocation3 + $0xd4] ss:$2 sm:$0xff]  ;;  %v1745_v33 = vld [vmem:[#allocation3 + $0xf7] ss:$2 sm:$0xff] }
 0x271   :  { %v1752_v37 = vmax.f32 %v1695_v28, %v1727_v29  ;;  %v1760_v28 = vmax.f32 %v1711_v25, %v1743_v26  ;;  %v1615_v29 = vld [vmem:[#allocation3 + $0xe4] ss:$2 sm:$0xff] }
 0x272   :  { %2346 = vmatmul.mubr.f32.gmra.mrb[2].mxu1 %v1651_v43  ;;  %v3988_v43 = vpack.c.bf16 %v2108_v36, %v2106_v35  ;;  %v1617_v36 = vld [vmem:[#allocation3 + $0xf4] ss:$2 sm:$0xff] }
 0x273   :  { %2351 = vmatprep.mubr.f32.mxu1 %v1748_v49  ;;  %3969 = vmatpush1.bf16.msra.mxu1 %v3968_v42  ;;  %v1729_v42 = vld [vmem:[#allocation3 + $0x77] ss:$2 sm:$0xff] }
 0x274   :  { %3971 = vmatprep.subr.bf16.mxu1 %v3970_v45  ;;  %v3990_v45 = vpack.c.bf16 %v2113_v40, %v2111_v39  ;;  %v1753_v49 = vmax.f32 %v1697_v41, %v1729_v42  ;;  %v1779_v39 = vld [vmem:[#allocation3 + $0x8] ss:$2 sm:$0xff]  ;;  %v1811_v40 = vld [vmem:[#allocation3 + $0x9] ss:$2 sm:$0xff]  ;;  %v1781_v42 = vld [vmem:[#allocation3 + $0x18] ss:$2 sm:$0xff] }
 0x275   :  { %v1842_v41 = vmax.f32 %v1779_v39, %v1811_v40  ;;  %v2727_v25 = vld [vmem:[#allocation8 + $0xc8] sm:$0xff]  ;;  %v3001_v40 = vld [vmem:[#allocation8 + $0x1a0] sm:$0xff] }
 0x276   :  { %2352 = vmatmul.mubr.f32.gmra.mrb[4].mxu1 %v1652_v58  ;;  %v1635_v58 = vld [vmem:[#allocation3 + $0x85] ss:$2 sm:$0xff] }
 0x277   :  { %2357 = vmatprep.mubr.f32.mxu1 %v1749_v63  ;;  %3973 = vmatpush1.bf16.msra.mxu1 %v3972_v57  ;;  %v1603_v57 = vld [vmem:[#allocation3 + $0x84] ss:$2 sm:$0xff]  ;;  %v1605_v63 = vld [vmem:[#allocation3 + $0x94] ss:$2 sm:$0xff] }
 0x278   :  { %3975 = vmatprep.subr.bf16.mxu1 %v3974_v60  ;;  %v1733_v60 = vld [vmem:[#allocation3 + $0x97] ss:$2 sm:$0xff]  ;;  %v1658_v61 = vmax.f32 %v1603_v57, %v1635_v58  ;;  %v1659_v3 = vmax.f32 %v1605_v63, %v1637_v0  ;;  %v1795_v0 = vld [vmem:[#allocation3 + $0x88] ss:$2 sm:$0xff] }
 0x279   :  { %v1755_v62 = vmax.f32 %v1701_v59, %v1733_v60  ;;  %v5390_v57 = vld [vmem:[#allocation3 + $0xfc] sm:$0xff]  ;;  %v1791_v59 = vld [vmem:[#allocation3 + $0x68] ss:$2 sm:$0xff]  ;;  %v1823_v60 = vld [vmem:[#allocation3 + $0x69] ss:$2 sm:$0xff]  ;;  %v1850_v2 = vmax.f32 %v1795_v0, %v1827_v1 }
 0x27a   :  { %2358 = vmatmul.mubr.f32.gmra.mrb[6].mxu1 %v1653_v7  ;;  %v1705_v7 = vld [vmem:[#allocation3 + $0xb6] ss:$2 sm:$0xff]  ;;  %v1825_v63 = vld [vmem:[#allocation3 + $0x79] ss:$2 sm:$0xff]  ;;  %3581 = vmatprep.mubr.msk.f32.mxu0 %vm4348_vm8, %v5390_v57 }
 0x27b   :  { %2363 = vmatprep.mubr.f32.mxu1 %v1750_v30  ;;  %3977 = vmatpush1.bf16.msra.mxu1 %v3976_v6  ;;  %v1639_v6 = vld [vmem:[#allocation3 + $0xa5] ss:$2 sm:$0xff]  ;;  %v1757_v10 = vmax.f32 %v1705_v7, %v1737_v8  ;;  %v1641_v30 = vld [vmem:[#allocation3 + $0xb5] ss:$2 sm:$0xff]  ;;  %v5422_v0 = vld [vmem:[%s5594_s4] ss:$0 sm:$0xff] }
 0x27c   :  { %3979 = vmatprep.subr.bf16.mxu1 %v3978_v9  ;;  %v1660_v9 = vmax.f32 %v1607_v5, %v1639_v6  ;;  %v1661_v14 = vmax.f32 %v1609_v11, %v1641_v30  ;;  %v1799_v6 = vld [vmem:[#allocation3 + $0xa8] ss:$2 sm:$0xff]  ;;  %v1831_v7 = vld [vmem:[#allocation3 + $0xa9] ss:$2 sm:$0xff] }
 0x27d   :  { %v1852_v8 = vmax.f32 %v1799_v6, %v1831_v7  ;;  %v1803_v30 = vld [vmem:[#allocation3 + $0xc8] ss:$2 sm:$0xff] }
 0x27e   :  { %2364 = vmatmul.mubr.f32.gmra.mrb[8].mxu1 %v1654_v18  ;;  %v1709_v18 = vld [vmem:[#allocation3 + $0xd6] ss:$2 sm:$0xff]  ;;  %v1854_v13 = vmax.f32 %v1803_v30, %v1835_v12 }
 0x27f   :  { %2369 = vmatprep.mubr.f32.mxu1 %v1751_v23  ;;  %3981 = vmatpush1.bf16.msra.mxu1 %v3980_v17  ;;  %v1643_v17 = vld [vmem:[#allocation3 + $0xc5] ss:$2 sm:$0xff]  ;;  %v1759_v21 = vmax.f32 %v1709_v18, %v1741_v19  ;;  %v1645_v23 = vld [vmem:[#allocation3 + $0xd5] ss:$2 sm:$0xff] }
 0x280   :  { %3983 = vmatprep.subr.bf16.mxu1 %v3982_v20  ;;  %v1662_v20 = vmax.f32 %v1611_v16, %v1643_v17  ;;  %v1663_v27 = vmax.f32 %v1613_v22, %v1645_v23  ;;  %v1807_v17 = vld [vmem:[#allocation3 + $0xe8] ss:$2 sm:$0xff]  ;;  %v1839_v18 = vld [vmem:[#allocation3 + $0xe9] ss:$2 sm:$0xff] }
 0x281   :  { %v1856_v19 = vmax.f32 %v1807_v17, %v1839_v18  ;;  %v2726_v23 = vld [vmem:[#allocation8 + $0xc0] sm:$0xff] }
 0x282   :  { %2370 = vmatmul.mubr.f32.gmra.mrb[10].mxu1 %v1655_v32  ;;  %v1713_v32 = vld [vmem:[#allocation3 + $0xf6] ss:$2 sm:$0xff]  ;;  %v4007_v26 = vpack.c.bf16 %v2727_v25, %v2726_v23 }
 0x283   :  { %2375 = vmatprep.mubr.f32.mxu1 %v1752_v37  ;;  %3985 = vmatpush1.bf16.msra.mxu1 %v3984_v31  ;;  %v1647_v31 = vld [vmem:[#allocation3 + $0xe5] ss:$2 sm:$0xff]  ;;  %v1761_v35 = vmax.f32 %v1713_v32, %v1745_v33  ;;  %v1649_v37 = vld [vmem:[#allocation3 + $0xf5] ss:$2 sm:$0xff] }
 0x284   :  { %3987 = vmatprep.subr.bf16.mxu1 %v3986_v34  ;;  %v1664_v34 = vmax.f32 %v1615_v29, %v1647_v31  ;;  %v1665_v38 = vmax.f32 %v1617_v36, %v1649_v37  ;;  %4008 = vmatpush3.bf16.msra.mxu0 %v4007_v26  ;;  %v2997_v31 = vld [vmem:[#allocation8 + $0x180] sm:$0xff]  ;;  %v2998_v32 = vld [vmem:[#allocation8 + $0x188] sm:$0xff]  ;;  %v2999_v37 = vld [vmem:[#allocation8 + $0x190] sm:$0xff] }
 0x285   :  { %4009 = vmatprep.subr.bf16.mxu0 %v4347_v24  ;;  %v4067_v33 = vpack.c.bf16 %v2998_v32, %v2997_v31 }
 0x286   :  { %2376 = vmatmul.mubr.f32.gmra.mrb[12].mxu1 %v1656_v44 }
 0x287   :  { %2381 = vmatprep.mubr.f32.mxu1 %v1753_v49  ;;  %3989 = vmatpush1.bf16.msra.mxu1 %v3988_v43  ;;  %v1813_v43 = vld [vmem:[#allocation3 + $0x19] ss:$2 sm:$0xff]  ;;  %v1785_v49 = vld [vmem:[#allocation3 + $0x38] ss:$2 sm:$0xff] }
 0x288   :  { %3991 = vmatprep.subr.bf16.mxu1 %v3990_v45  ;;  %v1843_v44 = vmax.f32 %v1781_v42, %v1813_v43  ;;  %v1783_v45 = vld [vmem:[#allocation3 + $0x28] ss:$2 sm:$0xff]  ;;  %v1845_v51 = vmax.f32 %v1785_v49, %v1817_v50  ;;  %v3003_v43 = vld [vmem:[#allocation8 + $0x1b0] sm:$0xff] }
 0x289   :  { %v1844_v48 = vmax.f32 %v1783_v45, %v1815_v46  ;;  %v3005_v46 = vld [vmem:[#allocation8 + $0x1c0] sm:$0xff]  ;;  %v2732_v50 = vld [vmem:[#allocation8 + $0xf0] sm:$0xff] }
 0x28a   :  { %2382 = vmatmul.mubr.f32.gmra.mrb[14].mxu1 %v1657_v55  ;;  %v1789_v55 = vld [vmem:[#allocation3 + $0x58] ss:$2 sm:$0xff] }
 0x28b   :  { %2387 = vmatprep.mubr.f32.mxu1 %v1754_v56  ;;  %3993 = vmatpush1.bf16.msra.mxu1 %v3992_v54  ;;  %v1846_v54 = vmax.f32 %v1787_v52, %v1819_v53  ;;  %v1821_v56 = vld [vmem:[#allocation3 + $0x59] ss:$2 sm:$0xff] }
 0x28c   :  { %4066 = vmatprep.subr.bf16.mxu1 %v4347_v24  ;;  %v1847_v58 = vmax.f32 %v1789_v55, %v1821_v56  ;;  %v3007_v53 = vld [vmem:[#allocation8 + $0x1d0] sm:$0xff]  ;;  %v3009_v56 = vld [vmem:[#allocation8 + $0x1e0] sm:$0xff] }
 0x28e   :  { %2388 = vmatmul.mubr.f32.gmra.mrb[16].mxu1 %v1658_v61  ;;  %v1848_v61 = vmax.f32 %v1791_v59, %v1823_v60  ;;  %v3011_v60 = vld [vmem:[#allocation8 + $0x1f0] sm:$0xff] }
 0x28f   :  { %2393 = vmatprep.mubr.f32.mxu1 %v1755_v62  ;;  %v1793_v62 = vld [vmem:[#allocation3 + $0x78] ss:$2 sm:$0xff] }
 0x292   :  { %2394 = vmatmul.mubr.f32.gmra.mrb[18].mxu1 %v1659_v3  ;;  %v1797_v3 = vld [vmem:[#allocation3 + $0x98] ss:$2 sm:$0xff] }
 0x293   :  { %2399 = vmatprep.mubr.f32.mxu1 %v1756_v4  ;;  %v1829_v4 = vld [vmem:[#allocation3 + $0x99] ss:$2 sm:$0xff] }
 0x294   :  { %v1851_v5 = vmax.f32 %v1797_v3, %v1829_v4 }
 0x296   :  { %2400 = vmatmul.mubr.f32.gmra.mrb[20].mxu1 %v1660_v9  ;;  %v1801_v9 = vld [vmem:[#allocation3 + $0xb8] ss:$2 sm:$0xff] }
 0x297   :  { %2405 = vmatprep.mubr.f32.mxu1 %v1757_v10  ;;  %v1833_v10 = vld [vmem:[#allocation3 + $0xb9] ss:$2 sm:$0xff] }
 0x298   :  { %v1853_v11 = vmax.f32 %v1801_v9, %v1833_v10 }
 0x29a   :  { %2406 = vmatmul.mubr.f32.gmra.mrb[22].mxu1 %v1661_v14  ;;  %v1805_v14 = vld [vmem:[#allocation3 + $0xd8] ss:$2 sm:$0xff] }
 0x29b   :  { %2411 = vmatprep.mubr.f32.mxu1 %v1758_v15  ;;  %v1837_v15 = vld [vmem:[#allocation3 + $0xd9] ss:$2 sm:$0xff] }
 0x29c   :  { %v1855_v16 = vmax.f32 %v1805_v14, %v1837_v15 }
 0x29e   :  { %2412 = vmatmul.mubr.f32.gmra.mrb[24].mxu1 %v1662_v20  ;;  %v1809_v20 = vld [vmem:[#allocation3 + $0xf8] ss:$2 sm:$0xff] }
 0x29f   :  { %2417 = vmatprep.mubr.f32.mxu1 %v1759_v21  ;;  %v1841_v21 = vld [vmem:[#allocation3 + $0xf9] ss:$2 sm:$0xff] }
 0x2a0   :  { %v1857_v22 = vmax.f32 %v1809_v20, %v1841_v21 }
 0x2a2   :  { %2418 = vmatmul.mubr.f32.gmra.mrb[26].mxu1 %v1663_v27  ;;  %v2728_v27 = vld [vmem:[#allocation8 + $0xd0] sm:$0xff] }
 0x2a3   :  { %2423 = vmatprep.mubr.f32.mxu1 %v1760_v28  ;;  %v2729_v28 = vld [vmem:[#allocation8 + $0xd8] sm:$0xff] }
 0x2a4   :  { %v4010_v29 = vpack.c.bf16 %v2729_v28, %v2728_v27 }
 0x2a6   :  { %2424 = vmatmul.mubr.f32.gmra.mrb[28].mxu1 %v1664_v34  ;;  %4011 = vmatpush3.bf16.msra.mxu0 %v4010_v29  ;;  %v2730_v34 = vld [vmem:[#allocation8 + $0xe0] sm:$0xff] }
 0x2a7   :  { %2429 = vmatprep.mubr.f32.mxu1 %v1761_v35  ;;  %4012 = vmatprep.subr.bf16.mxu0 %v4347_v24  ;;  %v2731_v35 = vld [vmem:[#allocation8 + $0xe8] sm:$0xff] }
 0x2a8   :  { %v4013_v36 = vpack.c.bf16 %v2731_v35, %v2730_v34 }
 0x2aa   :  { %2430 = vmatmul.mubr.f32.gmra.mrb[30].mxu1 %v1665_v38  ;;  %v3000_v38 = vld [vmem:[#allocation8 + $0x198] sm:$0xff]  ;;  %4014 = vmatpush3.bf16.msra.mxu0 %v4013_v36 }
 0x2ab   :  { %2500 = vmatprep.mubr.f32.mxu1 %v4346_v47  ;;  %v4070_v39 = vpack.c.bf16 %v3000_v38, %v2999_v37  ;;  %4015 = vmatprep.subr.bf16.mxu0 %v4347_v24 }
 0x2ae   :  { %2501 = vmatmul.mubr.f32.vlgmr.msra.gmra.mrb[0].mxu1 %v1842_v41  ;;  %v3002_v41 = vld [vmem:[#allocation8 + $0x1a8] sm:$0xff] }
 0x2af   :  { %2506 = vmatprep.mubr.f32.mxu1 %v4346_v47  ;;  %4068 = vmatpush3.bf16.msra.mxu1 %v4067_v33  ;;  %v4073_v42 = vpack.c.bf16 %v3002_v41, %v3001_v40 }
 0x2b0   :  { %4069 = vmatprep.subr.bf16.mxu1 %v4347_v24 }
 0x2b2   :  { %2507 = vmatmul.mubr.f32.gmra.mrb[2].mxu1 %v1843_v44  ;;  %v3004_v44 = vld [vmem:[#allocation8 + $0x1b8] sm:$0xff] }
 0x2b3   :  { %2512 = vmatprep.mubr.f32.mxu1 %v4346_v47  ;;  %4071 = vmatpush3.bf16.msra.mxu1 %v4070_v39  ;;  %v4076_v45 = vpack.c.bf16 %v3004_v44, %v3003_v43 }
 0x2b4   :  { %4072 = vmatprep.subr.bf16.mxu1 %v4347_v24 }
 0x2b6   :  { %2513 = vmatmul.mubr.f32.gmra.mrb[4].mxu1 %v1844_v48  ;;  %v3006_v48 = vld [vmem:[#allocation8 + $0x1c8] sm:$0xff] }
 0x2b7   :  { %2518 = vmatprep.mubr.f32.mxu1 %v4346_v47  ;;  %4074 = vmatpush3.bf16.msra.mxu1 %v4073_v42  ;;  %v4079_v49 = vpack.c.bf16 %v3006_v48, %v3005_v46 }
 0x2b8   :  { %4075 = vmatprep.subr.bf16.mxu1 %v4347_v24 }
 0x2ba   :  { %2519 = vmatmul.mubr.f32.gmra.mrb[6].mxu1 %v1845_v51  ;;  %v2733_v51 = vld [vmem:[#allocation8 + $0xf8] sm:$0xff] }
 0x2bb   :  { %2524 = vmatprep.mubr.f32.mxu1 %v4346_v47  ;;  %v1849_v47 = vmax.f32 %v1793_v62, %v1825_v63  ;;  %4077 = vmatpush3.bf16.msra.mxu1 %v4076_v45  ;;  %v4016_v52 = vpack.c.bf16 %v2733_v51, %v2732_v50 }
 0x2bc   :  { %4078 = vmatprep.subr.bf16.mxu1 %v4347_v24 }
 0x2bd   :  { %4017 = vmatpush3.bf16.msra.mxu0 %v4016_v52 }
 0x2be   :  { %2525 = vmatmul.mubr.f32.gmra.mrb[8].mxu1 %v1846_v54  ;;  %v3008_v54 = vld [vmem:[#allocation8 + $0x1d8] sm:$0xff]  ;;  %4018 = vmatprep.subr.bf16.mxu0 %v4347_v24 }
 0x2bf   :  { %2530 = vmatprep.mubr.f32.mxu1 %v5390_v57  ;;  %4080 = vmatpush3.bf16.msra.mxu1 %v4079_v49  ;;  %v4082_v55 = vpack.c.bf16 %v3008_v54, %v3007_v53 }
 0x2c0   :  { %4081 = vmatprep.subr.bf16.mxu1 %v4347_v24 }
 0x2c2   :  { %2531 = vmatmul.mubr.f32.gmra.mrb[10].mxu1 %v1847_v58  ;;  %v3010_v58 = vld [vmem:[#allocation8 + $0x1e8] sm:$0xff] }
 0x2c3   :  { %2536 = vmatprep.mubr.f32.mxu1 %v5390_v57  ;;  %4083 = vmatpush3.bf16.msra.mxu1 %v4082_v55  ;;  %v4085_v59 = vpack.c.bf16 %v3010_v58, %v3009_v56 }
 0x2c4   :  { %4084 = vmatprep.subr.bf16.mxu1 %v4347_v24 }
 0x2c6   :  { %2537 = vmatmul.mubr.f32.gmra.mrb[12].mxu1 %v1848_v61  ;;  %v3012_v61 = vld [vmem:[#allocation8 + $0x1f8] sm:$0xff] }
 0x2c7   :  { %2542 = vmatprep.mubr.f32.mxu1 %v5390_v57  ;;  %4086 = vmatpush3.bf16.msra.mxu1 %v4085_v59  ;;  %v4088_v62 = vpack.c.bf16 %v3012_v61, %v3011_v60 }
 0x2c8   :  { %4087 = vmatprep.subr.bf16.mxu1 %v4347_v24 }
 0x2ca   :  { %2543 = vmatmul.mubr.f32.gmra.mrb[14].mxu1 %v1849_v47 }
 0x2cb   :  { %2548 = vmatprep.mubr.f32.mxu1 %v5390_v57  ;;  %4089 = vmatpush3.bf16.msra.mxu1 %v4088_v62 }
 0x2cc   :  { %4114 = vmatprep.subr.bf16.mxu1 %v4347_v24 }
 0x2ce   :  { %2549 = vmatmul.mubr.f32.gmra.mrb[16].mxu1 %v1850_v2 }
 0x2cf   :  { %2554 = vmatprep.mubr.f32.mxu1 %v5390_v57 }
 0x2d2   :  { %2555 = vmatmul.mubr.f32.gmra.mrb[18].mxu1 %v1851_v5 }
 0x2d3   :  { %2560 = vmatprep.mubr.f32.mxu1 %v5390_v57 }
 0x2d6   :  { %2561 = vmatmul.mubr.f32.gmra.mrb[20].mxu1 %v1852_v8 }
 0x2d7   :  { %2566 = vmatprep.mubr.f32.mxu1 %v5390_v57 }
 0x2da   :  { %2567 = vmatmul.mubr.f32.gmra.mrb[22].mxu1 %v1853_v11 }
 0x2db   :  { %2572 = vmatprep.mubr.f32.mxu1 %v5390_v57 }
 0x2de   :  { %2573 = vmatmul.mubr.f32.gmra.mrb[24].mxu1 %v1854_v13 }
 0x2df   :  { %2578 = vmatprep.mubr.f32.mxu1 %v5390_v57 }
 0x2e2   :  { %2579 = vmatmul.mubr.f32.gmra.mrb[26].mxu1 %v1855_v16 }
 0x2e3   :  { %2584 = vmatprep.mubr.f32.mxu1 %v5390_v57 }
 0x2e6   :  { %2585 = vmatmul.mubr.f32.gmra.mrb[28].mxu1 %v1856_v19 }
 0x2e7   :  { %2590 = vmatprep.mubr.f32.mxu1 %v5390_v57 }
 0x2ea   :  { %2591 = vmatmul.mubr.f32.gmra.mrb[30].mxu1 %v1857_v22 }
 0x2eb   :  { %3686 = vmatprep.mubr.msk.f32.mxu1 %vm4348_vm8, %v5390_v57 }
 0x381   :  { %v2502_v63 = vpop.f32.mrb[0].mxu1 }
 0x382   :  { %v2504_v47 = vpop.f32.mrb[1].mxu1 }
 0x383   :  { %v2597_v1 = vmax.f32 %v2502_v63, %v2504_v47 }
 0x385   :  { %v2620_v2 = vadd.f32 %v5422_v0, %v2597_v1  ;;  %v2508_v3 = vpop.f32.mrb[2].mxu1 }
 0x386   :  { %v2510_v4 = vpop.f32.mrb[3].mxu1 }
 0x387   :  { %v2636_v5 = vmax.f32 %v2620_v2, 0.0  ;;  %v2598_v6 = vmax.f32 %v2508_v3, %v2510_v4 }
 0x389   :  { %2652 = vst [vmem:[#allocation5] sm:$0xff] %v2636_v5  ;;  %v2621_v7 = vadd.f32 %v5422_v0, %v2598_v6  ;;  %v2514_v8 = vpop.f32.mrb[4].mxu1 }
 0x38a   :  { %v2516_v9 = vpop.f32.mrb[5].mxu1 }
 0x38b   :  { %v2637_v10 = vmax.f32 %v2621_v7, 0.0  ;;  %v2599_v11 = vmax.f32 %v2514_v8, %v2516_v9 }
 0x38d   :  { %2653 = vst [vmem:[#allocation5 + $0x8] sm:$0xff] %v2637_v10  ;;  %v2622_v30 = vadd.f32 %v5422_v0, %v2599_v11  ;;  %v2520_v12 = vpop.f32.mrb[6].mxu1 }
 0x38e   :  { %v2522_v13 = vpop.f32.mrb[7].mxu1 }
 0x38f   :  { %v2638_v14 = vmax.f32 %v2622_v30, 0.0  ;;  %v2600_v15 = vmax.f32 %v2520_v12, %v2522_v13 }
 0x391   :  { %2654 = vst [vmem:[#allocation5 + $0x10] sm:$0xff] %v2638_v14  ;;  %v2623_v16 = vadd.f32 %v5422_v0, %v2600_v15  ;;  %v2526_v17 = vpop.f32.mrb[8].mxu1 }
 0x392   :  { %v2528_v18 = vpop.f32.mrb[9].mxu1 }
 0x393   :  { %v2639_v19 = vmax.f32 %v2623_v16, 0.0  ;;  %v2601_v20 = vmax.f32 %v2526_v17, %v2528_v18 }
 0x395   :  { %2655 = vst [vmem:[#allocation5 + $0x18] sm:$0xff] %v2639_v19  ;;  %v2624_v21 = vadd.f32 %v5422_v0, %v2601_v20  ;;  %v2532_v22 = vpop.f32.mrb[10].mxu1 }
 0x396   :  { %v2534_v23 = vpop.f32.mrb[11].mxu1 }
 0x397   :  { %v2640_v25 = vmax.f32 %v2624_v21, 0.0  ;;  %v2602_v26 = vmax.f32 %v2532_v22, %v2534_v23 }
 0x398   :  { %v2701_v17 = vld [vmem:[#allocation5 + $0x2] ss:$16 sm:$0x3]  ;;  %v2709_v18 = vld [vmem:[#allocation5 + $0x3] ss:$16 sm:$0x3] }
 0x399   :  { %2656 = vst [vmem:[#allocation5 + $0x20] sm:$0xff] %v2640_v25  ;;  %v2625_v27 = vadd.f32 %v5422_v0, %v2602_v26  ;;  %v2538_v28 = vpop.f32.mrb[12].mxu1  ;;  %v2980_v22 = vld [vmem:[#allocation5 + $0x6] ss:$16 sm:$0x3] }
 0x39a   :  { %v2540_v29 = vpop.f32.mrb[13].mxu1  ;;  %v2988_v23 = vld [vmem:[#allocation5 + $0x7] ss:$16 sm:$0x3] }
 0x39b   :  { %v2641_v31 = vmax.f32 %v2625_v27, 0.0  ;;  %v2603_v32 = vmax.f32 %v2538_v28, %v2540_v29 }
 0x39d   :  { %2657 = vst [vmem:[#allocation5 + $0x28] sm:$0xff] %v2641_v31  ;;  %v2626_v33 = vadd.f32 %v5422_v0, %v2603_v32  ;;  %v2544_v34 = vpop.f32.mrb[14].mxu1 }
 0x39e   :  { %v2546_v35 = vpop.f32.mrb[15].mxu1 }
 0x39f   :  { %v2642_v36 = vmax.f32 %v2626_v33, 0.0  ;;  %v2604_v37 = vmax.f32 %v2544_v34, %v2546_v35 }
 0x3a1   :  { %2658 = vst [vmem:[#allocation5 + $0x30] sm:$0xff] %v2642_v36  ;;  %v2627_v38 = vadd.f32 %v5422_v0, %v2604_v37  ;;  %v2550_v39 = vpop.f32.mrb[16].mxu1  ;;  %v2684_v36 = vld [vmem:[#allocation8] sm:$0xff]  ;;  %v2685_v37 = vld [vmem:[#allocation8 + $0x8] sm:$0xff] }
 0x3a2   :  { %v2552_v40 = vpop.f32.mrb[17].mxu1 }
 0x3a3   :  { %v2643_v41 = vmax.f32 %v2627_v38, 0.0  ;;  %v2605_v42 = vmax.f32 %v2550_v39, %v2552_v40 }
 0x3a5   :  { %2659 = vst [vmem:[#allocation5 + $0x38] sm:$0xff] %v2643_v41  ;;  %v2628_v43 = vadd.f32 %v5422_v0, %v2605_v42  ;;  %v2556_v44 = vpop.f32.mrb[18].mxu1 }
 0x3a6   :  { %v2558_v45 = vpop.f32.mrb[19].mxu1 }
 0x3a7   :  { %v2644_v46 = vmax.f32 %v2628_v43, 0.0  ;;  %v2606_v48 = vmax.f32 %v2556_v44, %v2558_v45 }
 0x3a8   :  { %v2702_v16 = vld [vmem:[#allocation5 + $0x2] ss:$16 sm:$0xc]  ;;  %v2710_v19 = vld [vmem:[#allocation5 + $0x3] ss:$16 sm:$0xc] }
 0x3a9   :  { %2660 = vst [vmem:[#allocation5 + $0x40] sm:$0xff] %v2644_v46  ;;  %v2629_v49 = vadd.f32 %v5422_v0, %v2606_v48  ;;  %v2562_v50 = vpop.f32.mrb[20].mxu1  ;;  %v2981_v20 = vld [vmem:[#allocation5 + $0x6] ss:$16 sm:$0xc]  ;;  %v2703_v28 = vor.u32 %v2702_v16, %v2701_v17  ;;  %v2711_v29 = vor.u32 %v2710_v19, %v2709_v18  ;;  %v4019_v46 = vpack.c.bf16 %v2685_v37, %v2684_v36 }
 0x3aa   :  { %v2564_v51 = vpop.f32.mrb[21].mxu1  ;;  %v2989_v25 = vld [vmem:[#allocation5 + $0x7] ss:$16 sm:$0xc]  ;;  %v2982_v33 = vor.u32 %v2981_v20, %v2980_v22 }
 0x3ab   :  { %v2645_v52 = vmax.f32 %v2629_v49, 0.0  ;;  %v2607_v53 = vmax.f32 %v2562_v50, %v2564_v51  ;;  %v2990_v34 = vor.u32 %v2989_v25, %v2988_v23  ;;  %v2686_v51 = vld [vmem:[#allocation8 + $0x10] sm:$0xff]  ;;  %v2892_v23 = vld [vmem:[#allocation8 + $0x100] sm:$0xff]  ;;  %v2893_v25 = vld [vmem:[#allocation8 + $0x108] sm:$0xff] }
 0x3ac   :  { %v2900_v37 = vld [vmem:[#allocation8 + $0x140] sm:$0xff] }
 0x3ad   :  { %2661 = vst [vmem:[#allocation5 + $0x48] sm:$0xff] %v2645_v52  ;;  %v2630_v54 = vadd.f32 %v5422_v0, %v2607_v53  ;;  %v2568_v55 = vpop.f32.mrb[22].mxu1  ;;  %v2687_v52 = vld [vmem:[#allocation8 + $0x18] sm:$0xff] }
 0x3ae   :  { %v2570_v56 = vpop.f32.mrb[23].mxu1 }
 0x3af   :  { %v2646_v58 = vmax.f32 %v2630_v54, 0.0  ;;  %v2608_v59 = vmax.f32 %v2568_v55, %v2570_v56  ;;  %v4022_v54 = vpack.c.bf16 %v2687_v52, %v2686_v51  ;;  %v2688_v55 = vld [vmem:[#allocation8 + $0x20] sm:$0xff]  ;;  %v2689_v56 = vld [vmem:[#allocation8 + $0x28] sm:$0xff] }
 0x3b1   :  { %2662 = vst [vmem:[#allocation5 + $0x50] sm:$0xff] %v2646_v58  ;;  %v2631_v60 = vadd.f32 %v5422_v0, %v2608_v59  ;;  %v2574_v61 = vpop.f32.mrb[24].mxu1  ;;  %v4025_v58 = vpack.c.bf16 %v2689_v56, %v2688_v55  ;;  %v2690_v59 = vld [vmem:[#allocation8 + $0x30] sm:$0xff] }
 0x3b2   :  { %v2576_v62 = vpop.f32.mrb[25].mxu1 }
 0x3b3   :  { %v2647_v63 = vmax.f32 %v2631_v60, 0.0  ;;  %v2609_v47 = vmax.f32 %v2574_v61, %v2576_v62  ;;  %v2691_v60 = vld [vmem:[#allocation8 + $0x38] sm:$0xff]  ;;  %v2692_v62 = vld [vmem:[#allocation8 + $0x40] sm:$0xff] }
 0x3b4   :  { %v4028_v61 = vpack.c.bf16 %v2691_v60, %v2690_v59 }
 0x3b5   :  { %2663 = vst [vmem:[#allocation5 + $0x58] sm:$0xff] %v2647_v63  ;;  %v2632_v1 = vadd.f32 %v5422_v0, %v2609_v47  ;;  %v2580_v2 = vpop.f32.mrb[26].mxu1  ;;  %v2693_v63 = vld [vmem:[#allocation8 + $0x48] sm:$0xff] }
 0x3b6   :  { %v2582_v3 = vpop.f32.mrb[27].mxu1  ;;  %v4031_v47 = vpack.c.bf16 %v2693_v63, %v2692_v62 }
 0x3b7   :  { %v2648_v4 = vmax.f32 %v2632_v1, 0.0  ;;  %v2610_v5 = vmax.f32 %v2580_v2, %v2582_v3  ;;  %v2694_v1 = vld [vmem:[#allocation8 + $0x50] sm:$0xff]  ;;  %v2695_v2 = vld [vmem:[#allocation8 + $0x58] sm:$0xff] }
 0x3b8   :  { %v2704_v26 = vld [vmem:[#allocation5 + $0x2] ss:$16 sm:$0x30]  ;;  %v2712_v27 = vld [vmem:[#allocation5 + $0x3] ss:$16 sm:$0x30]  ;;  %v4034_v3 = vpack.c.bf16 %v2695_v2, %v2694_v1 }
 0x3b9   :  { %2664 = vst [vmem:[#allocation5 + $0x60] sm:$0xff] %v2648_v4  ;;  %v2633_v6 = vadd.f32 %v5422_v0, %v2610_v5  ;;  %v2586_v7 = vpop.f32.mrb[28].mxu1  ;;  %v2983_v31 = vld [vmem:[#allocation5 + $0x6] ss:$16 sm:$0x30]  ;;  %v2705_v35 = vor.u32 %v2704_v26, %v2703_v28  ;;  %v2697_v5 = vld [vmem:[#allocation8 + $0x68] sm:$0xff]  ;;  %v4043_v26 = vpack.c.bf16 %v2893_v25, %v2892_v23 }
 0x3ba   :  { %v2588_v8 = vpop.f32.mrb[29].mxu1  ;;  %v2991_v32 = vld [vmem:[#allocation5 + $0x7] ss:$16 sm:$0x30]  ;;  %v2984_v40 = vor.u32 %v2983_v31, %v2982_v33  ;;  %v2897_v33 = vld [vmem:[#allocation8 + $0x128] sm:$0xff] }
 0x3bb   :  { %v2649_v9 = vmax.f32 %v2633_v6, 0.0  ;;  %v2611_v10 = vmax.f32 %v2586_v7, %v2588_v8  ;;  %v2992_v41 = vor.u32 %v2991_v32, %v2990_v34  ;;  %v2696_v4 = vld [vmem:[#allocation8 + $0x60] sm:$0xff]  ;;  %v2894_v28 = vld [vmem:[#allocation8 + $0x110] sm:$0xff]  ;;  %v3103_v2 = vld [vmem:[#allocation8 + $0x208] sm:$0xff] }
 0x3bc   :  { %v2669_v6 = vld [vmem:[#allocation5] ss:$16 sm:$0xc]  ;;  %v2677_v7 = vld [vmem:[#allocation5 + $0x1] ss:$16 sm:$0xc] }
 0x3bd   :  { %2665 = vst [vmem:[#allocation5 + $0x68] sm:$0xff] %v2649_v9  ;;  %v2634_v11 = vadd.f32 %v5422_v0, %v2611_v10  ;;  %v2592_v30 = vpop.f32.mrb[30].mxu1  ;;  %v2668_v8 = vld [vmem:[#allocation5] ss:$16 sm:$0x3]  ;;  %v4037_v10 = vpack.c.bf16 %v2697_v5, %v2696_v4 }
 0x3be   :  { %v2594_v12 = vpop.f32.mrb[31].mxu1  ;;  %v2676_v9 = vld [vmem:[#allocation5 + $0x1] ss:$16 sm:$0x3] }
 0x3bf   :  { %v2650_v13 = vmax.f32 %v2634_v11, 0.0  ;;  %v2612_v14 = vmax.f32 %v2592_v30, %v2594_v12  ;;  %v2671_v11 = vld [vmem:[#allocation5] ss:$16 sm:$0x30] }
 0x3c0   :  { %v2679_v30 = vld [vmem:[#allocation5 + $0x1] ss:$16 sm:$0x30]  ;;  %v2878_v51 = vld [vmem:[#allocation5 + $0x4] ss:$16 sm:$0x30] }
 0x3c1   :  { %2666 = vst [vmem:[#allocation5 + $0x70] sm:$0xff] %v2650_v13  ;;  %v2635_v15 = vadd.f32 %v5422_v0, %v2612_v14  ;;  %v2713_v0 = vor.u32 %v2712_v27, %v2711_v29  ;;  %v2698_v12 = vld [vmem:[#allocation8 + $0x70] sm:$0xff]  ;;  %v2699_v13 = vld [vmem:[#allocation8 + $0x78] sm:$0xff]  ;;  %v2670_v14 = vor.u32 %v2669_v6, %v2668_v8  ;;  %v2896_v32 = vld [vmem:[#allocation8 + $0x120] sm:$0xff] }
 0x3c2   :  { %v4040_v20 = vpack.c.bf16 %v2699_v13, %v2698_v12  ;;  %v2895_v29 = vld [vmem:[#allocation8 + $0x118] sm:$0xff]  ;;  %v4049_v34 = vpack.c.bf16 %v2897_v33, %v2896_v32  ;;  %v2886_v52 = vld [vmem:[#allocation5 + $0x5] ss:$16 sm:$0x30] }
 0x3c3   :  { %v2651_v21 = vmax.f32 %v2635_v15, 0.0  ;;  %v2678_v15 = vor.u32 %v2677_v7, %v2676_v9  ;;  %v2672_v18 = vor.u32 %v2671_v11, %v2670_v14  ;;  %v4046_v31 = vpack.c.bf16 %v2895_v29, %v2894_v28  ;;  %v3102_v1 = vld [vmem:[#allocation8 + $0x200] sm:$0xff]  ;;  %v3104_v5 = vld [vmem:[#allocation8 + $0x210] sm:$0xff]  ;;  %v3105_v6 = vld [vmem:[#allocation8 + $0x218] sm:$0xff] }
 0x3c4   :  { %v4094_v7 = vpack.c.bf16 %v3105_v6, %v3104_v5  ;;  %v3106_v8 = vld [vmem:[#allocation8 + $0x220] sm:$0xff]  ;;  %v3107_v9 = vld [vmem:[#allocation8 + $0x228] sm:$0xff]  ;;  %v3108_v11 = vld [vmem:[#allocation8 + $0x230] sm:$0xff] }
 0x3c5   :  { %2667 = vst [vmem:[#allocation5 + $0x78] sm:$0xff] %v2651_v21  ;;  %v2680_v19 = vor.u32 %v2679_v30, %v2678_v15  ;;  %v3109_v30 = vld [vmem:[#allocation8 + $0x238] sm:$0xff]  ;;  %v3110_v13 = vld [vmem:[#allocation8 + $0x240] sm:$0xff]  ;;  %v3111_v14 = vld [vmem:[#allocation8 + $0x248] sm:$0xff] }
 0x3c6   :  { %v4100_v12 = vpack.c.bf16 %v3109_v30, %v3108_v11  ;;  %v4103_v15 = vpack.c.bf16 %v3111_v14, %v3110_v13  ;;  %v3085_v23 = vld [vmem:[#allocation5 + $0x8] ss:$16 sm:$0x3]  ;;  %v3093_v25 = vld [vmem:[#allocation5 + $0x9] ss:$16 sm:$0x3] }
 0x3c7   :  { %v3096_v28 = vld [vmem:[#allocation5 + $0x9] ss:$16 sm:$0x30]  ;;  %v3116_v29 = vld [vmem:[#allocation8 + $0x270] sm:$0xff]  ;;  %v3301_v14 = vld [vmem:[%s5599_s9 + $0x48] sm:$0xff] }
 0x3c8   :  { %v2706_v38 = vld [vmem:[#allocation5 + $0x2] ss:$16 sm:$0xc0]  ;;  %v2714_v39 = vld [vmem:[#allocation5 + $0x3] ss:$16 sm:$0xc0] }
 0x3c9   :  { %v2707_v42 = vor.u32 %v2706_v38, %v2705_v35  ;;  %v2715_v43 = vor.u32 %v2714_v39, %v2713_v0  ;;  %v2985_v44 = vld [vmem:[#allocation5 + $0x6] ss:$16 sm:$0xc0]  ;;  %v2993_v45 = vld [vmem:[#allocation5 + $0x7] ss:$16 sm:$0xc0] }
 0x3ca   :  { %v2986_v48 = vor.u32 %v2985_v44, %v2984_v40  ;;  %v2994_v49 = vor.u32 %v2993_v45, %v2992_v41  ;;  %v2673_v16 = vld [vmem:[#allocation5] ss:$16 sm:$0xc0]  ;;  %v2681_v17 = vld [vmem:[#allocation5 + $0x1] ss:$16 sm:$0xc0] }
 0x3cb   :  { %v2716_v50 = vmax.f32 %v2707_v42, %v2715_v43  ;;  %v2674_v21 = vor.u32 %v2673_v16, %v2672_v18  ;;  %v2682_v22 = vor.u32 %v2681_v17, %v2680_v19  ;;  %v2898_v35 = vld [vmem:[#allocation8 + $0x130] sm:$0xff]  ;;  %v2899_v0 = vld [vmem:[#allocation8 + $0x138] sm:$0xff]  ;;  %v2901_v38 = vld [vmem:[#allocation8 + $0x148] sm:$0xff] }
 0x3cc   :  { %v2995_v53 = vmax.f32 %v2986_v48, %v2994_v49  ;;  %v4052_v36 = vpack.c.bf16 %v2899_v0, %v2898_v35  ;;  %v4055_v39 = vpack.c.bf16 %v2901_v38, %v2900_v37  ;;  %v2902_v40 = vld [vmem:[#allocation8 + $0x150] sm:$0xff]  ;;  %v2903_v41 = vld [vmem:[#allocation8 + $0x158] sm:$0xff]  ;;  %v2904_v43 = vld [vmem:[#allocation8 + $0x160] sm:$0xff] }
 0x3cd   :  { %3582 = vmatmul.mubr.f32.vlgmr.msra.gmra.mrb[64].mxu0 %v2716_v50  ;;  %v2683_v27 = vmax.f32 %v2674_v21, %v2682_v22  ;;  %v4058_v42 = vpack.c.bf16 %v2903_v41, %v2902_v40  ;;  %v2905_v44 = vld [vmem:[#allocation8 + $0x168] sm:$0xff]  ;;  %v2876_v45 = vld [vmem:[#allocation5 + $0x4] ss:$16 sm:$0xc]  ;;  %v3113_v17 = vld [vmem:[#allocation8 + $0x258] sm:$0xff] }
 0x3ce   :  { %4020 = vmatpush3.bf16.msra.mxu0 %v4019_v46  ;;  %3687 = vmatmul.mubr.f32.vlgmr.msra.gmra.mrb[32].mxu1 %v2995_v53  ;;  %v2884_v46 = vld [vmem:[#allocation5 + $0x5] ss:$16 sm:$0xc]  ;;  %v2875_v48 = vld [vmem:[#allocation5 + $0x4] ss:$16 sm:$0x3]  ;;  %v4061_v50 = vpack.c.bf16 %v2905_v44, %v2904_v43 }
 0x3cf   :  { %4021 = vmatprep.subr.bf16.mxu0 %v4347_v24  ;;  %3616 = vmatprep.mubr.msk.f32.mxu0 %vm4348_vm8, %v5390_v57  ;;  %v2883_v49 = vld [vmem:[#allocation5 + $0x5] ss:$16 sm:$0x3]  ;;  %v2877_v55 = vor.u32 %v2876_v45, %v2875_v48  ;;  %v3086_v21 = vld [vmem:[#allocation5 + $0x8] ss:$16 sm:$0xc] }
 0x3d0   :  { %3756 = vmatprep.mubr.msk.f32.mxu1 %vm4348_vm8, %v5390_v57  ;;  %v2906_v53 = vld [vmem:[#allocation8 + $0x170] sm:$0xff]  ;;  %v2885_v56 = vor.u32 %v2884_v46, %v2883_v49  ;;  %v3114_v19 = vld [vmem:[#allocation8 + $0x260] sm:$0xff]  ;;  %v3094_v22 = vld [vmem:[#allocation5 + $0x9] ss:$16 sm:$0xc]  ;;  %v3087_v32 = vor.u32 %v3086_v21, %v3085_v23 }
 0x3d1   :  { %v2888_v59 = vld [vmem:[#allocation5 + $0x5] ss:$16 sm:$0xc0]  ;;  %v2879_v60 = vor.u32 %v2878_v51, %v2877_v55  ;;  %v3095_v33 = vor.u32 %v3094_v22, %v3093_v25  ;;  %v3098_v35 = vld [vmem:[#allocation5 + $0x9] ss:$16 sm:$0xc0] }
 0x3d2   :  { %4023 = vmatpush3.bf16.msra.mxu0 %v4022_v54  ;;  %v2907_v54 = vld [vmem:[#allocation8 + $0x178] sm:$0xff]  ;;  %v3112_v16 = vld [vmem:[#allocation8 + $0x250] sm:$0xff]  ;;  %v3200_v43 = vld [vmem:[%s5597_s7 + $0x10] sm:$0xff] }
 0x3d3   :  { %4024 = vmatprep.subr.bf16.mxu0 %v4347_v24  ;;  %v4064_v62 = vpack.c.bf16 %v2907_v54, %v2906_v53  ;;  %v4106_v18 = vpack.c.bf16 %v3113_v17, %v3112_v16  ;;  %v3198_v41 = vld [vmem:[%s5597_s7] sm:$0xff]  ;;  %v3201_v45 = vld [vmem:[%s5597_s7 + $0x18] sm:$0xff]  ;;  %v3203_v48 = vld [vmem:[%s5597_s7 + $0x28] sm:$0xff] }
 0x3d4   :  { %v4118_v46 = vpack.c.bf16 %v3201_v45, %v3200_v43  ;;  %v3205_v51 = vld [vmem:[%s5597_s7 + $0x38] sm:$0xff]  ;;  %v3206_v53 = vld [vmem:[%s5597_s7 + $0x40] sm:$0xff]  ;;  %v3207_v54 = vld [vmem:[%s5597_s7 + $0x48] sm:$0xff] }
 0x3d5   :  { %v4127_v55 = vpack.c.bf16 %v3207_v54, %v3206_v53  ;;  %v3295_v6 = vld [vmem:[%s5599_s9 + $0x18] sm:$0xff]  ;;  %v3298_v11 = vld [vmem:[%s5599_s9 + $0x30] sm:$0xff]  ;;  %v3300_v13 = vld [vmem:[%s5599_s9 + $0x40] sm:$0xff] }
 0x3d6   :  { %4026 = vmatpush3.bf16.msra.mxu0 %v4025_v58  ;;  %v2880_v58 = vld [vmem:[#allocation5 + $0x4] ss:$16 sm:$0xc0]  ;;  %v3302_v16 = vld [vmem:[%s5599_s9 + $0x50] sm:$0xff] }
 0x3d7   :  { %4027 = vmatprep.subr.bf16.mxu0 %v4347_v24  ;;  %v2881_v63 = vor.u32 %v2880_v58, %v2879_v60  ;;  %v3209_v58 = vld [vmem:[%s5597_s7 + $0x58] sm:$0xff]  ;;  %v3210_v60 = vld [vmem:[%s5597_s7 + $0x60] sm:$0xff] }
 0x3d8   :  { %v3299_v30 = vld [vmem:[%s5599_s9 + $0x38] sm:$0xff] }
 0x3d9   :  { %v3303_v17 = vld [vmem:[%s5599_s9 + $0x58] sm:$0xff] }
 0x3da   :  { %4029 = vmatpush3.bf16.msra.mxu0 %v4028_v61  ;;  %v2887_v61 = vor.u32 %v2886_v52, %v2885_v56  ;;  %v3208_v56 = vld [vmem:[%s5597_s7 + $0x50] sm:$0xff] }
 0x3db   :  { %4030 = vmatprep.subr.bf16.mxu0 %v4347_v24 }
 0x3de   :  { %4032 = vmatpush3.bf16.msra.mxu0 %v4031_v47  ;;  %v2889_v47 = vor.u32 %v2888_v59, %v2887_v61  ;;  %v4130_v59 = vpack.c.bf16 %v3209_v58, %v3208_v56  ;;  %v3211_v61 = vld [vmem:[%s5597_s7 + $0x68] sm:$0xff] }
 0x3df   :  { %4033 = vmatprep.subr.bf16.mxu0 %v4347_v24 }
 0x3e0   :  { %v2890_v4 = vmax.f32 %v2881_v63, %v2889_v47  ;;  %v3212_v63 = vld [vmem:[%s5597_s7 + $0x70] sm:$0xff]  ;;  %v3213_v47 = vld [vmem:[%s5597_s7 + $0x78] sm:$0xff] }
 0x3e2   :  { %4035 = vmatpush3.bf16.msra.mxu0 %v4034_v3  ;;  %v4091_v3 = vpack.c.bf16 %v3103_v2, %v3102_v1  ;;  %v4136_v1 = vpack.c.bf16 %v3213_v47, %v3212_v63  ;;  %v3292_v2 = vld [vmem:[%s5599_s9] sm:$0xff] }
 0x3e3   :  { %4036 = vmatprep.subr.bf16.mxu0 %v4347_v24 }
 0x3e6   :  { %4038 = vmatpush3.bf16.msra.mxu0 %v4037_v10  ;;  %v4097_v10 = vpack.c.bf16 %v3107_v9, %v3106_v8  ;;  %v3296_v8 = vld [vmem:[%s5599_s9 + $0x20] sm:$0xff]  ;;  %v3297_v9 = vld [vmem:[%s5599_s9 + $0x28] sm:$0xff] }
 0x3e7   :  { %4039 = vmatprep.subr.bf16.mxu0 %v4347_v24 }
 0x3ea   :  { %4041 = vmatpush3.bf16.msra.mxu0 %v4040_v20  ;;  %v3115_v20 = vld [vmem:[#allocation8 + $0x268] sm:$0xff] }
 0x3eb   :  { %4042 = vmatprep.subr.bf16.mxu0 %v4347_v24 }
 0x3ed   :  { %3617 = vmatmul.mubr.f32.vlgmr.msra.gmra.mrb[66].mxu0 %v2683_v27  ;;  %v3088_v27 = vld [vmem:[#allocation5 + $0x8] ss:$16 sm:$0x30] }
 0x3ee   :  { %4044 = vmatpush3.bf16.msra.mxu0 %v4043_v26  ;;  %3651 = vmatprep.mubr.msk.f32.mxu0 %vm4348_vm8, %v5390_v57  ;;  %v4109_v26 = vpack.c.bf16 %v3115_v20, %v3114_v19  ;;  %v3089_v0 = vor.u32 %v3088_v27, %v3087_v32  ;;  %v3304_v19 = vld [vmem:[%s5599_s9 + $0x60] sm:$0xff]  ;;  %v3305_v20 = vld [vmem:[%s5599_s9 + $0x68] sm:$0xff] }
 0x3ef   :  { %4045 = vmatprep.subr.bf16.mxu0 %v4347_v24  ;;  %v4157_v21 = vpack.c.bf16 %v3305_v20, %v3304_v19 }
 0x3f2   :  { %4047 = vmatpush3.bf16.msra.mxu0 %v4046_v31  ;;  %v3117_v31 = vld [vmem:[#allocation8 + $0x278] sm:$0xff] }
 0x3f3   :  { %4048 = vmatprep.subr.bf16.mxu0 %v4347_v24  ;;  %v4112_v37 = vpack.c.bf16 %v3117_v31, %v3116_v29 }
 0x3f6   :  { %4050 = vmatpush3.bf16.msra.mxu0 %v4049_v34  ;;  %v3090_v34 = vld [vmem:[#allocation5 + $0x8] ss:$16 sm:$0xc0] }
 0x3f7   :  { %4051 = vmatprep.subr.bf16.mxu0 %v4347_v24  ;;  %v3091_v38 = vor.u32 %v3090_v34, %v3089_v0  ;;  %v3427_v0 = vld [vmem:[%s5596_s6] ss:$0 sm:$0xff] }
 0x3fa   :  { %4053 = vmatpush3.bf16.msra.mxu0 %v4052_v36  ;;  %v3097_v36 = vor.u32 %v3096_v28, %v3095_v33 }
 0x3fb   :  { %4054 = vmatprep.subr.bf16.mxu0 %v4347_v24 }
 0x3fe   :  { %4056 = vmatpush3.bf16.msra.mxu0 %v4055_v39  ;;  %v3099_v39 = vor.u32 %v3098_v35, %v3097_v36 }
 0x3ff   :  { %4057 = vmatprep.subr.bf16.mxu0 %v4347_v24 }
 0x400   :  { %v3100_v40 = vmax.f32 %v3091_v38, %v3099_v39 }
 0x402   :  { %4059 = vmatpush3.bf16.msra.mxu0 %v4058_v42  ;;  %v3199_v42 = vld [vmem:[%s5597_s7 + $0x8] sm:$0xff] }
 0x403   :  { %4060 = vmatprep.subr.bf16.mxu0 %v4347_v24  ;;  %v4115_v44 = vpack.c.bf16 %v3199_v42, %v3198_v41  ;;  %v3428_v42 = vld [vmem:[#allocation10] ss:$0 sm:$0xff] }
 0x405   :  { %4116 = vmatpush3.bf16.msra.mxu1 %v4115_v44 }
 0x406   :  { %4062 = vmatpush3.bf16.msra.mxu0 %v4061_v50  ;;  %4117 = vmatprep.subr.bf16.mxu1 %v4347_v24  ;;  %v3204_v50 = vld [vmem:[%s5597_s7 + $0x30] sm:$0xff] }
 0x407   :  { %4063 = vmatprep.subr.bf16.mxu0 %v4347_v24  ;;  %v4124_v52 = vpack.c.bf16 %v3205_v51, %v3204_v50 }
 0x409   :  { %4119 = vmatpush3.bf16.msra.mxu1 %v4118_v46 }
 0x40a   :  { %4065 = vmatpush3.bf16.msra.mxu0 %v4064_v62  ;;  %4120 = vmatprep.subr.bf16.mxu1 %v4347_v24  ;;  %v4133_v62 = vpack.c.bf16 %v3211_v61, %v3210_v60 }
 0x40b   :  { %4090 = vmatprep.subr.bf16.mxu0 %v4347_v24 }
 0x40d   :  { %3652 = vmatmul.mubr.f32.vlgmr.msra.gmra.mrb[68].mxu0 %v2890_v4  ;;  %v3294_v4 = vld [vmem:[%s5599_s9 + $0x10] sm:$0xff] }
 0x40e   :  { %4092 = vmatpush3.bf16.msra.mxu0 %v4091_v3  ;;  %3721 = vmatprep.mubr.msk.f32.mxu0 %vm4348_vm8, %v5390_v57  ;;  %v3293_v3 = vld [vmem:[%s5599_s9 + $0x8] sm:$0xff] }
 0x40f   :  { %4093 = vmatprep.subr.bf16.mxu0 %v4347_v24  ;;  %v4139_v5 = vpack.c.bf16 %v3293_v3, %v3292_v2 }
 0x412   :  { %4095 = vmatpush3.bf16.msra.mxu0 %v4094_v7  ;;  %v4142_v7 = vpack.c.bf16 %v3295_v6, %v3294_v4 }
 0x413   :  { %4096 = vmatprep.subr.bf16.mxu0 %v4347_v24 }
 0x416   :  { %4098 = vmatpush3.bf16.msra.mxu0 %v4097_v10  ;;  %v4145_v10 = vpack.c.bf16 %v3297_v9, %v3296_v8 }
 0x417   :  { %4099 = vmatprep.subr.bf16.mxu0 %v4347_v24 }
 0x41a   :  { %4101 = vmatpush3.bf16.msra.mxu0 %v4100_v12  ;;  %v4148_v12 = vpack.c.bf16 %v3299_v30, %v3298_v11 }
 0x41b   :  { %4102 = vmatprep.subr.bf16.mxu0 %v4347_v24 }
 0x41e   :  { %4104 = vmatpush3.bf16.msra.mxu0 %v4103_v15  ;;  %v4151_v15 = vpack.c.bf16 %v3301_v14, %v3300_v13 }
 0x41f   :  { %4105 = vmatprep.subr.bf16.mxu0 %v4347_v24 }
 0x422   :  { %4107 = vmatpush3.bf16.msra.mxu0 %v4106_v18  ;;  %v4154_v18 = vpack.c.bf16 %v3303_v17, %v3302_v16 }
 0x423   :  { %4108 = vmatprep.subr.bf16.mxu0 %v4347_v24 }
 0x426   :  { %4110 = vmatpush3.bf16.msra.mxu0 %v4109_v26 }
 0x427   :  { %4111 = vmatprep.subr.bf16.mxu0 %v4347_v24 }
 0x42a   :  { %4113 = vmatpush3.bf16.msra.mxu0 %v4112_v37 }
 0x42b   :  { %4138 = vmatprep.subr.bf16.mxu0 %v4347_v24 }
 0x42d   :  { %3722 = vmatmul.mubr.f32.vlgmr.msra.gmra.mrb[70].mxu0 %v3100_v40  ;;  %v3307_v40 = vld [vmem:[%s5599_s9 + $0x78] sm:$0xff] }
 0x42e   :  { %3791 = vmatprep.mubr.msk.f32.mxu0 %vm4348_vm8, %v5390_v57  ;;  %v3202_v57 = vld [vmem:[%s5597_s7 + $0x20] sm:$0xff]  ;;  %4140 = vmatpush3.bf16.msra.mxu0 %v4139_v5 }
 0x42f   :  { %v4121_v49 = vpack.c.bf16 %v3203_v48, %v3202_v57  ;;  %4141 = vmatprep.subr.bf16.mxu0 %v4347_v24  ;;  %v3429_v57 = vld [vmem:[#allocation11] ss:$0 sm:$0xff] }
 0x431   :  { %4122 = vmatpush3.bf16.msra.mxu1 %v4121_v49 }
 0x432   :  { %4123 = vmatprep.subr.bf16.mxu1 %v4347_v24  ;;  %4143 = vmatpush3.bf16.msra.mxu0 %v4142_v7 }
 0x433   :  { %4144 = vmatprep.subr.bf16.mxu0 %v4347_v24 }
 0x435   :  { %4125 = vmatpush3.bf16.msra.mxu1 %v4124_v52 }
 0x436   :  { %4126 = vmatprep.subr.bf16.mxu1 %v4347_v24  ;;  %4146 = vmatpush3.bf16.msra.mxu0 %v4145_v10 }
 0x437   :  { %4147 = vmatprep.subr.bf16.mxu0 %v4347_v24 }
 0x439   :  { %4128 = vmatpush3.bf16.msra.mxu1 %v4127_v55 }
 0x43a   :  { %4129 = vmatprep.subr.bf16.mxu1 %v4347_v24  ;;  %4149 = vmatpush3.bf16.msra.mxu0 %v4148_v12 }
 0x43b   :  { %4150 = vmatprep.subr.bf16.mxu0 %v4347_v24 }
 0x43d   :  { %4131 = vmatpush3.bf16.msra.mxu1 %v4130_v59 }
 0x43e   :  { %4132 = vmatprep.subr.bf16.mxu1 %v4347_v24  ;;  %4152 = vmatpush3.bf16.msra.mxu0 %v4151_v15 }
 0x43f   :  { %4153 = vmatprep.subr.bf16.mxu0 %v4347_v24 }
 0x441   :  { %4134 = vmatpush3.bf16.msra.mxu1 %v4133_v62 }
 0x442   :  { %4135 = vmatprep.subr.bf16.mxu1 %v4347_v24  ;;  %4155 = vmatpush3.bf16.msra.mxu0 %v4154_v18 }
 0x443   :  { %4156 = vmatprep.subr.bf16.mxu0 %v4347_v24 }
 0x445   :  { %4137 = vmatpush3.bf16.msra.mxu1 %v4136_v1 }
 0x446   :  { %4158 = vmatpush3.bf16.msra.mxu0 %v4157_v21 }
 0x447   :  { %4159 = vmatprep.subr.bf16.mxu0 %v4347_v24  ;;  %v3306_v24 = vld [vmem:[%s5599_s9 + $0x70] sm:$0xff] }
 0x448   :  { %v4160_v41 = vpack.c.bf16 %v3307_v40, %v3306_v24 }
 0x44a   :  { %4161 = vmatpush3.bf16.msra.mxu0 %v4160_v41 }
 0x4a0   :  { %v2800_v22 = vpop.f32.mrb[64].mxu0 }
 0x4a1   :  { %v3079_v23 = vpop.f32.mrb[32].mxu1  ;;  %v3583_v25 = vpop.f32.mrb[65].mxu0 }
 0x4a2   :  { %v3688_v26 = vpop.f32.mrb[33].mxu1 }
 0x4c0   :  { %v2870_v27 = vpop.f32.mrb[66].mxu0 }
 0x4c1   :  { %v2871_v28 = vadd.f32 %v2870_v27, %v2800_v22  ;;  %v3618_v29 = vpop.f32.mrb[67].mxu0 }
 0x4e0   :  { %v2974_v31 = vpop.f32.mrb[68].mxu0 }
 0x4e1   :  { %v2978_v32 = vadd.f32 %v2974_v31, %v2871_v28  ;;  %v3653_v33 = vpop.f32.mrb[69].mxu0 }
 0x4e3   :  { %v3083_v34 = vadd.f32 %v3079_v23, %v2978_v32 }
 0x500   :  { %v3184_v35 = vpop.f32.mrb[70].mxu0 }
 0x501   :  { %v3188_v36 = vadd.f32 %v3184_v35, %v3083_v34  ;;  %v3723_v37 = vpop.f32.mrb[71].mxu0 }
 0x503   :  { %v3196_v38 = vadd.f32 %v3427_v0, %v3188_v36 }
 0x505   :  { %v3197_v39 = vmax.f32 %v3196_v38, 0.0 }
 0x507   :  { %3757 = vmatmul.mubr.f32.vlgmr.msra.gmra.mrb[34].mxu1 %v3197_v39 }
 0x5da   :  { %v3287_v43 = vpop.f32.mrb[34].mxu1 }
 0x5db   :  { %v3288_v44 = vadd.f32 %v3428_v42, %v3287_v43  ;;  %v3758_v45 = vpop.f32.mrb[35].mxu1 }
 0x5dd   :  { %v3291_v46 = vmax.f32 %v3288_v44, 0.0 }
 0x5df   :  { %3792 = vmatmul.mubr.f32.vlgmr.msra.gmra.mrb[72].mxu0 %v3291_v46 }
 0x6b2   :  { %v3381_v48 = vpop.f32.mrb[72].mxu0 }
 0x6b3   :  { %v3382_v49 = vadd.f32 %v3429_v57, %v3381_v48  ;;  %v3793_v50 = vpop.f32.mrb[73].mxu0 }
 0x6b5   :  { %3385 = vst [vmem:[%s5601_s11] sm:$0xff] %v3382_v49 }
 0x6b6   :  { %3390 = vsyncpa [#allocation7], 1 }
 0x6b7   :  { %3391 = vsyncpa [#allocation9], 1 }
 0x6b8   :  { %3392 = vsyncpa [#allocation12], 1 }

</bundles_post_ra>
